<compile_context>
chip_gen: v7x
topology: tpu7x:2x2x1
jax: 0.10.0
libtpu: 0.0.40
codegen_flags: <defaults>
</compile_context>

<pallas_src>
import math
import jax
import jax.numpy as jnp
from jax.experimental import pallas as pl
from jax.experimental.pallas import tpu as pltpu


# ------------------------------ tile selection -------------------------------

_TM = 256     # row tile (B*S)
_TN = 256     # output-feature tile
_TF = 512     # d_ff contraction chunk
_TQ = 128     # attention query tile
_VMEM_LIMIT = 64 * 1024 * 1024


def _tile(dim, target):
    # Use the target tile when it divides the dim; otherwise fall back to the
    # full extent (required for the small test shapes and still legal per the
    # (8,128)-or-full-extent rule).
    return target if dim % target == 0 else dim


# ----------------------------- Pallas kernels ------------------------------

def _rms_matmul_kernel(x_ref, ln_ref, w_ref, o_ref):
    # y = RMSNorm(x) @ w ; variance in fp32, MXU fed bf16.
    x = x_ref[...]
    var = jnp.mean(x * x, axis=-1, keepdims=True)
    normed = (x * jax.lax.rsqrt(var + 1e-6) * ln_ref[...]).astype(jnp.bfloat16)
    o_ref[...] = jnp.dot(normed, w_ref[...], preferred_element_type=jnp.float32)


def rms_matmul(x, ln_w, w):
    M, D = x.shape
    N = w.shape[1]
    tm, tn = _tile(M, _TM), _tile(N, _TN)
    return pl.pallas_call(
        _rms_matmul_kernel,
        out_shape=jax.ShapeDtypeStruct((M, N), jnp.float32),
        grid=(M // tm, N // tn),
        in_specs=[
            pl.BlockSpec((tm, D), lambda m, n: (m, 0)),
            pl.BlockSpec((1, D), lambda m, n: (0, 0)),
            pl.BlockSpec((D, tn), lambda m, n: (0, n)),
        ],
        out_specs=pl.BlockSpec((tm, tn), lambda m, n: (m, n)),
        compiler_params=pltpu.CompilerParams(
            dimension_semantics=("parallel", "parallel"),
            vmem_limit_bytes=_VMEM_LIMIT),
    )(x, ln_w, w)


def _matmul_kernel(x_ref, w_ref, o_ref):
    o_ref[...] = jnp.dot(x_ref[...].astype(jnp.bfloat16), w_ref[...],
                         preferred_element_type=jnp.float32)


def matmul(x, w):
    M, K = x.shape
    N = w.shape[1]
    tm, tn = _tile(M, _TM), _tile(N, _TN)
    return pl.pallas_call(
        _matmul_kernel,
        out_shape=jax.ShapeDtypeStruct((M, N), jnp.float32),
        grid=(M // tm, N // tn),
        in_specs=[
            pl.BlockSpec((tm, K), lambda m, n: (m, 0)),
            pl.BlockSpec((K, tn), lambda m, n: (0, n)),
        ],
        out_specs=pl.BlockSpec((tm, tn), lambda m, n: (m, n)),
        compiler_params=pltpu.CompilerParams(
            dimension_semantics=("parallel", "parallel"),
            vmem_limit_bytes=_VMEM_LIMIT),
    )(x, w)


def _matmul_residual_kernel(x_ref, w_ref, res_ref, o_ref):
    # out = residual + x @ w  (residual add fused into the projection).
    o_ref[...] = res_ref[...] + jnp.dot(
        x_ref[...].astype(jnp.bfloat16), w_ref[...],
        preferred_element_type=jnp.float32)


def matmul_add(x, w, res):
    M, K = x.shape
    N = w.shape[1]
    tm, tn = _tile(M, _TM), _tile(N, _TN)
    return pl.pallas_call(
        _matmul_residual_kernel,
        out_shape=jax.ShapeDtypeStruct((M, N), jnp.float32),
        grid=(M // tm, N // tn),
        in_specs=[
            pl.BlockSpec((tm, K), lambda m, n: (m, 0)),
            pl.BlockSpec((K, tn), lambda m, n: (0, n)),
            pl.BlockSpec((tm, tn), lambda m, n: (m, n)),
        ],
        out_specs=pl.BlockSpec((tm, tn), lambda m, n: (m, n)),
        compiler_params=pltpu.CompilerParams(
            dimension_semantics=("parallel", "parallel"),
            vmem_limit_bytes=_VMEM_LIMIT),
    )(x, w, res)


def _ffn_kernel(x_ref, ln_ref, wi_ref, wo_ref, o_ref, nrm_ref):
    # out = x + relu(RMSNorm(x) @ wi) @ wo, d_ff contracted in chunks (f axis),
    # accumulating into the VMEM-resident output block.
    f = pl.program_id(1)

    @pl.when(f == 0)
    def _():
        x = x_ref[...]
        var = jnp.mean(x * x, axis=-1, keepdims=True)
        nrm_ref[...] = (x * jax.lax.rsqrt(var + 1e-6) * ln_ref[...]).astype(jnp.bfloat16)
        o_ref[...] = x  # residual

    h = jnp.maximum(jnp.dot(nrm_ref[...], wi_ref[...],
                            preferred_element_type=jnp.float32), 0.0)
    o_ref[...] += jnp.dot(h.astype(jnp.bfloat16), wo_ref[...],
                          preferred_element_type=jnp.float32)


def ffn_block(x, ln_w, wi, wo):
    M, D = x.shape
    F = wi.shape[1]
    tm, tf = _tile(M, _TM), _tile(F, _TF)
    return pl.pallas_call(
        _ffn_kernel,
        out_shape=jax.ShapeDtypeStruct((M, D), jnp.float32),
        grid=(M // tm, F // tf),
        in_specs=[
            pl.BlockSpec((tm, D), lambda m, f: (m, 0)),
            pl.BlockSpec((1, D), lambda m, f: (0, 0)),
            pl.BlockSpec((D, tf), lambda m, f: (0, f)),
            pl.BlockSpec((tf, D), lambda m, f: (f, 0)),
        ],
        out_specs=pl.BlockSpec((tm, D), lambda m, f: (m, 0)),
        scratch_shapes=[pltpu.VMEM((tm, D), jnp.bfloat16)],
        compiler_params=pltpu.CompilerParams(
            dimension_semantics=("parallel", "arbitrary"),
            vmem_limit_bytes=_VMEM_LIMIT),
    )(x, ln_w, wi, wo)


def _rmsnorm_kernel(x_ref, w_ref, o_ref):
    # T5LayerNorm: no mean subtraction, no bias; fp32 stats.
    x = x_ref[...]
    var = jnp.mean(x * x, axis=-1, keepdims=True)
    o_ref[...] = x * jax.lax.rsqrt(var + 1e-6) * w_ref[...]


def rmsnorm2d(x, w):
    M, D = x.shape
    tm = _tile(M, _TM)
    return pl.pallas_call(
        _rmsnorm_kernel,
        out_shape=jax.ShapeDtypeStruct((M, D), jnp.float32),
        grid=(M // tm,),
        in_specs=[pl.BlockSpec((tm, D), lambda m: (m, 0)),
                  pl.BlockSpec((1, D), lambda m: (0, 0))],
        out_specs=pl.BlockSpec((tm, D), lambda m: (m, 0)),
        compiler_params=pltpu.CompilerParams(
            dimension_semantics=("parallel",)),
    )(x, w)


def _attn_bias_kernel(q_ref, k_ref, v_ref, b_ref, o_ref):
    # One (batch element, query tile) per grid step; all heads processed together.
    # q: (H, tq, Dh) bf16; k/v: (H, Sk, Dh) bf16; bias: (H, tq, Sk) fp32.
    q, k, v = q_ref[...], k_ref[...], v_ref[...]
    # T5 does NOT scale scores by 1/sqrt(d_kv); additive bias carries rel-pos + mask.
    s = jnp.einsum('hqd,hkd->hqk', q, k,
                   preferred_element_type=jnp.float32) + b_ref[...]
    m = jnp.max(s, axis=-1, keepdims=True)
    p = jnp.exp(s - m)
    inv = pl.reciprocal(jnp.sum(p, axis=-1, keepdims=True), approx=True)
    p = (p * inv).astype(jnp.bfloat16)
    o_ref[...] = jnp.einsum('hqk,hkd->hqd', p, v,
                            preferred_element_type=jnp.float32)


def _attn_nobias_kernel(q_ref, k_ref, v_ref, o_ref):
    q, k, v = q_ref[...], k_ref[...], v_ref[...]
    s = jnp.einsum('hqd,hkd->hqk', q, k, preferred_element_type=jnp.float32)
    m = jnp.max(s, axis=-1, keepdims=True)
    p = jnp.exp(s - m)
    inv = pl.reciprocal(jnp.sum(p, axis=-1, keepdims=True), approx=True)
    p = (p * inv).astype(jnp.bfloat16)
    o_ref[...] = jnp.einsum('hqk,hkd->hqd', p, v,
                            preferred_element_type=jnp.float32)


def pallas_attention(q, k, v, bias=None):
    # q/k/v: (B, H, Sq/Sk, Dh) fp32; bias: (1, H, Sq, Sk) fp32 or None (cross-attn).
    B, H, Sq, Dh = q.shape
    Sk = k.shape[2]
    tq = _tile(Sq, _TQ)
    q = q.astype(jnp.bfloat16)
    k = k.astype(jnp.bfloat16)
    v = v.astype(jnp.bfloat16)

    q_spec = pl.BlockSpec((pl.Squeezed(), H, tq, Dh), lambda b, qi: (b, 0, qi, 0))
    kv_spec = pl.BlockSpec((pl.Squeezed(), H, Sk, Dh), lambda b, qi: (b, 0, 0, 0))
    out_spec = pl.BlockSpec((pl.Squeezed(), H, tq, Dh), lambda b, qi: (b, 0, qi, 0))
    cparams = pltpu.CompilerParams(
        dimension_semantics=("parallel", "parallel"),
        vmem_limit_bytes=_VMEM_LIMIT)
    grid = (B, Sq // tq)

    if bias is None:
        return pl.pallas_call(
            _attn_nobias_kernel,
            out_shape=jax.ShapeDtypeStruct((B, H, Sq, Dh), jnp.float32),
            grid=grid,
            in_specs=[q_spec, kv_spec, kv_spec],
            out_specs=out_spec,
            compiler_params=cparams,
        )(q, k, v)

    bias = bias.astype(jnp.float32)  # (1, H, Sq, Sk) — shared, never broadcast to B
    bias_spec = pl.BlockSpec((pl.Squeezed(), H, tq, Sk), lambda b, qi: (0, 0, qi, 0))
    return pl.pallas_call(
        _attn_bias_kernel,
        out_shape=jax.ShapeDtypeStruct((B, H, Sq, Dh), jnp.float32),
        grid=grid,
        in_specs=[q_spec, kv_spec, kv_spec, bias_spec],
        out_specs=out_spec,
        compiler_params=cparams,
    )(q, k, v, bias)


# ------------------------------- JAX glue -----------------------------------
# TODO(synk): embedding gather, head split/merge transposes and the
# relative-position-bucket math stay in plain JAX (no clean Pallas win at this size).

def _relative_position_bucket(rel_pos, bidirectional, num_buckets, max_distance):
    rel_buckets = jnp.zeros_like(rel_pos)
    if bidirectional:
        num_buckets //= 2
        rel_buckets += (rel_pos > 0).astype(jnp.int32) * num_buckets
        rel_pos = jnp.abs(rel_pos)
    else:
        rel_pos = -jnp.minimum(rel_pos, 0)
    max_exact = num_buckets // 2
    is_small = rel_pos < max_exact
    rel_f = jnp.maximum(rel_pos, 1).astype(jnp.float32)
    rel_if_large = max_exact + (
        jnp.log(rel_f / max_exact) / math.log(max_distance / max_exact)
        * (num_buckets - max_exact)
    ).astype(jnp.int32)
    rel_if_large = jnp.minimum(rel_if_large, num_buckets - 1)
    rel_buckets = rel_buckets + jnp.where(is_small, rel_pos, rel_if_large)
    return rel_buckets


def compute_position_bias(rel_emb, q_len, k_len, bidirectional, num_buckets, max_distance):
    ctx = jnp.arange(q_len, dtype=jnp.int32)[:, None]
    mem = jnp.arange(k_len, dtype=jnp.int32)[None, :]
    rel_pos = mem - ctx
    buckets = _relative_position_bucket(rel_pos, bidirectional, num_buckets, max_distance)
    values = rel_emb[buckets]                       # (q, k, H)
    return jnp.transpose(values, (2, 0, 1))[None]   # (1, H, q, k)


def t5_self_attention(hidden, p, ln_w, bias, H, Dh):
    # Pre-norm fused into the QKV matmul; residual fused into the O projection.
    B, S, D = hidden.shape
    inner = H * Dh
    x2d = hidden.reshape(B * S, D)
    qkv = rms_matmul(x2d, ln_w, p["qkv"])                           # (B*S, 3*inner)
    qkv = qkv.reshape(B, S, 3, H, Dh).transpose(2, 0, 3, 1, 4)      # (3, B, H, S, Dh)
    q, k, v = qkv[0], qkv[1], qkv[2]
    ctx = pallas_attention(q, k, v, bias)                           # (B, H, S, Dh)
    ctx2d = ctx.transpose(0, 2, 1, 3).reshape(B * S, inner)
    out = matmul_add(ctx2d, p["o"], x2d).reshape(B, S, D)           # residual fused
    return out, (k, v)


def t5_cross_attention(hidden, enc_hidden, p, ln_w, H, Dh):
    B, S, D = hidden.shape
    Senc = enc_hidden.shape[1]
    inner = H * Dh
    x2d = hidden.reshape(B * S, D)
    q = rms_matmul(x2d, ln_w, p["q"]).reshape(B, S, H, Dh).transpose(0, 2, 1, 3)
    kv = matmul(enc_hidden.reshape(B * Senc, D), p["kv"])           # (B*Senc, 2*inner)
    kv = kv.reshape(B, Senc, 2, H, Dh).transpose(2, 0, 3, 1, 4)     # (2, B, H, Senc, Dh)
    k, v = kv[0], kv[1]
    ctx = pallas_attention(q, k, v, None)                           # no cross position bias
    ctx2d = ctx.transpose(0, 2, 1, 3).reshape(B * S, inner)
    out = matmul_add(ctx2d, p["o"], x2d).reshape(B, S, D)
    return out, (k, v)


def run_encoder(params, input_ids, cfg):
    enc = params["encoder"]
    H, Dh = cfg["num_heads"], cfg["d_kv"]
    hidden = params["shared"][input_ids]
    B, S, D = hidden.shape
    bias = compute_position_bias(enc["rel_bias"], S, S, True,
                                 cfg["num_buckets"], cfg["max_distance"])
    for layer in enc["layers"]:
        hidden, _ = t5_self_attention(hidden, layer["self_attn"], layer["ln_self"],
                                      bias, H, Dh)
        hidden = ffn_block(hidden.reshape(B * S, D), layer["ln_ff"],
                           layer["wi"], layer["wo"]).reshape(B, S, D)
    return rmsnorm2d(hidden.reshape(B * S, D), enc["final_ln"]).reshape(B, S, D)


def run_decoder(params, dec_input_ids, enc_hidden, cfg):
    dec = params["decoder"]
    H, Dh = cfg["num_heads"], cfg["d_kv"]
    hidden = params["shared"][dec_input_ids]
    B, S, D = hidden.shape

    rel = compute_position_bias(dec["rel_bias"], S, S, False,
                                cfg["num_buckets"], cfg["max_distance"])
    i = jnp.arange(S)[:, None]
    j = jnp.arange(S)[None, :]
    causal = jnp.where(j <= i, 0.0, -1e9).astype(jnp.float32)[None, None]
    self_bias = rel + causal                      # (1, H, S, S)

    all_hidden = []
    past_kv = []
    for layer in dec["layers"]:
        all_hidden.append(hidden)
        hidden, (sk, sv) = t5_self_attention(hidden, layer["self_attn"],
                                             layer["ln_self"], self_bias, H, Dh)
        hidden, (ck, cv) = t5_cross_attention(hidden, enc_hidden, layer["cross_attn"],
                                              layer["ln_cross"], H, Dh)
        hidden = ffn_block(hidden.reshape(B * S, D), layer["ln_ff"],
                           layer["wi"], layer["wo"]).reshape(B, S, D)
        past_kv.append((sk, sv, ck, cv))
    hidden = rmsnorm2d(hidden.reshape(B * S, D), dec["final_ln"]).reshape(B, S, D)
    all_hidden.append(hidden)
    return hidden, tuple(past_kv), tuple(all_hidden)


def wrap_t5_forward(params, input_ids, cfg):
    # T5Model(input_ids, decoder_input_ids=input_ids)[:3]
    enc_hidden = run_encoder(params, input_ids, cfg)
    last_hidden, past_kv, dec_hidden = run_decoder(params, input_ids, enc_hidden, cfg)
    return last_hidden, past_kv, dec_hidden


# ------------------------- deterministic parameters --------------------------

def init_t5_params(key, cfg):
    D, H, Dh, F = cfg["d_model"], cfg["num_heads"], cfg["d_kv"], cfg["d_ff"]
    inner = H * Dh
    keys = iter(jax.random.split(key, 256))

    def nrm(shape, dtype=jnp.bfloat16, scale=0.02):
        w = scale * jax.random.normal(next(keys), shape, dtype=jnp.float32)
        return w.astype(dtype)

    def self_attn():
        # q/k/v concatenated so the projection is a single fused matmul.
        return {"qkv": nrm((D, 3 * inner)), "o": nrm((inner, D))}

    def cross_attn():
        return {"q": nrm((D, inner)), "kv": nrm((D, 2 * inner)), "o": nrm((inner, D))}

    def stack(is_decoder):
        layers = []
        for _ in range(cfg["num_layers"]):
            layer = {"ln_self": jnp.ones((1, D), jnp.float32),
                     "self_attn": self_attn(),
                     "ln_ff": jnp.ones((1, D), jnp.float32),
                     "wi": nrm((D, F)), "wo": nrm((F, D))}
            if is_decoder:
                layer["ln_cross"] = jnp.ones((1, D), jnp.float32)
                layer["cross_attn"] = cross_attn()
            layers.append(layer)
        return {"layers": layers,
                "rel_bias": nrm((cfg["num_buckets"], H), jnp.float32),
                "final_ln": jnp.ones((1, D), jnp.float32)}

    return {"shared": nrm((cfg["vocab"], D), jnp.float32),
            "encoder": stack(False),
            "decoder": stack(True)}


# ----------------------------------- main ------------------------------------

if __name__ == "__main__":
    cfg = dict(vocab=64, d_model=32, num_heads=4, d_kv=8, d_ff=64,
               num_layers=2, num_buckets=32, max_distance=128)
    B, S = 2, 8

    key = jax.random.PRNGKey(0)
    pkey, ikey = jax.random.split(key)
    params = init_t5_params(pkey, cfg)
    input_ids = jax.random.randint(ikey, (B, S), 0, cfg["vocab"], dtype=jnp.int32)

    fwd = jax.jit(lambda p, ids: wrap_t5_forward(p, ids, cfg))
    out = fwd(params, input_ids)
    jax.block_until_ready(out)

    last_hidden, past_kv, dec_hidden = out
    assert last_hidden.shape == (B, S, cfg["d_model"])
    assert len(past_kv) == cfg["num_layers"] and len(past_kv[0]) == 4
    assert len(dec_hidden) == cfg["num_layers"] + 1
    print("KERNEL_OK")
</pallas_src>

<mosaic_0001>
module attributes {stable_mosaic.version = 11 : i64} {
  func.func @_rms_matmul_kernel(%arg0: i32, %arg1: i32, %arg2: memref<16x32xf32, #tpu.memory_space<vmem>>, %arg3: memref<1x32xf32, #tpu.memory_space<vmem>>, %arg4: memref<32x96xbf16, #tpu.memory_space<vmem>>, %arg5: memref<16x96xf32, #tpu.memory_space<vmem>>) attributes {dimension_semantics = [#tpu.dimension_semantics<parallel>, #tpu.dimension_semantics<parallel>], iteration_bounds = array<i64: 1, 1>, scalar_prefetch = 0 : i64, scratch_operands = 0 : i64, tpu.core_type = #tpu.core_type<tc>, window_params = [{transform_indices = @transform_0, window_bounds = array<i64: 16, 32>}, {pipeline_mode = #tpu.pipeline_mode<synchronous>, transform_indices = @transform_1, window_bounds = array<i64: 1, 32>}, {transform_indices = @transform_2, window_bounds = array<i64: 32, 96>}, {transform_indices = @transform_3, window_bounds = array<i64: 16, 96>}]} {
    %c0 = arith.constant 0 : index
    %c0_0 = arith.constant 0 : index
    %0 = vector.load %arg2[%c0, %c0_0] : memref<16x32xf32, #tpu.memory_space<vmem>>, vector<16x32xf32>
    %1 = arith.mulf %0, %0 : vector<16x32xf32>
    %cst = arith.constant dense<0.000000e+00> : vector<16xf32>
    %2 = vector.multi_reduction <add>, %1, %cst [1] : vector<16x32xf32> to vector<16xf32>
    %3 = vector.shape_cast %2 : vector<16xf32> to vector<16x1xf32>
    %cst_1 = arith.constant 3.200000e+01 : f32
    %4 = vector.broadcast %cst_1 : f32 to vector<16x1xf32>
    %5 = arith.divf %3, %4 : vector<16x1xf32>
    %cst_2 = arith.constant 9.99999997E-7 : f32
    %6 = vector.broadcast %cst_2 : f32 to vector<16x1xf32>
    %7 = arith.addf %5, %6 : vector<16x1xf32>
    %8 = math.rsqrt %7 : vector<16x1xf32>
    %9 = vector.broadcast %8 : vector<16x1xf32> to vector<16x32xf32>
    %10 = arith.mulf %0, %9 : vector<16x32xf32>
    %c0_3 = arith.constant 0 : index
    %c0_4 = arith.constant 0 : index
    %11 = vector.load %arg3[%c0_3, %c0_4] : memref<1x32xf32, #tpu.memory_space<vmem>>, vector<1x32xf32>
    %12 = vector.broadcast %11 : vector<1x32xf32> to vector<16x32xf32>
    %13 = arith.mulf %10, %12 : vector<16x32xf32>
    %14 = arith.truncf %13 : vector<16x32xf32> to vector<16x32xbf16>
    %c0_5 = arith.constant 0 : index
    %c0_6 = arith.constant 0 : index
    %15 = vector.load %arg4[%c0_5, %c0_6] : memref<32x96xbf16, #tpu.memory_space<vmem>>, vector<32x96xbf16>
    %cst_7 = arith.constant dense<0.000000e+00> : vector<16x96xf32>
    %16 = tpu.matmul %14, %15, %cst_7 {dimension_numbers = #tpu.dot_dimension_numbers<[1], [0], [0], [1], [0, 0, 1, 1], [], []>} : vector<16x32xbf16>, vector<32x96xbf16>, vector<16x96xf32> -> vector<16x96xf32>
    %c0_8 = arith.constant 0 : index
    %c0_9 = arith.constant 0 : index
    %17 = vector.load %arg5[%c0_8, %c0_9] : memref<16x96xf32, #tpu.memory_space<vmem>>, vector<16x96xf32>
    tpu.vector_store %arg5[%c0_8, %c0_9], %16 {strides = array<i32>} : memref<16x96xf32, #tpu.memory_space<vmem>>, vector<16x96xf32>,
    return
  }
  func.func @transform_0(%arg0: i32, %arg1: i32) -> (i32, i32) {
    %c0_i32 = arith.constant 0 : i32
    %c0_i32_0 = arith.constant 0 : i32
    return %arg0, %c0_i32 : i32, i32
  }
  func.func @transform_1(%arg0: i32, %arg1: i32) -> (i32, i32) {
    %c0_i32 = arith.constant 0 : i32
    %c0_i32_0 = arith.constant 0 : i32
    %c0_i32_1 = arith.constant 0 : i32
    return %c0_i32, %c0_i32_0 : i32, i32
  }
  func.func @transform_2(%arg0: i32, %arg1: i32) -> (i32, i32) {
    %c0_i32 = arith.constant 0 : i32
    %c0_i32_0 = arith.constant 0 : i32
    return %c0_i32, %arg1 : i32, i32
  }
  func.func @transform_3(%arg0: i32, %arg1: i32) -> (i32, i32) {
    %c0_i32 = arith.constant 0 : i32
    return %arg0, %arg1 : i32, i32
  }
}

module attributes {stable_mosaic.version = 11 : i64} {
  func.func @_attn_bias_kernel(%arg0: i32, %arg1: i32, %arg2: memref<1x4x8x8xbf16, #tpu.memory_space<vmem>>, %arg3: memref<1x4x8x8xbf16, #tpu.memory_space<vmem>>, %arg4: memref<1x4x8x8xbf16, #tpu.memory_space<vmem>>, %arg5: memref<1x4x8x8xf32, #tpu.memory_space<vmem>>, %arg6: memref<1x4x8x8xf32, #tpu.memory_space<vmem>>) attributes {dimension_semantics = [#tpu.dimension_semantics<parallel>, #tpu.dimension_semantics<parallel>], iteration_bounds = array<i64: 2, 1>, scalar_prefetch = 0 : i64, scratch_operands = 0 : i64, tpu.core_type = #tpu.core_type<tc>, window_params = [{transform_indices = @transform_0, window_bounds = array<i64: 1, 4, 8, 8>}, {transform_indices = @transform_1, window_bounds = array<i64: 1, 4, 8, 8>}, {transform_indices = @transform_2, window_bounds = array<i64: 1, 4, 8, 8>}, {transform_indices = @transform_3, window_bounds = array<i64: 1, 4, 8, 8>}, {transform_indices = @transform_4, window_bounds = array<i64: 1, 4, 8, 8>}]} {
    %c0 = arith.constant 0 : index
    %c0_0 = arith.constant 0 : index
    %c0_1 = arith.constant 0 : index
    %c0_2 = arith.constant 0 : index
    %0 = vector.load %arg2[%c0, %c0_0, %c0_1, %c0_2] : memref<1x4x8x8xbf16, #tpu.memory_space<vmem>>, vector<1x4x8x8xbf16>
    %1 = vector.shape_cast %0 : vector<1x4x8x8xbf16> to vector<4x8x8xbf16>
    %c0_3 = arith.constant 0 : index
    %c0_4 = arith.constant 0 : index
    %c0_5 = arith.constant 0 : index
    %c0_6 = arith.constant 0 : index
    %2 = vector.load %arg3[%c0_3, %c0_4, %c0_5, %c0_6] : memref<1x4x8x8xbf16, #tpu.memory_space<vmem>>, vector<1x4x8x8xbf16>
    %3 = vector.shape_cast %2 : vector<1x4x8x8xbf16> to vector<4x8x8xbf16>
    %c0_7 = arith.constant 0 : index
    %c0_8 = arith.constant 0 : index
    %c0_9 = arith.constant 0 : index
    %c0_10 = arith.constant 0 : index
    %4 = vector.load %arg4[%c0_7, %c0_8, %c0_9, %c0_10] : memref<1x4x8x8xbf16, #tpu.memory_space<vmem>>, vector<1x4x8x8xbf16>
    %5 = vector.shape_cast %4 : vector<1x4x8x8xbf16> to vector<4x8x8xbf16>
    "tpu.trace_start"() <{level = 10 : i32, message = "hqd,hkd->hqk"}> : () -> ()
    %cst = arith.constant dense<0.000000e+00> : vector<4x8x8xf32>
    %6 = tpu.matmul %1, %3, %cst {dimension_numbers = #tpu.dot_dimension_numbers<[2], [2], [1], [1], [0, 0, 0, 1, 1, 1], [0], [0]>} : vector<4x8x8xbf16>, vector<4x8x8xbf16>, vector<4x8x8xf32> -> vector<4x8x8xf32>
    "tpu.trace_stop"() : () -> ()
    %c0_11 = arith.constant 0 : index
    %c0_12 = arith.constant 0 : index
    %c0_13 = arith.constant 0 : index
    %c0_14 = arith.constant 0 : index
    %7 = vector.load %arg5[%c0_11, %c0_12, %c0_13, %c0_14] : memref<1x4x8x8xf32, #tpu.memory_space<vmem>>, vector<1x4x8x8xf32>
    %8 = vector.shape_cast %7 : vector<1x4x8x8xf32> to vector<4x8x8xf32>
    %9 = arith.addf %6, %8 : vector<4x8x8xf32>
    %cst_15 = arith.constant dense<0xFF800000> : vector<4x8xf32>
    %10 = vector.multi_reduction <maximumf>, %9, %cst_15 [2] : vector<4x8x8xf32> to vector<4x8xf32>
    %11 = vector.shape_cast %10 : vector<4x8xf32> to vector<4x8x1xf32>
    %12 = vector.broadcast %11 : vector<4x8x1xf32> to vector<4x8x8xf32>
    %13 = arith.subf %9, %12 : vector<4x8x8xf32>
    %14 = math.exp %13 : vector<4x8x8xf32>
    %cst_16 = arith.constant dense<0.000000e+00> : vector<4x8xf32>
    %15 = vector.multi_reduction <add>, %14, %cst_16 [2] : vector<4x8x8xf32> to vector<4x8xf32>
    %16 = vector.shape_cast %15 : vector<4x8xf32> to vector<4x8x1xf32>
    %17 = tpu.reciprocal %16 {approx = true} : vector<4x8x1xf32> -> vector<4x8x1xf32>
    %18 = vector.broadcast %17 : vector<4x8x1xf32> to vector<4x8x8xf32>
    %19 = arith.mulf %14, %18 : vector<4x8x8xf32>
    %20 = arith.truncf %19 : vector<4x8x8xf32> to vector<4x8x8xbf16>
    "tpu.trace_start"() <{level = 10 : i32, message = "hqk,hkd->hqd"}> : () -> ()
    %cst_17 = arith.constant dense<0.000000e+00> : vector<4x8x8xf32>
    %21 = tpu.matmul %20, %5, %cst_17 {dimension_numbers = #tpu.dot_dimension_numbers<[2], [1], [1], [2], [0, 0, 0, 1, 1, 2], [0], [0]>} : vector<4x8x8xbf16>, vector<4x8x8xbf16>, vector<4x8x8xf32> -> vector<4x8x8xf32>
    "tpu.trace_stop"() : () -> ()
    %c0_18 = arith.constant 0 : index
    %c0_19 = arith.constant 0 : index
    %c0_20 = arith.constant 0 : index
    %c0_21 = arith.constant 0 : index
    %22 = vector.load %arg6[%c0_18, %c0_19, %c0_20, %c0_21] : memref<1x4x8x8xf32, #tpu.memory_space<vmem>>, vector<1x4x8x8xf32>
    %23 = vector.shape_cast %22 : vector<1x4x8x8xf32> to vector<4x8x8xf32>
    %24 = vector.shape_cast %21 : vector<4x8x8xf32> to vector<1x4x8x8xf32>
    tpu.vector_store %arg6[%c0_18, %c0_19, %c0_20, %c0_21], %24 {strides = array<i32>} : memref<1x4x8x8xf32, #tpu.memory_space<vmem>>, vector<1x4x8x8xf32>,
    return
  }
  func.func @transform_0(%arg0: i32, %arg1: i32) -> (i32, i32, i32, i32) {
    %c0_i32 = arith.constant 0 : i32
    %c0_i32_0 = arith.constant 0 : i32
    %c0_i32_1 = arith.constant 0 : i32
    return %arg0, %c0_i32, %arg1, %c0_i32_0 : i32, i32, i32, i32
  }
  func.func @transform_1(%arg0: i32, %arg1: i32) -> (i32, i32, i32, i32) {
    %c0_i32 = arith.constant 0 : i32
    %c0_i32_0 = arith.constant 0 : i32
    %c0_i32_1 = arith.constant 0 : i32
    %c0_i32_2 = arith.constant 0 : i32
    return %arg0, %c0_i32, %c0_i32_0, %c0_i32_1 : i32, i32, i32, i32
  }
  func.func @transform_2(%arg0: i32, %arg1: i32) -> (i32, i32, i32, i32) {
    %c0_i32 = arith.constant 0 : i32
    %c0_i32_0 = arith.constant 0 : i32
    %c0_i32_1 = arith.constant 0 : i32
    %c0_i32_2 = arith.constant 0 : i32
    return %arg0, %c0_i32, %c0_i32_0, %c0_i32_1 : i32, i32, i32, i32
  }
  func.func @transform_3(%arg0: i32, %arg1: i32) -> (i32, i32, i32, i32) {
    %c0_i32 = arith.constant 0 : i32
    %c0_i32_0 = arith.constant 0 : i32
    %c0_i32_1 = arith.constant 0 : i32
    %c0_i32_2 = arith.constant 0 : i32
    return %c0_i32, %c0_i32_0, %arg1, %c0_i32_1 : i32, i32, i32, i32
  }
  func.func @transform_4(%arg0: i32, %arg1: i32) -> (i32, i32, i32, i32) {
    %c0_i32 = arith.constant 0 : i32
    %c0_i32_0 = arith.constant 0 : i32
    %c0_i32_1 = arith.constant 0 : i32
    return %arg0, %c0_i32, %arg1, %c0_i32_0 : i32, i32, i32, i32
  }
}

module attributes {stable_mosaic.version = 11 : i64} {
  func.func @_matmul_residual_kernel(%arg0: i32, %arg1: i32, %arg2: memref<16x32xf32, #tpu.memory_space<vmem>>, %arg3: memref<32x32xbf16, #tpu.memory_space<vmem>>, %arg4: memref<16x32xf32, #tpu.memory_space<vmem>>, %arg5: memref<16x32xf32, #tpu.memory_space<vmem>>) attributes {dimension_semantics = [#tpu.dimension_semantics<parallel>, #tpu.dimension_semantics<parallel>], iteration_bounds = array<i64: 1, 1>, scalar_prefetch = 0 : i64, scratch_operands = 0 : i64, tpu.core_type = #tpu.core_type<tc>, window_params = [{transform_indices = @transform_0, window_bounds = array<i64: 16, 32>}, {transform_indices = @transform_1, window_bounds = array<i64: 32, 32>}, {transform_indices = @transform_2, window_bounds = array<i64: 16, 32>}, {transform_indices = @transform_3, window_bounds = array<i64: 16, 32>}]} {
    %c0 = arith.constant 0 : index
    %c0_0 = arith.constant 0 : index
    %0 = vector.load %arg4[%c0, %c0_0] : memref<16x32xf32, #tpu.memory_space<vmem>>, vector<16x32xf32>
    %c0_1 = arith.constant 0 : index
    %c0_2 = arith.constant 0 : index
    %1 = vector.load %arg2[%c0_1, %c0_2] : memref<16x32xf32, #tpu.memory_space<vmem>>, vector<16x32xf32>
    %2 = arith.truncf %1 : vector<16x32xf32> to vector<16x32xbf16>
    %c0_3 = arith.constant 0 : index
    %c0_4 = arith.constant 0 : index
    %3 = vector.load %arg3[%c0_3, %c0_4] : memref<32x32xbf16, #tpu.memory_space<vmem>>, vector<32x32xbf16>
    %cst = arith.constant dense<0.000000e+00> : vector<16x32xf32>
    %4 = tpu.matmul %2, %3, %cst {dimension_numbers = #tpu.dot_dimension_numbers<[1], [0], [0], [1], [0, 0, 1, 1], [], []>} : vector<16x32xbf16>, vector<32x32xbf16>, vector<16x32xf32> -> vector<16x32xf32>
    %5 = arith.addf %0, %4 : vector<16x32xf32>
    %c0_5 = arith.constant 0 : index
    %c0_6 = arith.constant 0 : index
    %6 = vector.load %arg5[%c0_5, %c0_6] : memref<16x32xf32, #tpu.memory_space<vmem>>, vector<16x32xf32>
    tpu.vector_store %arg5[%c0_5, %c0_6], %5 {strides = array<i32>} : memref<16x32xf32, #tpu.memory_space<vmem>>, vector<16x32xf32>,
    return
  }
  func.func @transform_0(%arg0: i32, %arg1: i32) -> (i32, i32) {
    %c0_i32 = arith.constant 0 : i32
    %c0_i32_0 = arith.constant 0 : i32
    return %arg0, %c0_i32 : i32, i32
  }
  func.func @transform_1(%arg0: i32, %arg1: i32) -> (i32, i32) {
    %c0_i32 = arith.constant 0 : i32
    %c0_i32_0 = arith.constant 0 : i32
    return %c0_i32, %arg1 : i32, i32
  }
  func.func @transform_2(%arg0: i32, %arg1: i32) -> (i32, i32) {
    %c0_i32 = arith.constant 0 : i32
    return %arg0, %arg1 : i32, i32
  }
  func.func @transform_3(%arg0: i32, %arg1: i32) -> (i32, i32) {
    %c0_i32 = arith.constant 0 : i32
    return %arg0, %arg1 : i32, i32
  }
}

module attributes {stable_mosaic.version = 11 : i64} {
  func.func @_ffn_kernel(%arg0: i32, %arg1: i32, %arg2: memref<16x32xf32, #tpu.memory_space<vmem>>, %arg3: memref<1x32xf32, #tpu.memory_space<vmem>>, %arg4: memref<32x64xbf16, #tpu.memory_space<vmem>>, %arg5: memref<64x32xbf16, #tpu.memory_space<vmem>>, %arg6: memref<16x32xf32, #tpu.memory_space<vmem>>, %arg7: memref<16x32xbf16, #tpu.memory_space<vmem>>) attributes {dimension_semantics = [#tpu.dimension_semantics<parallel>, #tpu.dimension_semantics<arbitrary>], iteration_bounds = array<i64: 1, 1>, scalar_prefetch = 0 : i64, scratch_operands = 1 : i64, tpu.core_type = #tpu.core_type<tc>, window_params = [{transform_indices = @transform_0, window_bounds = array<i64: 16, 32>}, {pipeline_mode = #tpu.pipeline_mode<synchronous>, transform_indices = @transform_1, window_bounds = array<i64: 1, 32>}, {transform_indices = @transform_2, window_bounds = array<i64: 32, 64>}, {transform_indices = @transform_3, window_bounds = array<i64: 64, 32>}, {transform_indices = @transform_4, window_bounds = array<i64: 16, 32>}]} {
    %c0_i32 = arith.constant 0 : i32
    %0 = arith.cmpi eq, %arg1, %c0_i32 : i32
    %1 = arith.extui %0 : i1 to i32
    %c0_i32_0 = arith.constant 0 : i32
    %2 = arith.cmpi ne, %1, %c0_i32_0 : i32
    scf.if %2 {
      %c0_12 = arith.constant 0 : index
      %c0_13 = arith.constant 0 : index
      %14 = vector.load %arg2[%c0_12, %c0_13] : memref<16x32xf32, #tpu.memory_space<vmem>>, vector<16x32xf32>
      %15 = arith.mulf %14, %14 : vector<16x32xf32>
      %cst_14 = arith.constant dense<0.000000e+00> : vector<16xf32>
      %16 = vector.multi_reduction <add>, %15, %cst_14 [1] : vector<16x32xf32> to vector<16xf32>
      %17 = vector.shape_cast %16 : vector<16xf32> to vector<16x1xf32>
      %cst_15 = arith.constant 3.200000e+01 : f32
      %18 = vector.broadcast %cst_15 : f32 to vector<16x1xf32>
      %19 = arith.divf %17, %18 : vector<16x1xf32>
      %cst_16 = arith.constant 9.99999997E-7 : f32
      %20 = vector.broadcast %cst_16 : f32 to vector<16x1xf32>
      %21 = arith.addf %19, %20 : vector<16x1xf32>
      %22 = math.rsqrt %21 : vector<16x1xf32>
      %23 = vector.broadcast %22 : vector<16x1xf32> to vector<16x32xf32>
      %24 = arith.mulf %14, %23 : vector<16x32xf32>
      %c0_17 = arith.constant 0 : index
      %c0_18 = arith.constant 0 : index
      %25 = vector.load %arg3[%c0_17, %c0_18] : memref<1x32xf32, #tpu.memory_space<vmem>>, vector<1x32xf32>
      %26 = vector.broadcast %25 : vector<1x32xf32> to vector<16x32xf32>
      %27 = arith.mulf %24, %26 : vector<16x32xf32>
      %28 = arith.truncf %27 : vector<16x32xf32> to vector<16x32xbf16>
      %c0_19 = arith.constant 0 : index
      %c0_20 = arith.constant 0 : index
      %29 = vector.load %arg7[%c0_19, %c0_20] : memref<16x32xbf16, #tpu.memory_space<vmem>>, vector<16x32xbf16>
      tpu.vector_store %arg7[%c0_19, %c0_20], %28 {strides = array<i32>} : memref<16x32xbf16, #tpu.memory_space<vmem>>, vector<16x32xbf16>,
      %c0_21 = arith.constant 0 : index
      %c0_22 = arith.constant 0 : index
      %30 = vector.load %arg6[%c0_21, %c0_22] : memref<16x32xf32, #tpu.memory_space<vmem>>, vector<16x32xf32>
      tpu.vector_store %arg6[%c0_21, %c0_22], %14 {strides = array<i32>} : memref<16x32xf32, #tpu.memory_space<vmem>>, vector<16x32xf32>,
    } else {
    }
    %c0 = arith.constant 0 : index
    %c0_1 = arith.constant 0 : index
    %3 = vector.load %arg7[%c0, %c0_1] : memref<16x32xbf16, #tpu.memory_space<vmem>>, vector<16x32xbf16>
    %c0_2 = arith.constant 0 : index
    %c0_3 = arith.constant 0 : index
    %4 = vector.load %arg4[%c0_2, %c0_3] : memref<32x64xbf16, #tpu.memory_space<vmem>>, vector<32x64xbf16>
    %cst = arith.constant dense<0.000000e+00> : vector<16x64xf32>
    %5 = tpu.matmul %3, %4, %cst {dimension_numbers = #tpu.dot_dimension_numbers<[1], [0], [0], [1], [0, 0, 1, 1], [], []>} : vector<16x32xbf16>, vector<32x64xbf16>, vector<16x64xf32> -> vector<16x64xf32>
    %cst_4 = arith.constant 0.000000e+00 : f32
    %6 = vector.broadcast %cst_4 : f32 to vector<16x64xf32>
    %7 = arith.maximumf %5, %6 : vector<16x64xf32>
    %c0_5 = arith.constant 0 : index
    %c0_6 = arith.constant 0 : index
    %8 = vector.load %arg6[%c0_5, %c0_6] : memref<16x32xf32, #tpu.memory_space<vmem>>, vector<16x32xf32>
    %9 = arith.truncf %7 : vector<16x64xf32> to vector<16x64xbf16>
    %c0_7 = arith.constant 0 : index
    %c0_8 = arith.constant 0 : index
    %10 = vector.load %arg5[%c0_7, %c0_8] : memref<64x32xbf16, #tpu.memory_space<vmem>>, vector<64x32xbf16>
    %cst_9 = arith.constant dense<0.000000e+00> : vector<16x32xf32>
    %11 = tpu.matmul %9, %10, %cst_9 {dimension_numbers = #tpu.dot_dimension_numbers<[1], [0], [0], [1], [0, 0, 1, 1], [], []>} : vector<16x64xbf16>, vector<64x32xbf16>, vector<16x32xf32> -> vector<16x32xf32>
    %12 = arith.addf %8, %11 : vector<16x32xf32>
    %c0_10 = arith.constant 0 : index
    %c0_11 = arith.constant 0 : index
    %13 = vector.load %arg6[%c0_10, %c0_11] : memref<16x32xf32, #tpu.memory_space<vmem>>, vector<16x32xf32>
    tpu.vector_store %arg6[%c0_10, %c0_11], %12 {strides = array<i32>} : memref<16x32xf32, #tpu.memory_space<vmem>>, vector<16x32xf32>,
    return
  }
  func.func @transform_0(%arg0: i32, %arg1: i32) -> (i32, i32) {
    %c0_i32 = arith.constant 0 : i32
    %c0_i32_0 = arith.constant 0 : i32
    return %arg0, %c0_i32 : i32, i32
  }
  func.func @transform_1(%arg0: i32, %arg1: i32) -> (i32, i32) {
    %c0_i32 = arith.constant 0 : i32
    %c0_i32_0 = arith.constant 0 : i32
    %c0_i32_1 = arith.constant 0 : i32
    return %c0_i32, %c0_i32_0 : i32, i32
  }
  func.func @transform_2(%arg0: i32, %arg1: i32) -> (i32, i32) {
    %c0_i32 = arith.constant 0 : i32
    %c0_i32_0 = arith.constant 0 : i32
    return %c0_i32, %arg1 : i32, i32
  }
  func.func @transform_3(%arg0: i32, %arg1: i32) -> (i32, i32) {
    %c0_i32 = arith.constant 0 : i32
    %c0_i32_0 = arith.constant 0 : i32
    return %arg1, %c0_i32 : i32, i32
  }
  func.func @transform_4(%arg0: i32, %arg1: i32) -> (i32, i32) {
    %c0_i32 = arith.constant 0 : i32
    %c0_i32_0 = arith.constant 0 : i32
    return %arg0, %c0_i32 : i32, i32
  }
}

module attributes {stable_mosaic.version = 11 : i64} {
  func.func @_rmsnorm_kernel(%arg0: i32, %arg1: memref<16x32xf32, #tpu.memory_space<vmem>>, %arg2: memref<1x32xf32, #tpu.memory_space<vmem>>, %arg3: memref<16x32xf32, #tpu.memory_space<vmem>>) attributes {dimension_semantics = [#tpu.dimension_semantics<parallel>], iteration_bounds = array<i64: 1>, scalar_prefetch = 0 : i64, scratch_operands = 0 : i64, tpu.core_type = #tpu.core_type<tc>, window_params = [{transform_indices = @transform_0, window_bounds = array<i64: 16, 32>}, {pipeline_mode = #tpu.pipeline_mode<synchronous>, transform_indices = @transform_1, window_bounds = array<i64: 1, 32>}, {transform_indices = @transform_2, window_bounds = array<i64: 16, 32>}]} {
    %c0 = arith.constant 0 : index
    %c0_0 = arith.constant 0 : index
    %0 = vector.load %arg1[%c0, %c0_0] : memref<16x32xf32, #tpu.memory_space<vmem>>, vector<16x32xf32>
    %1 = arith.mulf %0, %0 : vector<16x32xf32>
    %cst = arith.constant dense<0.000000e+00> : vector<16xf32>
    %2 = vector.multi_reduction <add>, %1, %cst [1] : vector<16x32xf32> to vector<16xf32>
    %3 = vector.shape_cast %2 : vector<16xf32> to vector<16x1xf32>
    %cst_1 = arith.constant 3.200000e+01 : f32
    %4 = vector.broadcast %cst_1 : f32 to vector<16x1xf32>
    %5 = arith.divf %3, %4 : vector<16x1xf32>
    %cst_2 = arith.constant 9.99999997E-7 : f32
    %6 = vector.broadcast %cst_2 : f32 to vector<16x1xf32>
    %7 = arith.addf %5, %6 : vector<16x1xf32>
    %8 = math.rsqrt %7 : vector<16x1xf32>
    %9 = vector.broadcast %8 : vector<16x1xf32> to vector<16x32xf32>
    %10 = arith.mulf %0, %9 : vector<16x32xf32>
    %c0_3 = arith.constant 0 : index
    %c0_4 = arith.constant 0 : index
    %11 = vector.load %arg2[%c0_3, %c0_4] : memref<1x32xf32, #tpu.memory_space<vmem>>, vector<1x32xf32>
    %12 = vector.broadcast %11 : vector<1x32xf32> to vector<16x32xf32>
    %13 = arith.mulf %10, %12 : vector<16x32xf32>
    %c0_5 = arith.constant 0 : index
    %c0_6 = arith.constant 0 : index
    %14 = vector.load %arg3[%c0_5, %c0_6] : memref<16x32xf32, #tpu.memory_space<vmem>>, vector<16x32xf32>
    tpu.vector_store %arg3[%c0_5, %c0_6], %13 {strides = array<i32>} : memref<16x32xf32, #tpu.memory_space<vmem>>, vector<16x32xf32>,
    return
  }
  func.func @transform_0(%arg0: i32) -> (i32, i32) {
    %c0_i32 = arith.constant 0 : i32
    %c0_i32_0 = arith.constant 0 : i32
    return %arg0, %c0_i32 : i32, i32
  }
  func.func @transform_1(%arg0: i32) -> (i32, i32) {
    %c0_i32 = arith.constant 0 : i32
    %c0_i32_0 = arith.constant 0 : i32
    %c0_i32_1 = arith.constant 0 : i32
    return %c0_i32, %c0_i32_0 : i32, i32
  }
  func.func @transform_2(%arg0: i32) -> (i32, i32) {
    %c0_i32 = arith.constant 0 : i32
    %c0_i32_0 = arith.constant 0 : i32
    return %arg0, %c0_i32 : i32, i32
  }
}

module attributes {stable_mosaic.version = 11 : i64} {
  func.func @_matmul_kernel(%arg0: i32, %arg1: i32, %arg2: memref<16x32xf32, #tpu.memory_space<vmem>>, %arg3: memref<32x64xbf16, #tpu.memory_space<vmem>>, %arg4: memref<16x64xf32, #tpu.memory_space<vmem>>) attributes {dimension_semantics = [#tpu.dimension_semantics<parallel>, #tpu.dimension_semantics<parallel>], iteration_bounds = array<i64: 1, 1>, scalar_prefetch = 0 : i64, scratch_operands = 0 : i64, tpu.core_type = #tpu.core_type<tc>, window_params = [{transform_indices = @transform_0, window_bounds = array<i64: 16, 32>}, {transform_indices = @transform_1, window_bounds = array<i64: 32, 64>}, {transform_indices = @transform_2, window_bounds = array<i64: 16, 64>}]} {
    %c0 = arith.constant 0 : index
    %c0_0 = arith.constant 0 : index
    %0 = vector.load %arg2[%c0, %c0_0] : memref<16x32xf32, #tpu.memory_space<vmem>>, vector<16x32xf32>
    %1 = arith.truncf %0 : vector<16x32xf32> to vector<16x32xbf16>
    %c0_1 = arith.constant 0 : index
    %c0_2 = arith.constant 0 : index
    %2 = vector.load %arg3[%c0_1, %c0_2] : memref<32x64xbf16, #tpu.memory_space<vmem>>, vector<32x64xbf16>
    %cst = arith.constant dense<0.000000e+00> : vector<16x64xf32>
    %3 = tpu.matmul %1, %2, %cst {dimension_numbers = #tpu.dot_dimension_numbers<[1], [0], [0], [1], [0, 0, 1, 1], [], []>} : vector<16x32xbf16>, vector<32x64xbf16>, vector<16x64xf32> -> vector<16x64xf32>
    %c0_3 = arith.constant 0 : index
    %c0_4 = arith.constant 0 : index
    %4 = vector.load %arg4[%c0_3, %c0_4] : memref<16x64xf32, #tpu.memory_space<vmem>>, vector<16x64xf32>
    tpu.vector_store %arg4[%c0_3, %c0_4], %3 {strides = array<i32>} : memref<16x64xf32, #tpu.memory_space<vmem>>, vector<16x64xf32>,
    return
  }
  func.func @transform_0(%arg0: i32, %arg1: i32) -> (i32, i32) {
    %c0_i32 = arith.constant 0 : i32
    %c0_i32_0 = arith.constant 0 : i32
    return %arg0, %c0_i32 : i32, i32
  }
  func.func @transform_1(%arg0: i32, %arg1: i32) -> (i32, i32) {
    %c0_i32 = arith.constant 0 : i32
    %c0_i32_0 = arith.constant 0 : i32
    return %c0_i32, %arg1 : i32, i32
  }
  func.func @transform_2(%arg0: i32, %arg1: i32) -> (i32, i32) {
    %c0_i32 = arith.constant 0 : i32
    return %arg0, %arg1 : i32, i32
  }
}

module attributes {stable_mosaic.version = 11 : i64} {
  func.func @_attn_nobias_kernel(%arg0: i32, %arg1: i32, %arg2: memref<1x4x8x8xbf16, #tpu.memory_space<vmem>>, %arg3: memref<1x4x8x8xbf16, #tpu.memory_space<vmem>>, %arg4: memref<1x4x8x8xbf16, #tpu.memory_space<vmem>>, %arg5: memref<1x4x8x8xf32, #tpu.memory_space<vmem>>) attributes {dimension_semantics = [#tpu.dimension_semantics<parallel>, #tpu.dimension_semantics<parallel>], iteration_bounds = array<i64: 2, 1>, scalar_prefetch = 0 : i64, scratch_operands = 0 : i64, tpu.core_type = #tpu.core_type<tc>, window_params = [{transform_indices = @transform_0, window_bounds = array<i64: 1, 4, 8, 8>}, {transform_indices = @transform_1, window_bounds = array<i64: 1, 4, 8, 8>}, {transform_indices = @transform_2, window_bounds = array<i64: 1, 4, 8, 8>}, {transform_indices = @transform_3, window_bounds = array<i64: 1, 4, 8, 8>}]} {
    %c0 = arith.constant 0 : index
    %c0_0 = arith.constant 0 : index
    %c0_1 = arith.constant 0 : index
    %c0_2 = arith.constant 0 : index
    %0 = vector.load %arg2[%c0, %c0_0, %c0_1, %c0_2] : memref<1x4x8x8xbf16, #tpu.memory_space<vmem>>, vector<1x4x8x8xbf16>
    %1 = vector.shape_cast %0 : vector<1x4x8x8xbf16> to vector<4x8x8xbf16>
    %c0_3 = arith.constant 0 : index
    %c0_4 = arith.constant 0 : index
    %c0_5 = arith.constant 0 : index
    %c0_6 = arith.constant 0 : index
    %2 = vector.load %arg3[%c0_3, %c0_4, %c0_5, %c0_6] : memref<1x4x8x8xbf16, #tpu.memory_space<vmem>>, vector<1x4x8x8xbf16>
    %3 = vector.shape_cast %2 : vector<1x4x8x8xbf16> to vector<4x8x8xbf16>
    %c0_7 = arith.constant 0 : index
    %c0_8 = arith.constant 0 : index
    %c0_9 = arith.constant 0 : index
    %c0_10 = arith.constant 0 : index
    %4 = vector.load %arg4[%c0_7, %c0_8, %c0_9, %c0_10] : memref<1x4x8x8xbf16, #tpu.memory_space<vmem>>, vector<1x4x8x8xbf16>
    %5 = vector.shape_cast %4 : vector<1x4x8x8xbf16> to vector<4x8x8xbf16>
    "tpu.trace_start"() <{level = 10 : i32, message = "hqd,hkd->hqk"}> : () -> ()
    %cst = arith.constant dense<0.000000e+00> : vector<4x8x8xf32>
    %6 = tpu.matmul %1, %3, %cst {dimension_numbers = #tpu.dot_dimension_numbers<[2], [2], [1], [1], [0, 0, 0, 1, 1, 1], [0], [0]>} : vector<4x8x8xbf16>, vector<4x8x8xbf16>, vector<4x8x8xf32> -> vector<4x8x8xf32>
    "tpu.trace_stop"() : () -> ()
    %cst_11 = arith.constant dense<0xFF800000> : vector<4x8xf32>
    %7 = vector.multi_reduction <maximumf>, %6, %cst_11 [2] : vector<4x8x8xf32> to vector<4x8xf32>
    %8 = vector.shape_cast %7 : vector<4x8xf32> to vector<4x8x1xf32>
    %9 = vector.broadcast %8 : vector<4x8x1xf32> to vector<4x8x8xf32>
    %10 = arith.subf %6, %9 : vector<4x8x8xf32>
    %11 = math.exp %10 : vector<4x8x8xf32>
    %cst_12 = arith.constant dense<0.000000e+00> : vector<4x8xf32>
    %12 = vector.multi_reduction <add>, %11, %cst_12 [2] : vector<4x8x8xf32> to vector<4x8xf32>
    %13 = vector.shape_cast %12 : vector<4x8xf32> to vector<4x8x1xf32>
    %14 = tpu.reciprocal %13 {approx = true} : vector<4x8x1xf32> -> vector<4x8x1xf32>
    %15 = vector.broadcast %14 : vector<4x8x1xf32> to vector<4x8x8xf32>
    %16 = arith.mulf %11, %15 : vector<4x8x8xf32>
    %17 = arith.truncf %16 : vector<4x8x8xf32> to vector<4x8x8xbf16>
    "tpu.trace_start"() <{level = 10 : i32, message = "hqk,hkd->hqd"}> : () -> ()
    %cst_13 = arith.constant dense<0.000000e+00> : vector<4x8x8xf32>
    %18 = tpu.matmul %17, %5, %cst_13 {dimension_numbers = #tpu.dot_dimension_numbers<[2], [1], [1], [2], [0, 0, 0, 1, 1, 2], [0], [0]>} : vector<4x8x8xbf16>, vector<4x8x8xbf16>, vector<4x8x8xf32> -> vector<4x8x8xf32>
    "tpu.trace_stop"() : () -> ()
    %c0_14 = arith.constant 0 : index
    %c0_15 = arith.constant 0 : index
    %c0_16 = arith.constant 0 : index
    %c0_17 = arith.constant 0 : index
    %19 = vector.load %arg5[%c0_14, %c0_15, %c0_16, %c0_17] : memref<1x4x8x8xf32, #tpu.memory_space<vmem>>, vector<1x4x8x8xf32>
    %20 = vector.shape_cast %19 : vector<1x4x8x8xf32> to vector<4x8x8xf32>
    %21 = vector.shape_cast %18 : vector<4x8x8xf32> to vector<1x4x8x8xf32>
    tpu.vector_store %arg5[%c0_14, %c0_15, %c0_16, %c0_17], %21 {strides = array<i32>} : memref<1x4x8x8xf32, #tpu.memory_space<vmem>>, vector<1x4x8x8xf32>,
    return
  }
  func.func @transform_0(%arg0: i32, %arg1: i32) -> (i32, i32, i32, i32) {
    %c0_i32 = arith.constant 0 : i32
    %c0_i32_0 = arith.constant 0 : i32
    %c0_i32_1 = arith.constant 0 : i32
    return %arg0, %c0_i32, %arg1, %c0_i32_0 : i32, i32, i32, i32
  }
  func.func @transform_1(%arg0: i32, %arg1: i32) -> (i32, i32, i32, i32) {
    %c0_i32 = arith.constant 0 : i32
    %c0_i32_0 = arith.constant 0 : i32
    %c0_i32_1 = arith.constant 0 : i32
    %c0_i32_2 = arith.constant 0 : i32
    return %arg0, %c0_i32, %c0_i32_0, %c0_i32_1 : i32, i32, i32, i32
  }
  func.func @transform_2(%arg0: i32, %arg1: i32) -> (i32, i32, i32, i32) {
    %c0_i32 = arith.constant 0 : i32
    %c0_i32_0 = arith.constant 0 : i32
    %c0_i32_1 = arith.constant 0 : i32
    %c0_i32_2 = arith.constant 0 : i32
    return %arg0, %c0_i32, %c0_i32_0, %c0_i32_1 : i32, i32, i32, i32
  }
  func.func @transform_3(%arg0: i32, %arg1: i32) -> (i32, i32, i32, i32) {
    %c0_i32 = arith.constant 0 : i32
    %c0_i32_0 = arith.constant 0 : i32
    %c0_i32_1 = arith.constant 0 : i32
    return %arg0, %c0_i32, %arg1, %c0_i32_0 : i32, i32, i32, i32
  }
}

module attributes {stable_mosaic.version = 11 : i64} {
  func.func @_rms_matmul_kernel(%arg0: i32, %arg1: i32, %arg2: memref<16x32xf32, #tpu.memory_space<vmem>>, %arg3: memref<1x32xf32, #tpu.memory_space<vmem>>, %arg4: memref<32x32xbf16, #tpu.memory_space<vmem>>, %arg5: memref<16x32xf32, #tpu.memory_space<vmem>>) attributes {dimension_semantics = [#tpu.dimension_semantics<parallel>, #tpu.dimension_semantics<parallel>], iteration_bounds = array<i64: 1, 1>, scalar_prefetch = 0 : i64, scratch_operands = 0 : i64, tpu.core_type = #tpu.core_type<tc>, window_params = [{transform_indices = @transform_0, window_bounds = array<i64: 16, 32>}, {pipeline_mode = #tpu.pipeline_mode<synchronous>, transform_indices = @transform_1, window_bounds = array<i64: 1, 32>}, {transform_indices = @transform_2, window_bounds = array<i64: 32, 32>}, {transform_indices = @transform_3, window_bounds = array<i64: 16, 32>}]} {
    %c0 = arith.constant 0 : index
    %c0_0 = arith.constant 0 : index
    %0 = vector.load %arg2[%c0, %c0_0] : memref<16x32xf32, #tpu.memory_space<vmem>>, vector<16x32xf32>
    %1 = arith.mulf %0, %0 : vector<16x32xf32>
    %cst = arith.constant dense<0.000000e+00> : vector<16xf32>
    %2 = vector.multi_reduction <add>, %1, %cst [1] : vector<16x32xf32> to vector<16xf32>
    %3 = vector.shape_cast %2 : vector<16xf32> to vector<16x1xf32>
    %cst_1 = arith.constant 3.200000e+01 : f32
    %4 = vector.broadcast %cst_1 : f32 to vector<16x1xf32>
    %5 = arith.divf %3, %4 : vector<16x1xf32>
    %cst_2 = arith.constant 9.99999997E-7 : f32
    %6 = vector.broadcast %cst_2 : f32 to vector<16x1xf32>
    %7 = arith.addf %5, %6 : vector<16x1xf32>
    %8 = math.rsqrt %7 : vector<16x1xf32>
    %9 = vector.broadcast %8 : vector<16x1xf32> to vector<16x32xf32>
    %10 = arith.mulf %0, %9 : vector<16x32xf32>
    %c0_3 = arith.constant 0 : index
    %c0_4 = arith.constant 0 : index
    %11 = vector.load %arg3[%c0_3, %c0_4] : memref<1x32xf32, #tpu.memory_space<vmem>>, vector<1x32xf32>
    %12 = vector.broadcast %11 : vector<1x32xf32> to vector<16x32xf32>
    %13 = arith.mulf %10, %12 : vector<16x32xf32>
    %14 = arith.truncf %13 : vector<16x32xf32> to vector<16x32xbf16>
    %c0_5 = arith.constant 0 : index
    %c0_6 = arith.constant 0 : index
    %15 = vector.load %arg4[%c0_5, %c0_6] : memref<32x32xbf16, #tpu.memory_space<vmem>>, vector<32x32xbf16>
    %cst_7 = arith.constant dense<0.000000e+00> : vector<16x32xf32>
    %16 = tpu.matmul %14, %15, %cst_7 {dimension_numbers = #tpu.dot_dimension_numbers<[1], [0], [0], [1], [0, 0, 1, 1], [], []>} : vector<16x32xbf16>, vector<32x32xbf16>, vector<16x32xf32> -> vector<16x32xf32>
    %c0_8 = arith.constant 0 : index
    %c0_9 = arith.constant 0 : index
    %17 = vector.load %arg5[%c0_8, %c0_9] : memref<16x32xf32, #tpu.memory_space<vmem>>, vector<16x32xf32>
    tpu.vector_store %arg5[%c0_8, %c0_9], %16 {strides = array<i32>} : memref<16x32xf32, #tpu.memory_space<vmem>>, vector<16x32xf32>,
    return
  }
  func.func @transform_0(%arg0: i32, %arg1: i32) -> (i32, i32) {
    %c0_i32 = arith.constant 0 : i32
    %c0_i32_0 = arith.constant 0 : i32
    return %arg0, %c0_i32 : i32, i32
  }
  func.func @transform_1(%arg0: i32, %arg1: i32) -> (i32, i32) {
    %c0_i32 = arith.constant 0 : i32
    %c0_i32_0 = arith.constant 0 : i32
    %c0_i32_1 = arith.constant 0 : i32
    return %c0_i32, %c0_i32_0 : i32, i32
  }
  func.func @transform_2(%arg0: i32, %arg1: i32) -> (i32, i32) {
    %c0_i32 = arith.constant 0 : i32
    %c0_i32_0 = arith.constant 0 : i32
    return %c0_i32, %arg1 : i32, i32
  }
  func.func @transform_3(%arg0: i32, %arg1: i32) -> (i32, i32) {
    %c0_i32 = arith.constant 0 : i32
    return %arg0, %arg1 : i32, i32
  }
}

module attributes {stable_mosaic.version = 11 : i64} {
  func.func @_rmsnorm_kernel(%arg0: i32, %arg1: memref<16x32xf32, #tpu.memory_space<vmem>>, %arg2: memref<1x32xf32, #tpu.memory_space<vmem>>, %arg3: memref<16x32xf32, #tpu.memory_space<vmem>>) attributes {dimension_semantics = [#tpu.dimension_semantics<parallel>], iteration_bounds = array<i64: 1>, scalar_prefetch = 0 : i64, scratch_operands = 0 : i64, tpu.core_type = #tpu.core_type<tc>, window_params = [{transform_indices = @transform_0, window_bounds = array<i64: 16, 32>}, {pipeline_mode = #tpu.pipeline_mode<synchronous>, transform_indices = @transform_1, window_bounds = array<i64: 1, 32>}, {transform_indices = @transform_2, window_bounds = array<i64: 16, 32>}]} {
    %c0 = arith.constant 0 : index
    %c0_0 = arith.constant 0 : index
    %0 = vector.load %arg1[%c0, %c0_0] : memref<16x32xf32, #tpu.memory_space<vmem>>, vector<16x32xf32>
    %1 = arith.mulf %0, %0 : vector<16x32xf32>
    %cst = arith.constant dense<0.000000e+00> : vector<16xf32>
    %2 = vector.multi_reduction <add>, %1, %cst [1] : vector<16x32xf32> to vector<16xf32>
    %3 = vector.shape_cast %2 : vector<16xf32> to vector<16x1xf32>
    %cst_1 = arith.constant 3.200000e+01 : f32
    %4 = vector.broadcast %cst_1 : f32 to vector<16x1xf32>
    %5 = arith.divf %3, %4 : vector<16x1xf32>
    %cst_2 = arith.constant 9.99999997E-7 : f32
    %6 = vector.broadcast %cst_2 : f32 to vector<16x1xf32>
    %7 = arith.addf %5, %6 : vector<16x1xf32>
    %8 = math.rsqrt %7 : vector<16x1xf32>
    %9 = vector.broadcast %8 : vector<16x1xf32> to vector<16x32xf32>
    %10 = arith.mulf %0, %9 : vector<16x32xf32>
    %c0_3 = arith.constant 0 : index
    %c0_4 = arith.constant 0 : index
    %11 = vector.load %arg2[%c0_3, %c0_4] : memref<1x32xf32, #tpu.memory_space<vmem>>, vector<1x32xf32>
    %12 = vector.broadcast %11 : vector<1x32xf32> to vector<16x32xf32>
    %13 = arith.mulf %10, %12 : vector<16x32xf32>
    %c0_5 = arith.constant 0 : index
    %c0_6 = arith.constant 0 : index
    %14 = vector.load %arg3[%c0_5, %c0_6] : memref<16x32xf32, #tpu.memory_space<vmem>>, vector<16x32xf32>
    tpu.vector_store %arg3[%c0_5, %c0_6], %13 {strides = array<i32>} : memref<16x32xf32, #tpu.memory_space<vmem>>, vector<16x32xf32>,
    return
  }
  func.func @transform_0(%arg0: i32) -> (i32, i32) {
    %c0_i32 = arith.constant 0 : i32
    %c0_i32_0 = arith.constant 0 : i32
    return %arg0, %c0_i32 : i32, i32
  }
  func.func @transform_1(%arg0: i32) -> (i32, i32) {
    %c0_i32 = arith.constant 0 : i32
    %c0_i32_0 = arith.constant 0 : i32
    %c0_i32_1 = arith.constant 0 : i32
    return %c0_i32, %c0_i32_0 : i32, i32
  }
  func.func @transform_2(%arg0: i32) -> (i32, i32) {
    %c0_i32 = arith.constant 0 : i32
    %c0_i32_0 = arith.constant 0 : i32
    return %arg0, %c0_i32 : i32, i32
  }
}

</mosaic_0001>

<bundles_post_ra>
// kernel: _lambda_.26
= control target key start
LH: loop header
LB: loop body
LE: loop exit
PB: predicated region body
PF: predicated region fallthrough
CT: control target
= control target key end

     0   :  { %8 = vsyncpa [#allocation3], 0  ;;  %s385_s0 = inlined_call_operand.hbm [shape: f32[16,32], index: 0, kind: input, shape index: {}]   ;;  %s386_s1 = inlined_call_operand.hbm [shape: f32[1,32], index: 1, kind: input, shape index: {}]   ;;  %s387_s2 = inlined_call_operand.hbm [shape: bf16[32,96], index: 2, kind: input, shape index: {}]   ;;  %s388_s3 = inlined_call_operand.hbm [shape: f32[16,96], index: 3, kind: output, shape index: {}]  }
   0x1   :  { %9 = vsyncpa [#allocation6], 0 }
   0x2   :  { %10 = vsyncpa [#allocation4], 0  ;;  %s291_s12 = smov [#allocation5]   ;;  %s292_s14 = smov [#allocation2]  }
   0x3   :  { %s29_s13 = sshll.u32 %s291_s12, 4  ;;  %s16_s15 = sshll.u32 %s292_s14, 4  ;;  %s30_s13 = int_to_ptr.vmem [resolvable:$true] %s29_s13  ;;  %s321_s15 = int_to_ptr.vmem [resolvable:$true] %s16_s15 }
   0x4   :  { %s197_s18 = scalar_lea.hbm %s386_s1, 16 }
   0x5   :  { %p198_p0 = scmp.ne.s32.totalorder %s386_s1, %s197_s18  ;;  %p201_p1 = scmp.lt.u32.totalorder %s197_s18, %s386_s1 }
   0x7   :  { %p203_p2 = pnand %p201_p1, %p198_p0 }
   0x9   :  { %206 = shalt.err (!%p203_p2)
}
   0xa   :  { %s207_s23 = scalar_lea.vmem %s30_s13, 16  ;;  %s211_s24 = scalar_lea.vmem %s30_s13, 32 }
   0xb   :  { %p208_p3 = scmp.ne.s32.totalorder %s30_s13, %s207_s23  ;;  %p212_p4 = scmp.lt.s32.totalorder %s30_s13, %s30_s13 }
   0xc   :  { %p213_p5 = scmp.lt.s32.totalorder %s211_s24, %s207_s23 }
   0xe   :  { %p214_p6 = por %p213_p5, %p212_p4 }
  0x10   :  { %p215_p7 = pnand %p214_p6, %p208_p3 }
  0x12   :  { %218 = shalt.err (!%p215_p7)
}
  0x13   :  { %32 = dma.hbm_to_vmem [thread:$0]  %s386_s1, 16, %s30_s13, [#allocation6]  }
  0x14   :  { %s219_s29 = scalar_lea.hbm %s385_s0, 256 }
  0x15   :  { %p220_p8 = scmp.ne.s32.totalorder %s385_s0, %s219_s29  ;;  %p223_p9 = scmp.lt.u32.totalorder %s219_s29, %s385_s0 }
  0x17   :  { %p225_p10 = pnand %p223_p9, %p220_p8 }
  0x19   :  { %228 = shalt.err (!%p225_p10)
}
  0x1a   :  { %s229_s7 = scalar_lea.vmem %s321_s15, 256  ;;  %p234_p12 = scmp.lt.s32.totalorder %s321_s15, %s321_s15 }
  0x1b   :  { %p230_p11 = scmp.ne.s32.totalorder %s321_s15, %s229_s7  ;;  %p235_p13 = scmp.lt.s32.totalorder %s229_s7, %s229_s7 }
  0x1d   :  { %p236_p0 = por %p235_p13, %p234_p12 }
  0x1f   :  { %p237_p1 = pnand %p236_p0, %p230_p11 }
  0x21   :  { %240 = shalt.err (!%p237_p1)
}
  0x22   :  { %s293_s1 = smov 128   ;;  %s294_s8 = smov 8  }
  0x23   :  { %22 = dma.hbm_to_vmem [thread:$0]  %s385_s0, 256, %s321_s15, [#allocation3], %s293_s1, %s293_s1, %s294_s8  }
  0x24   :  { %s295_s11 = smov [#allocation7]   ;;  %s241_s16 = scalar_lea.hbm %s387_s2, 256 }
  0x25   :  { %s38_s12 = sshll.u32 %s295_s11, 4  ;;  %p242_p2 = scmp.ne.s32.totalorder %s387_s2, %s241_s16  ;;  %s39_s12 = int_to_ptr.vmem [resolvable:$true] %s38_s12 }
  0x26   :  { %p245_p3 = scmp.lt.u32.totalorder %s241_s16, %s387_s2 }
  0x28   :  { %p247_p4 = pnand %p245_p3, %p242_p2 }
  0x2a   :  { %250 = shalt.err (!%p247_p4)
}
  0x2b   :  { %s251_s21 = scalar_lea.vmem %s39_s12, 256  ;;  %p256_p6 = scmp.lt.s32.totalorder %s39_s12, %s39_s12 }
  0x2c   :  { %p252_p5 = scmp.ne.s32.totalorder %s39_s12, %s251_s21  ;;  %p257_p7 = scmp.lt.s32.totalorder %s251_s21, %s251_s21 }
  0x2e   :  { %p258_p8 = por %p257_p7, %p256_p6 }
  0x30   :  { %p259_p9 = pnand %p258_p8, %p252_p5 }
  0x32   :  { %262 = shalt.err (!%p259_p9)
}
  0x33   :  { %s296_s0 = smov 64   ;;  %s297_s15 = smov 4  }
  0x34   :  { %44 = dma.hbm_to_vmem [thread:$0]  %s387_s2, 256, %s39_s12, [#allocation6], %s296_s0, %s296_s0, %s297_s15  }
  0x35   :  { %285 = dma.done.wait [#allocation3], 256  }
  0x36   :  { %286 = vsyncadd [#allocation3], 4294967040 }
  0x37   :  { %287 = dma.done.wait [#allocation6], 272  }
  0x38   :  { %288 = vsyncadd [#allocation6], 4294967024  ;;  %v55_v0 = vld [vmem:[#allocation2] sm:$0xff]  ;;  %vm59_vm0 = vcmask 261120   ;;  %v56_v1 = vld [vmem:[#allocation2 + $0x8] sm:$0xff]  ;;  %v298_v7 = vmov 0.0  }
  0x39   :  { %v57_v2 = vmul.f32 %v55_v0, %v55_v0  ;;  %v58_v3 = vmul.f32 %v56_v1, %v56_v1  ;;  %v191_v6 = vld [vmem:[#allocation7] sm:$0xff]   ;;  %173 = vmatprep.subr.bf16.mxu0 %v298_v7  ;;  %vm299_vm1 = vmmov 0   ;;  %v192_v8 = vld [vmem:[#allocation7 + $0x8] sm:$0xff]   ;;  %v166_v18 = vld [vmem:[#allocation5] ss:$0 sm:$0xff]  ;;  %vm145_vm2 = vcmask 785408  }
  0x3a   :  { %177 = vmatprep.mubr.msk.bf16.mxu0 %vm299_vm1, %v298_v7  ;;  %174 = vmatpush3.bf16.msra.mxu0 %v191_v6  ;;  %s300_s2 = smov [#allocation8]  }
  0x3b   :  { %v60_v4 = vsel %vm59_vm0, %v57_v2, 0.0  ;;  %v63_v5 = vsel %vm59_vm0, %v58_v3, 0.0  ;;  %175 = vmatprep.subr.bf16.mxu0 %v298_v7  ;;  %s153_s24 = sshll.u32 %s300_s2, 4  ;;  %s154_s24 = int_to_ptr.vmem [resolvable:$true] %s153_s24 }
  0x3c   :  { %61 = vadd.xlane.f32.xlu0 %v60_v4  ;;  %s263_s25 = scalar_lea.vmem %s154_s24, 256  ;;  %p268_p11 = scmp.lt.s32.totalorder %s154_s24, %s154_s24 }
  0x3d   :  { %p264_p10 = scmp.ne.s32.totalorder %s154_s24, %s263_s25  ;;  %p269_p12 = scmp.lt.s32.totalorder %s263_s25, %s263_s25 }
  0x3e   :  { %176 = vmatpush3.bf16.msra.mxu0 %v192_v8 }
  0x3f   :  { %p270_p13 = por %p269_p12, %p268_p11 }
  0x40   :  { %64 = vadd.xlane.f32.xlu0 %v63_v5 }
  0x41   :  { %p271_p0 = pnand %p270_p13, %p264_p10 }
  0xc9   :  { %v62_v9 = vpop.xlane.xlu0 %61 }
  0xca   :  { %v67_v10 = vmul.f32 0.03125, %v62_v9 }
  0xcc   :  { %v69_v11 = vadd.f32 1e-06, %v67_v10 }
  0xcd   :  { %v65_v12 = vpop.xlane.xlu0 %64 }
  0xce   :  { %193 = vrsqrt.f32 %v69_v11  ;;  %v68_v13 = vmul.f32 0.03125, %v65_v12 }
  0xd0   :  { %v70_v14 = vadd.f32 1e-06, %v68_v13 }
  0xd2   :  { %195 = vrsqrt.f32 %v70_v14 }
  0xd8   :  { %v194_v15 = vpop.eup %193 }
  0xd9   :  { %v73_v16 = vmul.f32 %v194_v15, %v55_v0 }
  0xdb   :  { %v82_v20 = vmul.f32 %v166_v18, %v73_v16 }
  0xdc   :  { %v196_v17 = vpop.eup %195 }
  0xdd   :  { %v74_v19 = vmul.f32 %v196_v17, %v56_v1 }
  0xdf   :  { %v83_v21 = vmul.f32 %v166_v18, %v74_v19 }
  0xe1   :  { %v84_v22 = vpack.c.bf16 %v83_v21, %v82_v20 }
  0xe3   :  { %178 = vmatmul.mubr.msk.bf16.vlgmr.msra.gmra.mrb[0].mxu0 %vm59_vm0, %v84_v22 }
 0x1b6   :  { %v138_v23 = vpop.f32.mrb[0].mxu0 }
 0x1b7   :  { %146 = vst.msk [vmem:[#allocation8] sm:$0xff] %vm145_vm2, %v138_v23  ;;  %v179_v24 = vpop.f32.mrb[1].mxu0 }
 0x1b8   :  { %v141_v25 = vpop.f32.mrb[2].mxu0 }
 0x1b9   :  { %147 = vst.msk [vmem:[#allocation8 + $0x8] sm:$0xff] %vm145_vm2, %v141_v25  ;;  %v180_v26 = vpop.f32.mrb[3].mxu0 }
 0x1ba   :  { %274 = shalt.err (!%p271_p0)
}
 0x1bb   :  { %s275_s28 = scalar_lea.hbm %s388_s3, 256 }
 0x1bc   :  { %p276_p1 = scmp.ne.s32.totalorder %s388_s3, %s275_s28  ;;  %p279_p2 = scmp.lt.u32.totalorder %s275_s28, %s388_s3 }
 0x1be   :  { %p281_p3 = pnand %p279_p2, %p276_p1 }
 0x1c0   :  { %284 = shalt.err (!%p281_p3)
}
 0x1c1   :  { %159 = dma.vmem_to_hbm [thread:$0]  %s154_s24, 256, %s388_s3, [#allocation4], %s293_s1, %s293_s1, %s294_s8  }
 0x1c2   :  { %289 = dma.done.wait [#allocation4], 256  }
 0x1c3   :  { %290 = vsyncadd [#allocation4], 4294967040 }
 0x1c4   :  { %163 = vsyncpa [#allocation3], 1 }
 0x1c5   :  { %164 = vsyncpa [#allocation6], 1 }
 0x1c6   :  { %165 = vsyncpa [#allocation4], 1 }

// kernel: _lambda_.28
= control target key start
LH: loop header
LB: loop body
LE: loop exit
PB: predicated region body
PF: predicated region fallthrough
CT: control target
= control target key end

     0   :  { %8 = vsyncpa [#allocation3], 0  ;;  %s352_s0 = inlined_call_operand.hbm [shape: f32[16,32], index: 0, kind: input, shape index: {}]   ;;  %s353_s1 = inlined_call_operand.hbm [shape: bf16[32,32], index: 1, kind: input, shape index: {}]   ;;  %s354_s2 = inlined_call_operand.hbm [shape: f32[16,32], index: 2, kind: input, shape index: {}]   ;;  %s355_s3 = inlined_call_operand.hbm [shape: f32[16,32], index: 3, kind: output, shape index: {}]  }
   0x1   :  { %9 = vsyncpa [#allocation6], 0 }
   0x2   :  { %10 = vsyncpa [#allocation4], 0  ;;  %s265_s12 = smov [#allocation5]   ;;  %s171_s16 = scalar_lea.hbm %s353_s1, 256 }
   0x3   :  { %s28_s13 = sshll.u32 %s265_s12, 4  ;;  %p172_p0 = scmp.ne.s32.totalorder %s353_s1, %s171_s16  ;;  %s29_s13 = int_to_ptr.vmem [resolvable:$true] %s28_s13 }
   0x4   :  { %p175_p1 = scmp.lt.u32.totalorder %s171_s16, %s353_s1 }
   0x6   :  { %p177_p2 = pnand %p175_p1, %p172_p0 }
   0x8   :  { %180 = shalt.err (!%p177_p2)
}
   0x9   :  { %s181_s21 = scalar_lea.vmem %s29_s13, 256  ;;  %p186_p4 = scmp.lt.s32.totalorder %s29_s13, %s29_s13 }
   0xa   :  { %p182_p3 = scmp.ne.s32.totalorder %s29_s13, %s181_s21  ;;  %p187_p5 = scmp.lt.s32.totalorder %s181_s21, %s181_s21 }
   0xc   :  { %p188_p6 = por %p187_p5, %p186_p4 }
   0xe   :  { %p189_p7 = pnand %p188_p6, %p182_p3 }
  0x10   :  { %192 = shalt.err (!%p189_p7)
}
  0x11   :  { %s266_s22 = smov 64   ;;  %s267_s23 = smov 4  }
  0x12   :  { %34 = dma.hbm_to_vmem [thread:$0]  %s353_s1, 256, %s29_s13, [#allocation6], %s266_s22, %s266_s22, %s267_s23  }
  0x13   :  { %s268_s26 = smov [#allocation2]   ;;  %s193_s30 = scalar_lea.hbm %s352_s0, 256 }
  0x14   :  { %s16_s27 = sshll.u32 %s268_s26, 4  ;;  %p194_p8 = scmp.ne.s32.totalorder %s352_s0, %s193_s30  ;;  %s17_s27 = int_to_ptr.vmem [resolvable:$true] %s16_s27 }
  0x15   :  { %p197_p9 = scmp.lt.u32.totalorder %s193_s30, %s352_s0 }
  0x17   :  { %p199_p10 = pnand %p197_p9, %p194_p8 }
  0x19   :  { %202 = shalt.err (!%p199_p10)
}
  0x1a   :  { %s203_s8 = scalar_lea.vmem %s17_s27, 256  ;;  %p208_p12 = scmp.lt.s32.totalorder %s17_s27, %s17_s27 }
  0x1b   :  { %p204_p11 = scmp.ne.s32.totalorder %s17_s27, %s203_s8  ;;  %p209_p13 = scmp.lt.s32.totalorder %s203_s8, %s203_s8 }
  0x1d   :  { %p210_p0 = por %p209_p13, %p208_p12 }
  0x1f   :  { %p211_p1 = pnand %p210_p0, %p204_p11 }
  0x21   :  { %214 = shalt.err (!%p211_p1)
}
  0x22   :  { %s269_s1 = smov 128   ;;  %s270_s9 = smov 8  }
  0x23   :  { %22 = dma.hbm_to_vmem [thread:$0]  %s352_s0, 256, %s17_s27, [#allocation3], %s269_s1, %s269_s1, %s270_s9  }
  0x24   :  { %s271_s12 = smov [#allocation7]   ;;  %s215_s16 = scalar_lea.hbm %s354_s2, 256 }
  0x25   :  { %s40_s13 = sshll.u32 %s271_s12, 4  ;;  %p216_p2 = scmp.ne.s32.totalorder %s354_s2, %s215_s16  ;;  %s41_s13 = int_to_ptr.vmem [resolvable:$true] %s40_s13 }
  0x26   :  { %p219_p3 = scmp.lt.u32.totalorder %s215_s16, %s354_s2 }
  0x28   :  { %p221_p4 = pnand %p219_p3, %p216_p2 }
  0x2a   :  { %224 = shalt.err (!%p221_p4)
}
  0x2b   :  { %s225_s21 = scalar_lea.vmem %s41_s13, 256  ;;  %p230_p6 = scmp.lt.s32.totalorder %s41_s13, %s41_s13 }
  0x2c   :  { %p226_p5 = scmp.ne.s32.totalorder %s41_s13, %s225_s21  ;;  %p231_p7 = scmp.lt.s32.totalorder %s225_s21, %s225_s21 }
  0x2e   :  { %p232_p8 = por %p231_p7, %p230_p6 }
  0x30   :  { %p233_p9 = pnand %p232_p8, %p226_p5 }
  0x32   :  { %236 = shalt.err (!%p233_p9)
}
  0x33   :  { %46 = dma.hbm_to_vmem [thread:$0]  %s354_s2, 256, %s41_s13, [#allocation6], %s269_s1, %s269_s1, %s270_s9  }
  0x34   :  { %259 = dma.done.wait [#allocation3], 256  }
  0x35   :  { %260 = vsyncadd [#allocation3], 4294967040 }
  0x36   :  { %261 = dma.done.wait [#allocation6], 512  }
  0x37   :  { %262 = vsyncadd [#allocation6], 4294966784  ;;  %v272_v0 = vmov 0.0   ;;  %vm273_vm0 = vmmov 0   ;;  %v169_v1 = vld [vmem:[#allocation5] sm:$0xff]   ;;  %v170_v2 = vld [vmem:[#allocation5 + $0x8] sm:$0xff]  }
  0x38   :  { %151 = vmatprep.subr.bf16.mxu0 %v272_v0  ;;  %155 = vmatprep.mubr.msk.bf16.mxu0 %vm273_vm0, %v272_v0  ;;  %v59_v3 = vld [vmem:[#allocation2] sm:$0xff]  ;;  %v60_v4 = vld [vmem:[#allocation2 + $0x8] sm:$0xff]  ;;  %vm78_vm1 = vcmask 261120   ;;  %s274_s2 = smov [#allocation8]  }
  0x39   :  { %152 = vmatpush3.bf16.msra.mxu0 %v169_v1  ;;  %v61_v5 = vpack.c.bf16 %v60_v4, %v59_v3  ;;  %v57_v6 = vld [vmem:[#allocation7] sm:$0xff]  ;;  %v58_v8 = vld [vmem:[#allocation7 + $0x8] sm:$0xff]  ;;  %s132_s23 = sshll.u32 %s274_s2, 4  ;;  %s133_s23 = int_to_ptr.vmem [resolvable:$true] %s132_s23 }
  0x3a   :  { %153 = vmatprep.subr.bf16.mxu0 %v272_v0  ;;  %s237_s24 = scalar_lea.vmem %s133_s23, 256  ;;  %p242_p11 = scmp.lt.s32.totalorder %s133_s23, %s133_s23 }
  0x3b   :  { %p238_p10 = scmp.ne.s32.totalorder %s133_s23, %s237_s24  ;;  %p243_p12 = scmp.lt.s32.totalorder %s237_s24, %s237_s24 }
  0x3d   :  { %154 = vmatpush3.bf16.msra.mxu0 %v170_v2  ;;  %p244_p13 = por %p243_p12, %p242_p11 }
  0x3f   :  { %p245_p0 = pnand %p244_p13, %p238_p10 }
  0x40   :  { %156 = vmatmul.mubr.msk.bf16.vlgmr.msra.gmra.mrb[0].mxu0 %vm78_vm1, %v61_v5 }
 0x113   :  { %v116_v7 = vpop.f32.mrb[0].mxu0 }
 0x114   :  { %v123_v9 = vadd.f32 %v116_v7, %v57_v6  ;;  %v157_v10 = vpop.f32.mrb[1].mxu0 }
 0x115   :  { %v119_v11 = vpop.f32.mrb[2].mxu0 }
 0x116   :  { %125 = vst.msk [vmem:[#allocation8] sm:$0xff] %vm78_vm1, %v123_v9  ;;  %v124_v12 = vadd.f32 %v119_v11, %v58_v8  ;;  %v158_v13 = vpop.f32.mrb[3].mxu0 }
 0x118   :  { %126 = vst.msk [vmem:[#allocation8 + $0x8] sm:$0xff] %vm78_vm1, %v124_v12 }
 0x119   :  { %248 = shalt.err (!%p245_p0)
}
 0x11a   :  { %s249_s27 = scalar_lea.hbm %s355_s3, 256 }
 0x11b   :  { %p250_p1 = scmp.ne.s32.totalorder %s355_s3, %s249_s27  ;;  %p253_p2 = scmp.lt.u32.totalorder %s249_s27, %s355_s3 }
 0x11d   :  { %p255_p3 = pnand %p253_p2, %p250_p1 }
 0x11f   :  { %258 = shalt.err (!%p255_p3)
}
 0x120   :  { %138 = dma.vmem_to_hbm [thread:$0]  %s133_s23, 256, %s355_s3, [#allocation4], %s269_s1, %s269_s1, %s270_s9  }
 0x121   :  { %263 = dma.done.wait [#allocation4], 256  }
 0x122   :  { %264 = vsyncadd [#allocation4], 4294967040 }
 0x123   :  { %142 = vsyncpa [#allocation3], 1 }
 0x124   :  { %143 = vsyncpa [#allocation6], 1 }
 0x125   :  { %144 = vsyncpa [#allocation4], 1 }

// kernel: _lambda_.27
= control target key start
LH: loop header
LB: loop body
LE: loop exit
PB: predicated region body
PF: predicated region fallthrough
CT: control target
= control target key end

     0   :  { %s1758_s0 = inlined_call_operand.hbm [shape: bf16[2,4,8,8], index: 0, kind: input, shape index: {}]   ;;  %s1759_s1 = inlined_call_operand.hbm [shape: bf16[2,4,8,8], index: 1, kind: input, shape index: {}]   ;;  %s1760_s2 = inlined_call_operand.hbm [shape: bf16[2,4,8,8], index: 2, kind: input, shape index: {}]   ;;  %s1761_s3 = inlined_call_operand.hbm [shape: f32[1,4,8,8], index: 3, kind: input, shape index: {}]   ;;  %s1762_s4 = inlined_call_operand.hbm [shape: f32[2,4,8,8], index: 4, kind: output, shape index: {}]  }
   0x1   :  { %1784 = sst [smem:[#allocation21_spill]] %s1759_s1 }
   0x2   :  { %1785 = sst [smem:[#allocation22_spill]] %s1762_s4 }
   0x3   :  { %9 = vsyncpa [#allocation3], 0 }
   0x4   :  { %11 = vsyncpa [#allocation3 + $0x1], 0 }
   0x5   :  { %12 = vsyncpa [#allocation6], 0 }
   0x6   :  { %14 = vsyncpa [#allocation6 + $0x1], 0 }
   0x7   :  { %15 = vsyncpa [#allocation9], 0 }
   0x8   :  { %16 = vsyncpa [#allocation4], 0 }
   0x9   :  { %18 = vsyncpa [#allocation4 + $0x1], 0  ;;  %s1382_s15 = smov 0   ;;  %s1384_s16 = smov 0  }
   0xa   :  { %s1386_s17 = smov 0   ;;  %s1388_s18 = smov 0  }
   0xb   :  { %s1390_s19 = smov 0   ;;  %s1392_s20 = smov 0  }
   0xc LB: > { %1786 = sst [smem:[#allocation15_spill]] %s1322_s15  ;;  %s36_s21 = sadd.s32 1, %s1338_s19  ;;  %s1342_s20 = sphi %s1392_s20, %s24_s20   ;;  %s1338_s19 = sphi %s1390_s19, %s1819_s19   ;;  %s1334_s18 = sphi %s1388_s18, %s1818_s18   ;;  %s1330_s17 = sphi %s1386_s17, %s1822_s17   ;;  %s1326_s16 = sphi %s1384_s16, %s1821_s16   ;;  %s1322_s15 = sphi %s1382_s15, %s1820_s15  }
   0xd   : > { %1787 = sst [smem:[#allocation16_spill]] %s1338_s19  ;;  %s45_s22 = sadd.s32 1, %s1330_s17 }
   0xe   : > { %1788 = sst [smem:[#allocation17_spill]] %s1342_s20  ;;  %p38_p0 = scmp.ge.s32.totalorder %s36_s21, 2 }
   0xf   : > { %p1763_p1 = scmp.ne.s32.totalorder %s1330_s17, %s1326_s16  ;;  %p53_p2 = scmp.eq.s32.totalorder %s1342_s20, 0 }
  0x10   : > { %s1824_s21 = smov (%p38_p0, %s36_s21), 0  ;;  %p1058_p5 = scmp.lt.s32.totalorder %s1342_s20, 2 }
  0x11   : > { %1789 = sst [smem:[#allocation18_spill]] %s1824_s21  ;;  %p54_p4 = por %p53_p2, %p1763_p1 }
  0x12   : > { %s40_s23 = ssub.s32 %s1338_s19, %s1824_s21  ;;  %s1768_s24 = sand.u32 1, %s1330_s17  }
  0x13   : > { %p43_p6 = scmp.eq.s32.totalorder %s40_s23, 0  ;;  %s1429_s25 = sshll.u32 %s1768_s24, 4 }
  0x14   : > { %s1432_s26 = sshll.u32 %s1338_s19, 8  ;;  %p1434_p7 = pnand %p1058_p5, %p54_p4 }
  0x15   : > { %s1439_s28 = scalar_select %p43_p6, %s1330_s17, %s45_s22  }
  0x16   : > { %s1790_s27 = scalar_select %p1434_p7, 1, 0 }
  0x17   : > { %1791 = sst [smem:[#allocation19_spill]] %s1439_s28  ;;  %s225_s29 = sand.u32 1, %s1342_s20  }
  0x18   : > { %s1792_s1 = sld [smem:[#allocation21_spill]]  ;;  %s229_s7 = scalar_lea.vmem [#allocation5], %s1429_s25 }
  0x19   : > { %s236_s8 = sshll.u32 %s229_s7, 4  ;;  %s1451_s9 = scalar_lea.sflag [#allocation6], %s225_s29  ;;  %s1449_s8 = int_to_ptr.vmem [resolvable:$true] %s236_s8 }
  0x1a   : > { %p1457_p9 = pneg %p1434_p7 }
  0x1c   : > { %s1793_s11 = scalar_select %p1457_p9, 1, 0 }
  0x1e   : > { %s1446_s6 = scalar_lea.hbm %s1792_s1, %s1432_s26  ;;  %s1139_s14 = scalar_lea.hbm %s1792_s1, 512 }
  0x1f   : > { %s1134_s10 = scalar_lea.hbm %s1446_s6, 256  ;;  %p1140_p12 = scmp.lt.u32.totalorder %s1446_s6, %s1792_s1 }
  0x20   : > { %p1135_p8 = scmp.ne.s32.totalorder %s1446_s6, %s1134_s10  ;;  %p1141_p13 = scmp.lt.u32.totalorder %s1139_s14, %s1134_s10 }
  0x21   : > { %p1143_p2 = scmp.lt.u32.totalorder %s1134_s10, %s1446_s6 }
  0x22   : > { %p1137_p10 = pnand %p1457_p9, %p1135_p8  ;;  %p1142_p0 = por %p1141_p13, %p1140_p12 }
  0x24   : > { %p1138_p11 = pneg %p1137_p10  ;;  %p1144_p4 = por %p1143_p2, %p1142_p0 }
  0x26   : > { %p1145_p5 = pnand %p1144_p4, %p1138_p11 }
  0x28   : > { %1148 = shalt.err (!%p1145_p5)
}
  0x29   : > { %s1149_s29 = scalar_lea.vmem %s1449_s8, 256  ;;  %s1344_s30 = smov [#allocation5]  }
  0x2a   : > { %p1150_p6 = scmp.ne.s32.totalorder %s1449_s8, %s1149_s29  ;;  %s1154_s5 = sshll.u32 %s1344_s30, 4  ;;  %s1155_s5 = int_to_ptr.vmem [resolvable:$false] %s1154_s5 }
  0x2b   : > { %s1156_s7 = scalar_lea.vmem %s1155_s5, 512  ;;  %p1157_p3 = scmp.lt.s32.totalorder %s1449_s8, %s1155_s5 }
  0x2c   : > { %p1152_p8 = pnand %p1150_p6, %p1457_p9  ;;  %p1158_p1 = scmp.lt.s32.totalorder %s1156_s7, %s1149_s29 }
  0x2e   : > { %p1153_p10 = pneg %p1152_p8  ;;  %p1159_p12 = por %p1158_p1, %p1157_p3 }
  0x30   : > { %p1160_p13 = pnand %p1159_p12, %p1153_p10 }
  0x32   : > { %1163 = shalt.err (!%p1160_p13)
}
  0x33   : > { %s1764_s10 = smov 64   ;;  %s1766_s12 = smov 4  }
  0x34   : > { %1049 = dma.hbm_to_vmem [thread:$0]  (!%p1434_p7), %s1446_s6, 256, %s1449_s8, %s1451_s9, %s1764_s10, %s1764_s10, %s1766_s12  }
  0x35   : > { %s1485_s13 = sadd.s32 4294967295, %s1342_s20   ;;  %s927_s14 = sadd.s32 4294967294, %s1342_s20  }
  0x36   : > { %p58_p1 = scmp.ne.s32.totalorder %s1326_s16, %s1322_s15  ;;  %p1771_p3 = scmp.eq.s32.totalorder %s1485_s13, 0 }
  0x37   : > { %p162_p11 = scmp.eq.s32.totalorder %s1485_s13, 1  ;;  %p168_p0 = scmp.eq.s32.totalorder %s927_s14, 1 }
  0x38   : > { %p928_p2 = scmp.ge.s32.totalorder %s1342_s20, 1  ;;  %p1495_p4 = por %p1771_p3, %p58_p1 }
  0x39   : > { %p1795_p5 = scmp.ne.s32.totalorder %s1330_s17, %s1326_s16  ;;  %p1506_p8 = por %p168_p0, %p58_p1 }
  0x3a   : > { %s1794_s22 = scalar_select %p1495_p4, 1, 0 }
  0x3b   : > { %p1502_p6 = por %p162_p11, %p1795_p5  ;;  %p175_p10 = scmp.lt.s32.totalorder %s1342_s20, 3 }
  0x3c   : > { %s1797_s8 = scalar_select %p1506_p8, 1, 0 }
  0x3d   : > { %s1796_s6 = scalar_select %p1502_p6, 1, 0 }
  0x3e   : > { %1798 = sst [smem:[#allocation20_spill]] %s1797_s8  ;;  %p1511_p12 = pnand %p928_p2, %p175_p10 }
  0x3f   : > { %s1347_s29 = smov [#allocation8]   ;;  %s1529_s10 = scalar_lea.hbm %s1758_s0, %s1432_s26 }
  0x40   : > { %s1799_s23 = scalar_select %p1511_p12, 1, 0 }
  0x41   : > { %s189_s30 = sshll.u32 %s1347_s29, 4  ;;  %p1039_p13 = pneg %p1511_p12  ;;  %s1515_s30 = int_to_ptr.vmem [resolvable:$true] %s189_s30 }
  0x42   : > { %s207_s12 = scalar_lea.vmem [#allocation2], %s1429_s25  ;;  %s1164_s21 = scalar_lea.hbm %s1761_s3, 512 }
  0x43   : > { %p1521_p11 = pnand %p1039_p13, %p1771_p3  ;;  %s215_s24 = sshll.u32 %s207_s12, 4  ;;  %s1532_s24 = int_to_ptr.vmem [resolvable:$true] %s215_s24 }
  0x44   : > { %p1165_p1 = scmp.ne.s32.totalorder %s1761_s3, %s1164_s21  ;;  %p1171_p10 = scmp.lt.u32.totalorder %s1164_s21, %s1761_s3 }
  0x45   : > { %p1166_p0 = pneg %p1521_p11 }
  0x47   : > { %p1167_p2 = pnand %p1166_p0, %p1165_p1 }
  0x49   : > { %p1168_p5 = pneg %p1167_p2 }
  0x4b   : > { %p1173_p13 = pnand %p1171_p10, %p1168_p5 }
  0x4d   : > { %1176 = shalt.err (!%p1173_p13)
}
  0x4e   : > { %s1177_s12 = scalar_lea.vmem %s1515_s30, 512  ;;  %p1185_p4 = scmp.lt.s32.totalorder %s1515_s30, %s1515_s30 }
  0x4f   : > { %p1178_p3 = scmp.ne.s32.totalorder %s1515_s30, %s1177_s12  ;;  %p1186_p12 = scmp.lt.s32.totalorder %s1177_s12, %s1177_s12 }
  0x51   : > { %p1180_p8 = pnand %p1178_p3, %p1166_p0  ;;  %p1187_p7 = por %p1186_p12, %p1185_p4 }
  0x53   : > { %p1181_p6 = pneg %p1180_p8 }
  0x55   : > { %p1188_p9 = pnand %p1187_p7, %p1181_p6 }
  0x57   : > { %1191 = shalt.err (!%p1188_p9)
}
  0x58   : > { %s1348_s1 = smov 128   ;;  %s1349_s19 = smov 8  }
  0x59   : > { %1042 = dma.hbm_to_vmem [thread:$0]  (!%p1521_p11), %s1761_s3, 512, %s1515_s30, [#allocation9], %s1348_s1, %s1348_s1, %s1349_s19  }
  0x5a   : > { %s1801_s29 = sand.u32 1, %s1330_s17   ;;  %s1192_s14 = scalar_lea.hbm %s1529_s10, 256 }
  0x5b   : > { %s1557_s7 = scalar_lea.sflag [#allocation3], %s1801_s29  ;;  %p1193_p7 = scmp.ne.s32.totalorder %s1529_s10, %s1192_s14 }
  0x5c   : > { %p1802_p9 = scmp.ne.s32.totalorder %s1793_s11, 0  ;;  %s1197_s8 = scalar_lea.hbm %s1758_s0, 512 }
  0x5d   : > { %p1198_p6 = scmp.lt.u32.totalorder %s1529_s10, %s1758_s0  ;;  %p1199_p8 = scmp.lt.u32.totalorder %s1197_s8, %s1192_s14 }
  0x5e   : > { %p1195_p3 = pnand %p1193_p7, %p1802_p9  ;;  %p1201_p1 = scmp.lt.u32.totalorder %s1192_s14, %s1529_s10 }
  0x5f   : > { %p1200_p12 = por %p1199_p8, %p1198_p6 }
  0x60   : > { %p1196_p4 = pneg %p1195_p3 }
  0x61   : > { %p1202_p11 = por %p1201_p1, %p1200_p12 }
  0x63   : > { %p1203_p0 = pnand %p1202_p11, %p1196_p4 }
  0x65   : > { %1206 = shalt.err (!%p1203_p0)
}
  0x66   : > { %s1207_s30 = scalar_lea.vmem %s1532_s24, 256  ;;  %s1350_s20 = smov [#allocation2]  }
  0x67   : > { %p1208_p2 = scmp.ne.s32.totalorder %s1532_s24, %s1207_s30  ;;  %s1212_s5 = sshll.u32 %s1350_s20, 4  ;;  %s1213_s5 = int_to_ptr.vmem [resolvable:$false] %s1212_s5 }
  0x68   : > { %s1214_s4 = scalar_lea.vmem %s1213_s5, 512  ;;  %p1215_p13 = scmp.lt.s32.totalorder %s1532_s24, %s1213_s5 }
  0x69   : > { %p1210_p5 = pnand %p1208_p2, %p1802_p9  ;;  %p1216_p7 = scmp.lt.s32.totalorder %s1214_s4, %s1207_s30 }
  0x6b   : > { %p1211_p10 = pneg %p1210_p5  ;;  %p1217_p3 = por %p1216_p7, %p1215_p13 }
  0x6d   : > { %p1218_p6 = pnand %p1217_p3, %p1211_p10 }
  0x6f   : > { %1221 = shalt.err (!%p1218_p6)
}
  0x70   : > { %p1803_p4 = scmp.ne.s32.totalorder %s1790_s27, 0  ;;  %s1804_s15 = smov 4  }
  0x71   : > { %s1805_s8 = smov 64   ;;  %s1588_s21 = scalar_lea.hbm %s1760_s2, %s1432_s26 }
  0x72   : > { %1046 = dma.hbm_to_vmem [thread:$0]  (!%p1803_p4), %s1529_s10, 256, %s1532_s24, %s1557_s7, %s1805_s8, %s1805_s8, %s1804_s15  }
  0x73   : > { %s250_s28 = scalar_lea.vmem [#allocation7], %s1429_s25  ;;  %s1222_s14 = scalar_lea.hbm %s1588_s21, 256 }
  0x74   : > { %s257_s29 = sshll.u32 %s250_s28, 4  ;;  %p1223_p8 = scmp.ne.s32.totalorder %s1588_s21, %s1222_s14  ;;  %s1591_s29 = int_to_ptr.vmem [resolvable:$true] %s257_s29 }
  0x75   : > { %s1227_s10 = scalar_lea.hbm %s1760_s2, 512  ;;  %p1228_p11 = scmp.lt.u32.totalorder %s1588_s21, %s1760_s2 }
  0x76   : > { %p1225_p12 = pnand %p1223_p8, %p1802_p9  ;;  %p1229_p0 = scmp.lt.u32.totalorder %s1227_s10, %s1222_s14 }
  0x77   : > { %p1231_p5 = scmp.lt.u32.totalorder %s1222_s14, %s1588_s21 }
  0x78   : > { %p1226_p1 = pneg %p1225_p12  ;;  %p1230_p2 = por %p1229_p0, %p1228_p11 }
  0x7a   : > { %p1232_p10 = por %p1231_p5, %p1230_p2 }
  0x7c   : > { %p1233_p13 = pnand %p1232_p10, %p1226_p1 }
  0x7e   : > { %1236 = shalt.err (!%p1233_p13)
}
  0x7f   : > { %s1237_s25 = scalar_lea.vmem %s1591_s29, 256  ;;  %s1351_s30 = smov [#allocation7]  }
  0x80   : > { %p1238_p7 = scmp.ne.s32.totalorder %s1591_s29, %s1237_s25  ;;  %s1242_s20 = sshll.u32 %s1351_s30, 4  ;;  %s1243_s20 = int_to_ptr.vmem [resolvable:$false] %s1242_s20 }
  0x81   : > { %s1244_s5 = scalar_lea.vmem %s1243_s20, 512  ;;  %p1245_p8 = scmp.lt.s32.totalorder %s1591_s29, %s1243_s20 }
  0x82   : > { %p1240_p3 = pnand %p1238_p7, %p1802_p9  ;;  %p1246_p12 = scmp.lt.s32.totalorder %s1244_s5, %s1237_s25 }
  0x84   : > { %p1241_p6 = pneg %p1240_p3  ;;  %p1247_p11 = por %p1246_p12, %p1245_p8 }
  0x86   : > { %p1248_p0 = pnand %p1247_p11, %p1241_p6 }
  0x88   : > { %1251 = shalt.err (!%p1248_p0)
}
  0x89   : > { %1052 = dma.hbm_to_vmem [thread:$0]  (!%p1803_p4), %s1588_s21, 256, %s1591_s29, %s1451_s9, %s1805_s8, %s1805_s8, %s1804_s15  }
  0x8a   : > { %p1806_p9 = scmp.ne.s32.totalorder %s1799_s23, 0 }
  0x8b   : > { %s1621_s11 = sand.u32 (!%p1806_p9), 1, %s1326_s16   ;;  %p1807_p1 = scmp.ne.s32.totalorder (!%p1806_p9), %s1794_s22, 0 }
  0x8c   : > { %269 = sbr.rel (%p1806_p9) target bundleno = 934 (0x3a6), region = 36  ;;  %s941_s4 = sshll.u32 (!%p1806_p9), %s1621_s11, 4 }
  0x8d   : > { %s272_s1 = scalar_lea.sflag (!%p1806_p9), [#allocation3], %s1621_s11  ;;  %s1625_s19 = scalar_lea.vmem (!%p1806_p9), [#allocation2], %s941_s4 }
  0x93   : > { %1305 = dma.done.wait (%p1807_p1), %s272_s1, 256  }
  0x94   : > { %1307 = vsyncadd (%p1807_p1), %s272_s1, 4294967040  ;;  %s280_s27 = sand.u32 1, %s1485_s13   ;;  %s284_s23 = scalar_lea.vmem [#allocation5], %s941_s4 }
  0x95   : > { %s281_s9 = scalar_lea.sflag [#allocation6], %s280_s27 }
  0x96   : > { %1309 = dma.done.wait (%p1807_p1), %s281_s9, 512  }
  0x97   : > { %1311 = vsyncadd (%p1807_p1), %s281_s9, 4294966784  ;;  %s1636_s15 = scalar_lea.vmem [#allocation7], %s941_s4  ;;  %p1808_p4 = scmp.eq.s32.totalorder %s1485_s13, 0 }
  0x99   : > { %1313 = dma.done.wait (%p1808_p4), [#allocation9], 512   ;;  %p1809_p2 = pmov %p1808_p4 }
  0x9a   : > { %v1352_v0 = vmov 0.0   ;;  %vm1353_vm0 = vmmov 0   ;;  %vm349_vm1 = vcmask 64512   ;;  %v337_v1 = vld [vmem:[%s284_s23] sm:$0xf]  ;;  %v346_v14 = vld [vmem:[#allocation8 + $0x8] sm:$0xff] }
  0x9b   : > { %1315 = vsyncadd (%p1809_p2), [#allocation9], 4294966784  ;;  %979 = vmatprep.subr.bf16.mxu0 %v1352_v0  ;;  %985 = vmatprep.subr.bf16.mxu1 %v1352_v0  ;;  %v338_v2 = vld [vmem:[%s284_s23 + $0x4] sm:$0xf]  ;;  %v354_v3 = vsel %vm349_vm1, %v337_v1, 0  ;;  %v348_v28 = vld [vmem:[#allocation8 + $0x18] sm:$0xff] }
  0x9c   : > { %981 = vmatprep.mubr.msk.bf16.mxu0 %vm1353_vm0, %v1352_v0  ;;  %987 = vmatprep.mubr.msk.bf16.mxu1 %vm1353_vm0, %v1352_v0  ;;  %v400_v4 = vsel %vm349_vm1, %v338_v2, 0  ;;  %v339_v5 = vld [vmem:[%s284_s23 + $0x8] sm:$0xf]  ;;  %v340_v6 = vld [vmem:[%s284_s23 + $0xc] sm:$0xf]  ;;  %v345_v13 = vld [vmem:[#allocation8] sm:$0xff] }
  0x9d   : > { %980 = vmatpush3.bf16.xpose.msra.mxu0 %v354_v3  ;;  %986 = vmatpush3.bf16.xpose.msra.mxu1 %v400_v4  ;;  %v333_v7 = vld [vmem:[%s1625_s19] sm:$0xf]  ;;  %v334_v8 = vld [vmem:[%s1625_s19 + $0x4] sm:$0xf]  ;;  %v446_v9 = vsel %vm349_vm1, %v339_v5, 0  ;;  %v492_v10 = vsel %vm349_vm1, %v340_v6, 0 }
  0x9e   : > { %991 = vmatprep.subr.bf16.mxu0 %v1352_v0  ;;  %997 = vmatprep.subr.bf16.mxu1 %v1352_v0  ;;  %v335_v11 = vld [vmem:[%s1625_s19 + $0x8] sm:$0xf]  ;;  %v336_v12 = vld [vmem:[%s1625_s19 + $0xc] sm:$0xf]  ;;  %v347_v27 = vld [vmem:[#allocation8 + $0x10] sm:$0xff]  ;;  %vm585_vm2 = vcmask 1043456  }
  0x9f   : > { %v341_v61 = vld [vmem:[%s1636_s15] sm:$0xf]  ;;  %v342_v63 = vld [vmem:[%s1636_s15 + $0x4] sm:$0xf]  ;;  %v343_v6 = vld [vmem:[%s1636_s15 + $0x8] sm:$0xf] }
  0xa0   : > { %v587_v62 = vsel %vm585_vm2, %v341_v61, 0  ;;  %v633_v1 = vsel %vm585_vm2, %v342_v63, 0  ;;  %s945_s13 = sshll.u32 %s1621_s11, 5  ;;  %s962_s21 = sshll.u32 %s1334_s18, 9 }
  0xa1   : > { %s331_s22 = scalar_lea.vmem [#allocation10], %s945_s13  ;;  %s1810_s14 = sld [smem:[#allocation22_spill]] }
  0xa2   : > { %s786_s8 = sshll.u32 %s331_s22, 4  ;;  %s772_s18 = scalar_lea.sflag [#allocation4], %s1621_s11  ;;  %s1702_s8 = int_to_ptr.vmem [resolvable:$true] %s786_s8 }
  0xa3   : > { %s1252_s24 = scalar_lea.vmem %s1702_s8, 512  ;;  %p1811_p10 = scmp.ne.s32.totalorder %s1796_s6, 0 }
  0xa4   : > { %982 = vmatmul.mubr.msk.bf16.vlgmr.msra.gmra.mrb[0].mxu0 %vm349_vm1, %v333_v7  ;;  %988 = vmatmul.mubr.msk.bf16.vlgmr.msra.gmra.mrb[0].mxu1 %vm349_vm1, %v334_v8  ;;  %p1253_p5 = scmp.ne.s32.totalorder %s1702_s8, %s1252_s24  ;;  %s1354_s10 = smov [#allocation10]  }
  0xa5   : > { %992 = vmatpush3.bf16.xpose.msra.mxu0 %v446_v9  ;;  %998 = vmatpush3.bf16.xpose.msra.mxu1 %v492_v10  ;;  %v679_v10 = vsel %vm585_vm2, %v343_v6, 0  ;;  %s1256_s7 = sshll.u32 %s1354_s10, 4  ;;  %s1257_s7 = int_to_ptr.vmem [resolvable:$false] %s1256_s7 }
  0xa6   : > { %993 = vmatprep.mubr.msk.bf16.mxu0 %vm1353_vm0, %v1352_v0  ;;  %999 = vmatprep.mubr.msk.bf16.mxu1 %vm1353_vm0, %v1352_v0  ;;  %p1254_p13 = pnand %p1253_p5, %p1811_p10  ;;  %s1258_s26 = scalar_lea.vmem %s1257_s7, 1024 }
  0xa7   : > { %1003 = vmatprep.subr.bf16.mxu0 %v1352_v0  ;;  %1009 = vmatprep.subr.bf16.mxu1 %v1352_v0  ;;  %s1708_s12 = scalar_lea.hbm %s1810_s14, %s962_s21  ;;  %p1259_p3 = scmp.lt.s32.totalorder %s1702_s8, %s1257_s7 }
  0xa8   : > { %p1255_p7 = pneg %p1254_p13  ;;  %p1260_p6 = scmp.lt.s32.totalorder %s1258_s26, %s1252_s24 }
  0xaa   : > { %p1261_p8 = por %p1260_p6, %p1259_p3 }
  0xac   : > { %994 = vmatmul.mubr.msk.bf16.vlgmr.msra.gmra.mrb[4].mxu0 %vm349_vm1, %v335_v11  ;;  %1000 = vmatmul.mubr.msk.bf16.vlgmr.msra.gmra.mrb[4].mxu1 %vm349_vm1, %v336_v12  ;;  %v344_v12 = vld [vmem:[%s1636_s15 + $0xc] sm:$0xf]  ;;  %p1262_p12 = pnand %p1261_p8, %p1255_p7 }
  0xad   : > { %1005 = vmatprep.mubr.msk.bf16.mxu0 %vm1353_vm0, %v1352_v0  ;;  %1011 = vmatprep.mubr.msk.bf16.mxu1 %vm1353_vm0, %v1352_v0 }
  0xae   : > { %1004 = vmatpush3.bf16.msra.mxu0 %v587_v62  ;;  %1010 = vmatpush3.bf16.msra.mxu1 %v633_v1 }
  0xaf   : > { %1015 = vmatprep.subr.bf16.mxu0 %v1352_v0  ;;  %1021 = vmatprep.subr.bf16.mxu1 %v1352_v0 }
 0x177   : > { %v390_v15 = vpop.f32.mrb[0].mxu0  ;;  %v436_v16 = vpop.f32.mrb[0].mxu1 }
 0x178   : > { %v391_v17 = vadd.f32 %v390_v15, %v345_v13  ;;  %v983_v18 = vpop.f32.mrb[1].mxu0  ;;  %v437_v19 = vadd.f32 %v436_v16, %v346_v14  ;;  %v989_v20 = vpop.f32.mrb[1].mxu1  ;;  %v725_v15 = vsel %vm585_vm2, %v344_v12, 0 }
 0x179   : > { %v393_v21 = vpop.f32.mrb[2].mxu0  ;;  %v439_v22 = vpop.f32.mrb[2].mxu1 }
 0x17a   : > { %v984_v23 = vpop.f32.mrb[3].mxu0  ;;  %v534_v24 = vsel %vm349_vm1, %v391_v17, -inf  ;;  %v990_v25 = vpop.f32.mrb[3].mxu1  ;;  %v537_v26 = vsel %vm349_vm1, %v437_v19, -inf }
 0x17b   : > { %535 = vmax.xlane.f32.xlu0 %v534_v24 }
 0x17f   : > { %538 = vmax.xlane.f32.xlu0 %v537_v26  ;;  %v482_v29 = vpop.f32.mrb[4].mxu0  ;;  %v528_v30 = vpop.f32.mrb[4].mxu1 }
 0x180   : > { %v483_v31 = vadd.f32 %v482_v29, %v347_v27  ;;  %v995_v32 = vpop.f32.mrb[5].mxu0  ;;  %v529_v33 = vadd.f32 %v528_v30, %v348_v28  ;;  %v1001_v34 = vpop.f32.mrb[5].mxu1 }
 0x181   : > { %v485_v35 = vpop.f32.mrb[6].mxu0  ;;  %v531_v36 = vpop.f32.mrb[6].mxu1 }
 0x182   : > { %v996_v37 = vpop.f32.mrb[7].mxu0  ;;  %v540_v38 = vsel %vm349_vm1, %v483_v31, -inf  ;;  %v1002_v39 = vpop.f32.mrb[7].mxu1  ;;  %v543_v40 = vsel %vm349_vm1, %v529_v33, -inf }
 0x183   : > { %541 = vmax.xlane.f32.xlu1 %v540_v38 }
 0x187   : > { %544 = vmax.xlane.f32.xlu1 %v543_v40 }
 0x208   : > { %v536_v41 = vpop.xlane.xlu0 %535 }
 0x209   : > { %v546_v42 = vsub.f32 %v391_v17, %v536_v41 }
 0x20b   : > { %v550_v43 = vmul.f32 1.442695, %v546_v42 }
 0x20c   : > { %v539_v44 = vpop.xlane.xlu0 %538 }
 0x20d   : > { %1118 = vpow2.f32 %v550_v43  ;;  %v547_v45 = vsub.f32 %v437_v19, %v539_v44 }
 0x20f   : > { %v552_v46 = vmul.f32 1.442695, %v547_v45 }
 0x210   : > { %v542_v47 = vpop.xlane.xlu1 %541 }
 0x211   : > { %1120 = vpow2.f32 %v552_v46  ;;  %v548_v48 = vsub.f32 %v483_v31, %v542_v47 }
 0x213   : > { %v554_v49 = vmul.f32 1.442695, %v548_v48 }
 0x214   : > { %v545_v50 = vpop.xlane.xlu1 %544 }
 0x215   : > { %1122 = vpow2.f32 %v554_v49  ;;  %v549_v51 = vsub.f32 %v529_v33, %v545_v50 }
 0x217   : > { %v1119_v52 = vpop.eup %1118  ;;  %v556_v53 = vmul.f32 1.442695, %v549_v51 }
 0x218   : > { %v558_v54 = vsel %vm349_vm1, %v1119_v52, 0.0 }
 0x219   : > { %1124 = vpow2.f32 %v556_v53  ;;  %559 = vadd.xlane.f32.xlu0 %v558_v54 }
 0x21b   : > { %v1121_v55 = vpop.eup %1120 }
 0x21c   : > { %v561_v56 = vsel %vm349_vm1, %v1121_v55, 0.0 }
 0x21d   : > { %562 = vadd.xlane.f32.xlu1 %v561_v56 }
 0x21f   : > { %v1123_v57 = vpop.eup %1122 }
 0x220   : > { %v564_v58 = vsel %vm349_vm1, %v1123_v57, 0.0 }
 0x221   : > { %565 = vadd.xlane.f32.xlu0 %v564_v58 }
 0x223   : > { %v1125_v59 = vpop.eup %1124 }
 0x224   : > { %v567_v60 = vsel %vm349_vm1, %v1125_v59, 0.0 }
 0x225   : > { %568 = vadd.xlane.f32.xlu1 %v567_v60 }
 0x2a6   : > { %v560_v2 = vpop.xlane.xlu0 %559 }
 0x2a7   : > { %1126 = vrcp.f32 %v560_v2 }
 0x2aa   : > { %v563_v3 = vpop.xlane.xlu1 %562 }
 0x2ab   : > { %1128 = vrcp.f32 %v563_v3 }
 0x2ae   : > { %v566_v4 = vpop.xlane.xlu0 %565 }
 0x2af   : > { %1130 = vrcp.f32 %v566_v4 }
 0x2b1   : > { %v1127_v5 = vpop.eup %1126 }
 0x2b2   : > { %v574_v7 = vmul.f32 %v1127_v5, %v1119_v52  ;;  %v569_v8 = vpop.xlane.xlu1 %568 }
 0x2b3   : > { %1132 = vrcp.f32 %v569_v8 }
 0x2b4   : > { %v578_v9 = vpack.c.bf16 %v574_v7, %v574_v7 }
 0x2b5   : > { %v1129_v11 = vpop.eup %1128 }
 0x2b6   : > { %v575_v13 = vmul.f32 %v1129_v11, %v1121_v55  ;;  %1006 = vmatmul.mubr.msk.bf16.vlgmr.msra.gmra.mrb[8].mxu0 %vm349_vm1, %v578_v9 }
 0x2b7   : > { %1016 = vmatpush3.bf16.msra.mxu0 %v679_v10  ;;  %1017 = vmatprep.mubr.msk.bf16.mxu0 %vm1353_vm0, %v1352_v0 }
 0x2b8   : > { %v579_v14 = vpack.c.bf16 %v575_v13, %v575_v13 }
 0x2b9   : > { %v1131_v16 = vpop.eup %1130 }
 0x2ba   : > { %v576_v17 = vmul.f32 %v1131_v16, %v1123_v57  ;;  %1012 = vmatmul.mubr.msk.bf16.vlgmr.msra.gmra.mrb[8].mxu1 %vm349_vm1, %v579_v14 }
 0x2bb   : > { %1022 = vmatpush3.bf16.msra.mxu1 %v725_v15  ;;  %1023 = vmatprep.mubr.msk.bf16.mxu1 %vm1353_vm0, %v1352_v0 }
 0x2bc   : > { %v580_v18 = vpack.c.bf16 %v576_v17, %v576_v17 }
 0x2bd   : > { %v1133_v19 = vpop.eup %1132 }
 0x2be   : > { %v577_v20 = vmul.f32 %v1133_v19, %v1125_v59  ;;  %1018 = vmatmul.mubr.msk.bf16.vlgmr.msra.gmra.mrb[12].mxu0 %vm349_vm1, %v580_v18 }
 0x2c0   : > { %v581_v21 = vpack.c.bf16 %v577_v20, %v577_v20 }
 0x2c2   : > { %1024 = vmatmul.mubr.msk.bf16.vlgmr.msra.gmra.mrb[12].mxu1 %vm349_vm1, %v581_v21 }
 0x389   : > { %v623_v22 = vpop.f32.mrb[8].mxu0 }
 0x38a   : > { %767 = vst.msk [vmem:[%s331_s22] sm:$0xff] %vm349_vm1, %v623_v22  ;;  %v1007_v23 = vpop.f32.mrb[9].mxu0 }
 0x38b   : > { %v626_v24 = vpop.f32.mrb[10].mxu0 }
 0x38c   : > { %v1008_v25 = vpop.f32.mrb[11].mxu0 }
 0x38d   : > { %v669_v26 = vpop.f32.mrb[8].mxu1 }
 0x38e   : > { %768 = vst.msk [vmem:[%s331_s22 + $0x8] sm:$0xff] %vm349_vm1, %v669_v26  ;;  %v1013_v0 = vpop.f32.mrb[9].mxu1 }
 0x38f   : > { %v672_v27 = vpop.f32.mrb[10].mxu1 }
 0x390   : > { %v1014_v28 = vpop.f32.mrb[11].mxu1 }
 0x391   : > { %v715_v29 = vpop.f32.mrb[12].mxu0 }
 0x392   : > { %769 = vst.msk [vmem:[%s331_s22 + $0x10] sm:$0xff] %vm349_vm1, %v715_v29  ;;  %v1019_v30 = vpop.f32.mrb[13].mxu0 }
 0x393   : > { %v718_v31 = vpop.f32.mrb[14].mxu0 }
 0x394   : > { %v1020_v32 = vpop.f32.mrb[15].mxu0 }
 0x395   : > { %v761_v33 = vpop.f32.mrb[12].mxu1 }
 0x396   : > { %770 = vst.msk [vmem:[%s331_s22 + $0x18] sm:$0xff] %vm349_vm1, %v761_v33  ;;  %v1025_v34 = vpop.f32.mrb[13].mxu1 }
 0x397   : > { %v764_v35 = vpop.f32.mrb[14].mxu1 }
 0x398   : > { %1265 = shalt.err (!%p1262_p12)
}
 0x399   : > { %s1266_s25 = scalar_lea.hbm %s1708_s12, 512  ;;  %s1270_s5 = scalar_lea.hbm %s1810_s14, 1024 }
 0x39a   : > { %p1267_p11 = scmp.ne.s32.totalorder %s1708_s12, %s1266_s25  ;;  %p1271_p1 = scmp.lt.u32.totalorder %s1708_s12, %s1810_s14 }
 0x39b   : > { %p1272_p4 = scmp.lt.u32.totalorder %s1270_s5, %s1266_s25  ;;  %p1274_p5 = scmp.lt.u32.totalorder %s1266_s25, %s1708_s12 }
 0x39c   : > { %p1268_p0 = pnand %p1267_p11, %p1811_p10 }
 0x39d   : > { %p1273_p2 = por %p1272_p4, %p1271_p1 }
 0x39e   : > { %p1269_p9 = pneg %p1268_p0 }
 0x39f   : > { %p1275_p13 = por %p1274_p5, %p1273_p2 }
 0x3a1   : > { %p1276_p7 = pnand %p1275_p13, %p1269_p9 }
 0x3a3   : > { %1279 = shalt.err (!%p1276_p7)
}
 0x3a4   : > { %s1355_s19 = smov 128   ;;  %s1356_s27 = smov 8   ;;  %v1026_v36 = vpop.f32.mrb[15].mxu1 }
 0x3a5   : > { %1037 = dma.vmem_to_hbm [thread:$0]  (%p1811_p10), %s1702_s8, 512, %s1708_s12, %s772_s18, %s1355_s19, %s1355_s19, %s1356_s27  }
 0x3a6 PF: > { %s1812_s9 = sld [smem:[#allocation15_spill]]  ;;  %s1813_s23 = sld [smem:[#allocation20_spill]] }
 0x3a7   : > { %s1814_s15 = sld [smem:[#allocation17_spill]] }
 0x3ac   : > { %s801_s13 = sand.u32 1, %s1812_s9   ;;  %p1815_p3 = scmp.ne.s32.totalorder %s1813_s23, 0 }
 0x3ad   : > { %p1816_p6 = scmp.ge.s32.totalorder %s1814_s15, 2  ;;  %s802_s22 = scalar_lea.sflag [#allocation4], %s801_s13 }
 0x3af   : > { %p1054_p8 = pnand %p1816_p6, %p1815_p3 }
 0x3b1   : > { %1317 = dma.done.wait (!%p1054_p8), %s802_s22, 512  }
 0x3b2   : > { %1319 = vsyncadd (!%p1054_p8), %s802_s22, 4294966784  ;;  %s24_s20 = sadd.s32 1, %s1814_s15   ;;  %s1817_s6 = sld [smem:[#allocation19_spill]] }
 0x3b3   : > { %p21_p12 = scmp.ge.s32.totalorder %s24_s20, 4   ;;  %s1818_s18 = sld [smem:[#allocation16_spill]] }
 0x3b4   : > { %s1819_s19 = sld [smem:[#allocation18_spill]]  ;;  %s1820_s15 = smov %s1326_s16 }
 0x3b5   : > { %s1821_s16 = smov %s1330_s17  ;;  %23 = sbr.rel (!%p21_p12) target bundleno = 12 (0xc), region = 110 }
 0x3b8   : > { %s1822_s17 = smov %s1817_s6 }
 0x3bc   :  { %807 = vsyncpa [#allocation3], 1 }
 0x3bd   :  { %809 = vsyncpa [#allocation3 + $0x1], 1 }
 0x3be   :  { %810 = vsyncpa [#allocation6], 1 }
 0x3bf   :  { %812 = vsyncpa [#allocation6 + $0x1], 1 }
 0x3c0   :  { %813 = vsyncpa [#allocation9], 1 }
 0x3c1   :  { %814 = vsyncpa [#allocation4], 1 }
 0x3c2   :  { %816 = vsyncpa [#allocation4 + $0x1], 1 }

// kernel: _lambda_.29
= control target key start
LH: loop header
LB: loop body
LE: loop exit
PB: predicated region body
PF: predicated region fallthrough
CT: control target
= control target key end

     0   :  { %9 = vsyncpa [#allocation4], 0  ;;  %s569_s0 = inlined_call_operand.hbm [shape: f32[16,32], index: 0, kind: input, shape index: {}]   ;;  %s570_s1 = inlined_call_operand.hbm [shape: f32[1,32], index: 1, kind: input, shape index: {}]   ;;  %s571_s2 = inlined_call_operand.hbm [shape: bf16[32,64], index: 2, kind: input, shape index: {}]   ;;  %s572_s3 = inlined_call_operand.hbm [shape: bf16[64,32], index: 3, kind: input, shape index: {}]   ;;  %s573_s4 = inlined_call_operand.hbm [shape: f32[16,32], index: 4, kind: output, shape index: {}]  }
   0x1   :  { %10 = vsyncpa [#allocation7], 0 }
   0x2   :  { %11 = vsyncpa [#allocation10], 0 }
   0x3   :  { %12 = vsyncpa [#allocation5], 0  ;;  %s452_s15 = smov [#allocation6]   ;;  %s453_s17 = smov [#allocation3]  }
   0x4   :  { %s31_s16 = sshll.u32 %s452_s15, 4  ;;  %s18_s18 = sshll.u32 %s453_s17, 4  ;;  %s32_s16 = int_to_ptr.vmem [resolvable:$true] %s31_s16  ;;  %s488_s18 = int_to_ptr.vmem [resolvable:$true] %s18_s18 }
   0x5   :  { %s334_s21 = scalar_lea.hbm %s570_s1, 16 }
   0x6   :  { %p335_p0 = scmp.ne.s32.totalorder %s570_s1, %s334_s21  ;;  %p338_p1 = scmp.lt.u32.totalorder %s334_s21, %s570_s1 }
   0x8   :  { %p340_p2 = pnand %p338_p1, %p335_p0 }
   0xa   :  { %343 = shalt.err (!%p340_p2)
}
   0xb   :  { %s344_s26 = scalar_lea.vmem %s32_s16, 16  ;;  %s348_s27 = scalar_lea.vmem %s32_s16, 32 }
   0xc   :  { %p345_p3 = scmp.ne.s32.totalorder %s32_s16, %s344_s26  ;;  %p349_p4 = scmp.lt.s32.totalorder %s32_s16, %s32_s16 }
   0xd   :  { %p350_p5 = scmp.lt.s32.totalorder %s348_s27, %s344_s26 }
   0xf   :  { %p351_p6 = por %p350_p5, %p349_p4 }
  0x11   :  { %p352_p7 = pnand %p351_p6, %p345_p3 }
  0x13   :  { %355 = shalt.err (!%p352_p7)
}
  0x14   :  { %34 = dma.hbm_to_vmem [thread:$0]  %s570_s1, 16, %s32_s16, [#allocation7]  }
  0x15   :  { %s356_s6 = scalar_lea.hbm %s569_s0, 256 }
  0x16   :  { %p357_p8 = scmp.ne.s32.totalorder %s569_s0, %s356_s6  ;;  %p360_p9 = scmp.lt.u32.totalorder %s356_s6, %s569_s0 }
  0x18   :  { %p362_p10 = pnand %p360_p9, %p357_p8 }
  0x1a   :  { %365 = shalt.err (!%p362_p10)
}
  0x1b   :  { %s366_s11 = scalar_lea.vmem %s488_s18, 256  ;;  %p371_p12 = scmp.lt.s32.totalorder %s488_s18, %s488_s18 }
  0x1c   :  { %p367_p11 = scmp.ne.s32.totalorder %s488_s18, %s366_s11  ;;  %p372_p13 = scmp.lt.s32.totalorder %s366_s11, %s366_s11 }
  0x1e   :  { %p373_p0 = por %p372_p13, %p371_p12 }
  0x20   :  { %p374_p1 = pnand %p373_p0, %p367_p11 }
  0x22   :  { %377 = shalt.err (!%p374_p1)
}
  0x23   :  { %s454_s1 = smov 128   ;;  %s455_s12 = smov 8  }
  0x24   :  { %24 = dma.hbm_to_vmem [thread:$0]  %s569_s0, 256, %s488_s18, [#allocation4], %s454_s1, %s454_s1, %s455_s12  }
  0x25   :  { %s456_s15 = smov [#allocation8]   ;;  %s378_s20 = scalar_lea.hbm %s571_s2, 256 }
  0x26   :  { %s40_s16 = sshll.u32 %s456_s15, 4  ;;  %p379_p2 = scmp.ne.s32.totalorder %s571_s2, %s378_s20  ;;  %s41_s16 = int_to_ptr.vmem [resolvable:$true] %s40_s16 }
  0x27   :  { %p382_p3 = scmp.lt.u32.totalorder %s378_s20, %s571_s2 }
  0x29   :  { %p384_p4 = pnand %p382_p3, %p379_p2 }
  0x2b   :  { %387 = shalt.err (!%p384_p4)
}
  0x2c   :  { %s388_s25 = scalar_lea.vmem %s41_s16, 256  ;;  %p393_p6 = scmp.lt.s32.totalorder %s41_s16, %s41_s16 }
  0x2d   :  { %p389_p5 = scmp.ne.s32.totalorder %s41_s16, %s388_s25  ;;  %p394_p7 = scmp.lt.s32.totalorder %s388_s25, %s388_s25 }
  0x2f   :  { %p395_p8 = por %p394_p7, %p393_p6 }
  0x31   :  { %p396_p9 = pnand %p395_p8, %p389_p5 }
  0x33   :  { %399 = shalt.err (!%p396_p9)
}
  0x34   :  { %s457_s0 = smov 64   ;;  %s458_s18 = smov 4  }
  0x35   :  { %46 = dma.hbm_to_vmem [thread:$0]  %s571_s2, 256, %s41_s16, [#allocation7], %s457_s0, %s457_s0, %s458_s18  }
  0x36   :  { %s459_s28 = smov [#allocation9]   ;;  %s400_s6 = scalar_lea.hbm %s572_s3, 512 }
  0x37   :  { %s52_s29 = sshll.u32 %s459_s28, 4  ;;  %p401_p10 = scmp.ne.s32.totalorder %s572_s3, %s400_s6  ;;  %s53_s29 = int_to_ptr.vmem [resolvable:$true] %s52_s29 }
  0x38   :  { %p404_p11 = scmp.lt.u32.totalorder %s400_s6, %s572_s3 }
  0x3a   :  { %p406_p12 = pnand %p404_p11, %p401_p10 }
  0x3c   :  { %409 = shalt.err (!%p406_p12)
}
  0x3d   :  { %s410_s11 = scalar_lea.vmem %s53_s29, 512  ;;  %p415_p0 = scmp.lt.s32.totalorder %s53_s29, %s53_s29 }
  0x3e   :  { %p411_p13 = scmp.ne.s32.totalorder %s53_s29, %s410_s11  ;;  %p416_p1 = scmp.lt.s32.totalorder %s410_s11, %s410_s11 }
  0x40   :  { %p417_p2 = por %p416_p1, %p415_p0 }
  0x42   :  { %p418_p3 = pnand %p417_p2, %p411_p13 }
  0x44   :  { %421 = shalt.err (!%p418_p3)
}
  0x45   :  { %58 = dma.hbm_to_vmem [thread:$0]  %s572_s3, 512, %s53_s29, [#allocation10], %s457_s0, %s457_s0, %s458_s18  }
  0x46   :  { %444 = dma.done.wait [#allocation4], 256  }
  0x47   :  { %445 = vsyncadd [#allocation4], 4294967040 }
  0x48   :  { %446 = dma.done.wait [#allocation7], 272  }
  0x49   :  { %447 = vsyncadd [#allocation7], 4294967024 }
  0x4a   :  { %448 = dma.done.wait [#allocation10], 512  }
  0x4b   :  { %449 = vsyncadd [#allocation10], 4294966784  ;;  %v76_v0 = vld [vmem:[#allocation3] sm:$0xff]  ;;  %vm80_vm0 = vcmask 261120   ;;  %v77_v1 = vld [vmem:[#allocation3 + $0x8] sm:$0xff]  ;;  %v460_v7 = vmov 0.0  }
  0x4c   :  { %v78_v2 = vmul.f32 %v76_v0, %v76_v0  ;;  %107 = vst.msk [vmem:[#allocation11] sm:$0xff] %vm80_vm0, %v76_v0  ;;  %v79_v3 = vmul.f32 %v77_v1, %v77_v1  ;;  %108 = vst.msk [vmem:[#allocation11 + $0x8] sm:$0xff] %vm80_vm0, %v77_v1  ;;  %v324_v6 = vld [vmem:[#allocation8] sm:$0xff]   ;;  %293 = vmatprep.subr.bf16.mxu0 %v460_v7  ;;  %301 = vmatprep.subr.bf16.mxu1 %v460_v7  ;;  %v325_v8 = vld [vmem:[#allocation8 + $0x8] sm:$0xff]   ;;  %vm461_vm1 = vmmov 0   ;;  %vm208_vm2 = vcmask 523264  }
  0x4d   :  { %294 = vmatpush3.bf16.msra.mxu0 %v324_v6  ;;  %297 = vmatprep.mubr.msk.bf16.mxu0 %vm461_vm1, %v460_v7  ;;  %v326_v9 = vld [vmem:[#allocation9] sm:$0xff]   ;;  %v327_v10 = vld [vmem:[#allocation9 + $0x8] sm:$0xff]   ;;  %v328_v26 = vld [vmem:[#allocation9 + $0x10] sm:$0xff]   ;;  %s462_s3 = smov [#allocation11]  }
  0x4e   :  { %v81_v4 = vsel %vm80_vm0, %v78_v2, 0.0  ;;  %v84_v5 = vsel %vm80_vm0, %v79_v3, 0.0  ;;  %295 = vmatprep.subr.bf16.mxu0 %v460_v7  ;;  %309 = vmatprep.mubr.msk.bf16.mxu1 %vm461_vm1, %v460_v7  ;;  %v276_v20 = vld [vmem:[#allocation6] ss:$0 sm:$0xff]  ;;  %v329_v27 = vld [vmem:[#allocation9 + $0x18] sm:$0xff]   ;;  %s262_s14 = sshll.u32 %s462_s3, 4  ;;  %s263_s14 = int_to_ptr.vmem [resolvable:$true] %s262_s14 }
  0x4f   :  { %82 = vadd.xlane.f32.xlu0 %v81_v4  ;;  %302 = vmatpush3.bf16.msra.mxu1 %v326_v9  ;;  %s422_s15 = scalar_lea.vmem %s263_s14, 256  ;;  %p427_p5 = scmp.lt.s32.totalorder %s263_s14, %s263_s14 }
  0x50   :  { %303 = vmatprep.subr.bf16.mxu1 %v460_v7  ;;  %p423_p4 = scmp.ne.s32.totalorder %s263_s14, %s422_s15  ;;  %p428_p6 = scmp.lt.s32.totalorder %s422_s15, %s422_s15 }
  0x51   :  { %296 = vmatpush3.bf16.msra.mxu0 %v325_v8 }
  0x52   :  { %p429_p7 = por %p428_p6, %p427_p5 }
  0x53   :  { %85 = vadd.xlane.f32.xlu0 %v84_v5  ;;  %304 = vmatpush3.bf16.msra.mxu1 %v327_v10  ;;  %v173_v35 = vld [vmem:[#allocation11] sm:$0xff]  ;;  %v174_v37 = vld [vmem:[#allocation11 + $0x8] sm:$0xff] }
  0x54   :  { %305 = vmatprep.subr.bf16.mxu1 %v460_v7  ;;  %p430_p8 = pnand %p429_p7, %p423_p4 }
  0x57   :  { %306 = vmatpush3.bf16.msra.mxu1 %v328_v26 }
  0x58   :  { %307 = vmatprep.subr.bf16.mxu1 %v460_v7 }
  0x5b   :  { %308 = vmatpush3.bf16.msra.mxu1 %v329_v27 }
  0xdc   :  { %v83_v11 = vpop.xlane.xlu0 %82 }
  0xdd   :  { %v88_v12 = vmul.f32 0.03125, %v83_v11 }
  0xdf   :  { %v90_v13 = vadd.f32 1e-06, %v88_v12 }
  0xe0   :  { %v86_v14 = vpop.xlane.xlu0 %85 }
  0xe1   :  { %330 = vrsqrt.f32 %v90_v13  ;;  %v89_v15 = vmul.f32 0.03125, %v86_v14 }
  0xe3   :  { %v91_v16 = vadd.f32 1e-06, %v89_v15 }
  0xe5   :  { %332 = vrsqrt.f32 %v91_v16 }
  0xeb   :  { %v331_v17 = vpop.eup %330 }
  0xec   :  { %v94_v18 = vmul.f32 %v331_v17, %v76_v0 }
  0xee   :  { %v103_v22 = vmul.f32 %v276_v20, %v94_v18 }
  0xef   :  { %v333_v19 = vpop.eup %332 }
  0xf0   :  { %v95_v21 = vmul.f32 %v333_v19, %v77_v1 }
  0xf2   :  { %v104_v23 = vmul.f32 %v276_v20, %v95_v21 }
  0xf4   :  { %v105_v24 = vpack.c.bf16 %v104_v23, %v103_v22 }
  0xf6   :  { %106 = vst.msk [vmem:[#allocation2] sm:$0xff] %vm80_vm0, %v105_v24 }
  0xfd   :  { %v109_v25 = vld [vmem:[#allocation2] sm:$0xff] }
  0xfe   :  { %298 = vmatmul.mubr.msk.bf16.vlgmr.msra.gmra.mrb[0].mxu0 %vm80_vm0, %v109_v25 }
 0x1d1   :  { %v164_v28 = vpop.f32.mrb[0].mxu0 }
 0x1d2   :  { %v299_v29 = vpop.f32.mrb[1].mxu0  ;;  %v171_v31 = vmax.f32 %v164_v28, 0.0 }
 0x1d3   :  { %v167_v30 = vpop.f32.mrb[2].mxu0 }
 0x1d4   :  { %v172_v32 = vmax.f32 %v167_v30, 0.0  ;;  %v300_v33 = vpop.f32.mrb[3].mxu0 }
 0x1d6   :  { %v175_v34 = vpack.c.bf16 %v172_v32, %v171_v31 }
 0x1d8   :  { %310 = vmatmul.mubr.msk.bf16.vlgmr.msra.gmra.mrb[0].mxu1 %vm208_vm2, %v175_v34 }
 0x2ab   :  { %v246_v36 = vpop.f32.mrb[0].mxu1 }
 0x2ac   :  { %v253_v38 = vadd.f32 %v246_v36, %v173_v35  ;;  %v311_v39 = vpop.f32.mrb[1].mxu1 }
 0x2ad   :  { %v249_v40 = vpop.f32.mrb[2].mxu1 }
 0x2ae   :  { %255 = vst.msk [vmem:[#allocation11] sm:$0xff] %vm80_vm0, %v253_v38  ;;  %v254_v41 = vadd.f32 %v249_v40, %v174_v37  ;;  %v312_v42 = vpop.f32.mrb[3].mxu1 }
 0x2b0   :  { %256 = vst.msk [vmem:[#allocation11 + $0x8] sm:$0xff] %vm80_vm0, %v254_v41 }
 0x2b1   :  { %433 = shalt.err (!%p430_p8)
}
 0x2b2   :  { %s434_s19 = scalar_lea.hbm %s573_s4, 256 }
 0x2b3   :  { %p435_p9 = scmp.ne.s32.totalorder %s573_s4, %s434_s19  ;;  %p438_p10 = scmp.lt.u32.totalorder %s434_s19, %s573_s4 }
 0x2b5   :  { %p440_p11 = pnand %p438_p10, %p435_p9 }
 0x2b7   :  { %443 = shalt.err (!%p440_p11)
}
 0x2b8   :  { %268 = dma.vmem_to_hbm [thread:$0]  %s263_s14, 256, %s573_s4, [#allocation5], %s454_s1, %s454_s1, %s455_s12  }
 0x2b9   :  { %450 = dma.done.wait [#allocation5], 256  }
 0x2ba   :  { %451 = vsyncadd [#allocation5], 4294967040 }
 0x2bb   :  { %272 = vsyncpa [#allocation4], 1 }
 0x2bc   :  { %273 = vsyncpa [#allocation7], 1 }
 0x2bd   :  { %274 = vsyncpa [#allocation10], 1 }
 0x2be   :  { %275 = vsyncpa [#allocation5], 1 }

// kernel: _lambda_.34
= control target key start
LH: loop header
LB: loop body
LE: loop exit
PB: predicated region body
PF: predicated region fallthrough
CT: control target
= control target key end

     0   :  { %7 = vsyncpa [#allocation3], 0  ;;  %s235_s0 = inlined_call_operand.hbm [shape: f32[16,32], index: 0, kind: input, shape index: {}]   ;;  %s236_s1 = inlined_call_operand.hbm [shape: f32[1,32], index: 1, kind: input, shape index: {}]   ;;  %s237_s2 = inlined_call_operand.hbm [shape: f32[16,32], index: 2, kind: output, shape index: {}]  }
   0x1   :  { %8 = vsyncpa [#allocation6], 0 }
   0x2   :  { %9 = vsyncpa [#allocation4], 0  ;;  %s169_s9 = smov [#allocation2]   ;;  %s97_s13 = scalar_lea.hbm %s235_s0, 256 }
   0x3   :  { %s15_s10 = sshll.u32 %s169_s9, 4  ;;  %p98_p0 = scmp.ne.s32.totalorder %s235_s0, %s97_s13  ;;  %s16_s10 = int_to_ptr.vmem [resolvable:$true] %s15_s10 }
   0x4   :  { %p101_p1 = scmp.lt.u32.totalorder %s97_s13, %s235_s0 }
   0x6   :  { %p103_p2 = pnand %p101_p1, %p98_p0 }
   0x8   :  { %106 = shalt.err (!%p103_p2)
}
   0x9   :  { %s107_s18 = scalar_lea.vmem %s16_s10, 256  ;;  %p112_p4 = scmp.lt.s32.totalorder %s16_s10, %s16_s10 }
   0xa   :  { %p108_p3 = scmp.ne.s32.totalorder %s16_s10, %s107_s18  ;;  %p113_p5 = scmp.lt.s32.totalorder %s107_s18, %s107_s18 }
   0xc   :  { %p114_p6 = por %p113_p5, %p112_p4 }
   0xe   :  { %p115_p7 = pnand %p114_p6, %p108_p3 }
  0x10   :  { %118 = shalt.err (!%p115_p7)
}
  0x11   :  { %s170_s19 = smov 128   ;;  %s171_s20 = smov 8  }
  0x12   :  { %21 = dma.hbm_to_vmem [thread:$0]  %s235_s0, 256, %s16_s10, [#allocation3], %s170_s19, %s170_s19, %s171_s20  }
  0x13   :  { %s172_s23 = smov [#allocation5]   ;;  %s119_s27 = scalar_lea.hbm %s236_s1, 16 }
  0x14   :  { %s28_s24 = sshll.u32 %s172_s23, 4  ;;  %p120_p8 = scmp.ne.s32.totalorder %s236_s1, %s119_s27  ;;  %s29_s24 = int_to_ptr.vmem [resolvable:$true] %s28_s24 }
  0x15   :  { %p123_p9 = scmp.lt.u32.totalorder %s119_s27, %s236_s1 }
  0x17   :  { %p125_p10 = pnand %p123_p9, %p120_p8 }
  0x19   :  { %128 = shalt.err (!%p125_p10)
}
  0x1a   :  { %s129_s4 = scalar_lea.vmem %s29_s24, 16  ;;  %s133_s0 = scalar_lea.vmem %s29_s24, 32 }
  0x1b   :  { %p130_p11 = scmp.ne.s32.totalorder %s29_s24, %s129_s4  ;;  %p134_p12 = scmp.lt.s32.totalorder %s29_s24, %s29_s24 }
  0x1c   :  { %p135_p13 = scmp.lt.s32.totalorder %s133_s0, %s129_s4 }
  0x1e   :  { %p136_p0 = por %p135_p13, %p134_p12 }
  0x20   :  { %p137_p1 = pnand %p136_p0, %p130_p11 }
  0x22   :  { %140 = shalt.err (!%p137_p1)
}
  0x23   :  { %31 = dma.hbm_to_vmem [thread:$0]  %s236_s1, 16, %s29_s24, [#allocation6]  }
  0x24   :  { %163 = dma.done.wait [#allocation3], 256  }
  0x25   :  { %164 = vsyncadd [#allocation3], 4294967040 }
  0x26   :  { %165 = dma.done.wait [#allocation6], 16  }
  0x27   :  { %166 = vsyncadd [#allocation6], 4294967280  ;;  %v38_v0 = vld [vmem:[#allocation2] sm:$0xff]  ;;  %vm42_vm0 = vcmask 261120   ;;  %v39_v1 = vld [vmem:[#allocation2 + $0x8] sm:$0xff]  ;;  %s173_s1 = smov [#allocation7]  }
  0x28   :  { %v40_v2 = vmul.f32 %v38_v0, %v38_v0  ;;  %v41_v3 = vmul.f32 %v39_v1, %v39_v1  ;;  %v87_v13 = vld [vmem:[#allocation5] ss:$0 sm:$0xff]  ;;  %s74_s7 = sshll.u32 %s173_s1, 4  ;;  %s75_s7 = int_to_ptr.vmem [resolvable:$true] %s74_s7 }
  0x29   :  { %s141_s8 = scalar_lea.vmem %s75_s7, 256  ;;  %p146_p3 = scmp.lt.s32.totalorder %s75_s7, %s75_s7 }
  0x2a   :  { %v43_v4 = vsel %vm42_vm0, %v40_v2, 0.0  ;;  %v46_v5 = vsel %vm42_vm0, %v41_v3, 0.0  ;;  %p142_p2 = scmp.ne.s32.totalorder %s75_s7, %s141_s8  ;;  %p147_p4 = scmp.lt.s32.totalorder %s141_s8, %s141_s8 }
  0x2b   :  { %44 = vadd.xlane.f32.xlu0 %v43_v4 }
  0x2c   :  { %p148_p5 = por %p147_p4, %p146_p3 }
  0x2e   :  { %p149_p6 = pnand %p148_p5, %p142_p2 }
  0x2f   :  { %47 = vadd.xlane.f32.xlu0 %v46_v5 }
  0xb8   :  { %v45_v6 = vpop.xlane.xlu0 %44 }
  0xb9   :  { %v50_v7 = vmul.f32 0.03125, %v45_v6 }
  0xbb   :  { %v52_v8 = vadd.f32 1e-06, %v50_v7 }
  0xbc   :  { %v48_v9 = vpop.xlane.xlu0 %47 }
  0xbd   :  { %93 = vrsqrt.f32 %v52_v8  ;;  %v51_v10 = vmul.f32 0.03125, %v48_v9 }
  0xbf   :  { %v53_v11 = vadd.f32 1e-06, %v51_v10 }
  0xc1   :  { %95 = vrsqrt.f32 %v53_v11 }
  0xc7   :  { %v94_v12 = vpop.eup %93 }
  0xc8   :  { %v56_v14 = vmul.f32 %v94_v12, %v38_v0 }
  0xca   :  { %v65_v15 = vmul.f32 %v87_v13, %v56_v14 }
  0xcb   :  { %v96_v16 = vpop.eup %95 }
  0xcc   :  { %v57_v17 = vmul.f32 %v96_v16, %v39_v1  ;;  %67 = vst.msk [vmem:[#allocation7] sm:$0xff] %vm42_vm0, %v65_v15 }
  0xce   :  { %v66_v18 = vmul.f32 %v87_v13, %v57_v17 }
  0xd0   :  { %68 = vst.msk [vmem:[#allocation7 + $0x8] sm:$0xff] %vm42_vm0, %v66_v18 }
  0xd1   :  { %152 = shalt.err (!%p149_p6)
}
  0xd2   :  { %s153_s11 = scalar_lea.hbm %s237_s2, 256 }
  0xd3   :  { %p154_p7 = scmp.ne.s32.totalorder %s237_s2, %s153_s11  ;;  %p157_p8 = scmp.lt.u32.totalorder %s153_s11, %s237_s2 }
  0xd5   :  { %p159_p9 = pnand %p157_p8, %p154_p7 }
  0xd7   :  { %162 = shalt.err (!%p159_p9)
}
  0xd8   :  { %80 = dma.vmem_to_hbm [thread:$0]  %s75_s7, 256, %s237_s2, [#allocation4], %s170_s19, %s170_s19, %s171_s20  }
  0xd9   :  { %167 = dma.done.wait [#allocation4], 256  }
  0xda   :  { %168 = vsyncadd [#allocation4], 4294967040 }
  0xdb   :  { %84 = vsyncpa [#allocation3], 1 }
  0xdc   :  { %85 = vsyncpa [#allocation6], 1 }
  0xdd   :  { %86 = vsyncpa [#allocation4], 1 }

// kernel: _lambda_.39
= control target key start
LH: loop header
LB: loop body
LE: loop exit
PB: predicated region body
PF: predicated region fallthrough
CT: control target
= control target key end

     0   :  { %7 = vsyncpa [#allocation3], 0  ;;  %s289_s0 = inlined_call_operand.hbm [shape: f32[16,32], index: 0, kind: input, shape index: {}]   ;;  %s290_s1 = inlined_call_operand.hbm [shape: bf16[32,64], index: 1, kind: input, shape index: {}]   ;;  %s291_s2 = inlined_call_operand.hbm [shape: f32[16,64], index: 2, kind: output, shape index: {}]  }
   0x1   :  { %8 = vsyncpa [#allocation6], 0 }
   0x2   :  { %9 = vsyncpa [#allocation4], 0  ;;  %s223_s9 = smov [#allocation2]   ;;  %s151_s13 = scalar_lea.hbm %s289_s0, 256 }
   0x3   :  { %s15_s10 = sshll.u32 %s223_s9, 4  ;;  %p152_p0 = scmp.ne.s32.totalorder %s289_s0, %s151_s13  ;;  %s16_s10 = int_to_ptr.vmem [resolvable:$true] %s15_s10 }
   0x4   :  { %p155_p1 = scmp.lt.u32.totalorder %s151_s13, %s289_s0 }
   0x6   :  { %p157_p2 = pnand %p155_p1, %p152_p0 }
   0x8   :  { %160 = shalt.err (!%p157_p2)
}
   0x9   :  { %s161_s18 = scalar_lea.vmem %s16_s10, 256  ;;  %p166_p4 = scmp.lt.s32.totalorder %s16_s10, %s16_s10 }
   0xa   :  { %p162_p3 = scmp.ne.s32.totalorder %s16_s10, %s161_s18  ;;  %p167_p5 = scmp.lt.s32.totalorder %s161_s18, %s161_s18 }
   0xc   :  { %p168_p6 = por %p167_p5, %p166_p4 }
   0xe   :  { %p169_p7 = pnand %p168_p6, %p162_p3 }
  0x10   :  { %172 = shalt.err (!%p169_p7)
}
  0x11   :  { %s224_s19 = smov 128   ;;  %s225_s20 = smov 8  }
  0x12   :  { %21 = dma.hbm_to_vmem [thread:$0]  %s289_s0, 256, %s16_s10, [#allocation3], %s224_s19, %s224_s19, %s225_s20  }
  0x13   :  { %s226_s23 = smov [#allocation5]   ;;  %s173_s27 = scalar_lea.hbm %s290_s1, 256 }
  0x14   :  { %s27_s24 = sshll.u32 %s226_s23, 4  ;;  %p174_p8 = scmp.ne.s32.totalorder %s290_s1, %s173_s27  ;;  %s28_s24 = int_to_ptr.vmem [resolvable:$true] %s27_s24 }
  0x15   :  { %p177_p9 = scmp.lt.u32.totalorder %s173_s27, %s290_s1 }
  0x17   :  { %p179_p10 = pnand %p177_p9, %p174_p8 }
  0x19   :  { %182 = shalt.err (!%p179_p10)
}
  0x1a   :  { %s183_s4 = scalar_lea.vmem %s28_s24, 256  ;;  %p188_p12 = scmp.lt.s32.totalorder %s28_s24, %s28_s24 }
  0x1b   :  { %p184_p11 = scmp.ne.s32.totalorder %s28_s24, %s183_s4  ;;  %p189_p13 = scmp.lt.s32.totalorder %s183_s4, %s183_s4 }
  0x1d   :  { %p190_p0 = por %p189_p13, %p188_p12 }
  0x1f   :  { %p191_p1 = pnand %p190_p0, %p184_p11 }
  0x21   :  { %194 = shalt.err (!%p191_p1)
}
  0x22   :  { %s227_s0 = smov 64   ;;  %s228_s5 = smov 4  }
  0x23   :  { %33 = dma.hbm_to_vmem [thread:$0]  %s290_s1, 256, %s28_s24, [#allocation6], %s227_s0, %s227_s0, %s228_s5  }
  0x24   :  { %217 = dma.done.wait [#allocation3], 256  }
  0x25   :  { %218 = vsyncadd [#allocation3], 4294967040 }
  0x26   :  { %219 = dma.done.wait [#allocation6], 256  }
  0x27   :  { %220 = vsyncadd [#allocation6], 4294967040  ;;  %v229_v0 = vmov 0.0   ;;  %vm230_vm0 = vmmov 0   ;;  %v149_v1 = vld [vmem:[#allocation5] sm:$0xff]   ;;  %v150_v2 = vld [vmem:[#allocation5 + $0x8] sm:$0xff]  }
  0x28   :  { %132 = vmatprep.subr.bf16.mxu0 %v229_v0  ;;  %136 = vmatprep.mubr.msk.bf16.mxu0 %vm230_vm0, %v229_v0  ;;  %v41_v3 = vld [vmem:[#allocation2] sm:$0xff]  ;;  %v42_v4 = vld [vmem:[#allocation2 + $0x8] sm:$0xff]  ;;  %vm60_vm1 = vcmask 261120   ;;  %vm105_vm2 = vcmask 523264   ;;  %s231_s1 = smov [#allocation7]  }
  0x29   :  { %133 = vmatpush3.bf16.msra.mxu0 %v149_v1  ;;  %v43_v5 = vpack.c.bf16 %v42_v4, %v41_v3  ;;  %s113_s8 = sshll.u32 %s231_s1, 4  ;;  %s114_s8 = int_to_ptr.vmem [resolvable:$true] %s113_s8 }
  0x2a   :  { %134 = vmatprep.subr.bf16.mxu0 %v229_v0  ;;  %s195_s9 = scalar_lea.vmem %s114_s8, 256  ;;  %p200_p3 = scmp.lt.s32.totalorder %s114_s8, %s114_s8 }
  0x2b   :  { %p196_p2 = scmp.ne.s32.totalorder %s114_s8, %s195_s9  ;;  %p201_p4 = scmp.lt.s32.totalorder %s195_s9, %s195_s9 }
  0x2d   :  { %135 = vmatpush3.bf16.msra.mxu0 %v150_v2  ;;  %p202_p5 = por %p201_p4, %p200_p3 }
  0x2f   :  { %p203_p6 = pnand %p202_p5, %p196_p2 }
  0x30   :  { %137 = vmatmul.mubr.msk.bf16.vlgmr.msra.gmra.mrb[0].mxu0 %vm60_vm1, %v43_v5 }
 0x103   :  { %v98_v6 = vpop.f32.mrb[0].mxu0 }
 0x104   :  { %106 = vst.msk [vmem:[#allocation7] sm:$0xff] %vm105_vm2, %v98_v6  ;;  %v138_v7 = vpop.f32.mrb[1].mxu0 }
 0x105   :  { %v101_v8 = vpop.f32.mrb[2].mxu0 }
 0x106   :  { %107 = vst.msk [vmem:[#allocation7 + $0x8] sm:$0xff] %vm105_vm2, %v101_v8  ;;  %v139_v9 = vpop.f32.mrb[3].mxu0 }
 0x107   :  { %206 = shalt.err (!%p203_p6)
}
 0x108   :  { %s207_s12 = scalar_lea.hbm %s291_s2, 256 }
 0x109   :  { %p208_p7 = scmp.ne.s32.totalorder %s291_s2, %s207_s12  ;;  %p211_p8 = scmp.lt.u32.totalorder %s207_s12, %s291_s2 }
 0x10b   :  { %p213_p9 = pnand %p211_p8, %p208_p7 }
 0x10d   :  { %216 = shalt.err (!%p213_p9)
}
 0x10e   :  { %119 = dma.vmem_to_hbm [thread:$0]  %s114_s8, 256, %s291_s2, [#allocation4], %s224_s19, %s224_s19, %s225_s20  }
 0x10f   :  { %221 = dma.done.wait [#allocation4], 256  }
 0x110   :  { %222 = vsyncadd [#allocation4], 4294967040 }
 0x111   :  { %123 = vsyncpa [#allocation3], 1 }
 0x112   :  { %124 = vsyncpa [#allocation6], 1 }
 0x113   :  { %125 = vsyncpa [#allocation4], 1 }

// kernel: _lambda_.38
= control target key start
LH: loop header
LB: loop body
LE: loop exit
PB: predicated region body
PF: predicated region fallthrough
CT: control target
= control target key end

     0   :  { %8 = vsyncpa [#allocation3], 0  ;;  %s386_s0 = inlined_call_operand.hbm [shape: f32[16,32], index: 0, kind: input, shape index: {}]   ;;  %s387_s1 = inlined_call_operand.hbm [shape: f32[1,32], index: 1, kind: input, shape index: {}]   ;;  %s388_s2 = inlined_call_operand.hbm [shape: bf16[32,32], index: 2, kind: input, shape index: {}]   ;;  %s389_s3 = inlined_call_operand.hbm [shape: f32[16,32], index: 3, kind: output, shape index: {}]  }
   0x1   :  { %9 = vsyncpa [#allocation6], 0 }
   0x2   :  { %10 = vsyncpa [#allocation4], 0  ;;  %s290_s12 = smov [#allocation5]   ;;  %s291_s14 = smov [#allocation2]  }
   0x3   :  { %s29_s13 = sshll.u32 %s290_s12, 4  ;;  %s16_s15 = sshll.u32 %s291_s14, 4  ;;  %s30_s13 = int_to_ptr.vmem [resolvable:$true] %s29_s13  ;;  %s320_s15 = int_to_ptr.vmem [resolvable:$true] %s16_s15 }
   0x4   :  { %s196_s18 = scalar_lea.hbm %s387_s1, 16 }
   0x5   :  { %p197_p0 = scmp.ne.s32.totalorder %s387_s1, %s196_s18  ;;  %p200_p1 = scmp.lt.u32.totalorder %s196_s18, %s387_s1 }
   0x7   :  { %p202_p2 = pnand %p200_p1, %p197_p0 }
   0x9   :  { %205 = shalt.err (!%p202_p2)
}
   0xa   :  { %s206_s23 = scalar_lea.vmem %s30_s13, 16  ;;  %s210_s24 = scalar_lea.vmem %s30_s13, 32 }
   0xb   :  { %p207_p3 = scmp.ne.s32.totalorder %s30_s13, %s206_s23  ;;  %p211_p4 = scmp.lt.s32.totalorder %s30_s13, %s30_s13 }
   0xc   :  { %p212_p5 = scmp.lt.s32.totalorder %s210_s24, %s206_s23 }
   0xe   :  { %p213_p6 = por %p212_p5, %p211_p4 }
  0x10   :  { %p214_p7 = pnand %p213_p6, %p207_p3 }
  0x12   :  { %217 = shalt.err (!%p214_p7)
}
  0x13   :  { %32 = dma.hbm_to_vmem [thread:$0]  %s387_s1, 16, %s30_s13, [#allocation6]  }
  0x14   :  { %s218_s29 = scalar_lea.hbm %s386_s0, 256 }
  0x15   :  { %p219_p8 = scmp.ne.s32.totalorder %s386_s0, %s218_s29  ;;  %p222_p9 = scmp.lt.u32.totalorder %s218_s29, %s386_s0 }
  0x17   :  { %p224_p10 = pnand %p222_p9, %p219_p8 }
  0x19   :  { %227 = shalt.err (!%p224_p10)
}
  0x1a   :  { %s228_s7 = scalar_lea.vmem %s320_s15, 256  ;;  %p233_p12 = scmp.lt.s32.totalorder %s320_s15, %s320_s15 }
  0x1b   :  { %p229_p11 = scmp.ne.s32.totalorder %s320_s15, %s228_s7  ;;  %p234_p13 = scmp.lt.s32.totalorder %s228_s7, %s228_s7 }
  0x1d   :  { %p235_p0 = por %p234_p13, %p233_p12 }
  0x1f   :  { %p236_p1 = pnand %p235_p0, %p229_p11 }
  0x21   :  { %239 = shalt.err (!%p236_p1)
}
  0x22   :  { %s292_s1 = smov 128   ;;  %s293_s8 = smov 8  }
  0x23   :  { %22 = dma.hbm_to_vmem [thread:$0]  %s386_s0, 256, %s320_s15, [#allocation3], %s292_s1, %s292_s1, %s293_s8  }
  0x24   :  { %s294_s11 = smov [#allocation7]   ;;  %s240_s16 = scalar_lea.hbm %s388_s2, 256 }
  0x25   :  { %s38_s12 = sshll.u32 %s294_s11, 4  ;;  %p241_p2 = scmp.ne.s32.totalorder %s388_s2, %s240_s16  ;;  %s39_s12 = int_to_ptr.vmem [resolvable:$true] %s38_s12 }
  0x26   :  { %p244_p3 = scmp.lt.u32.totalorder %s240_s16, %s388_s2 }
  0x28   :  { %p246_p4 = pnand %p244_p3, %p241_p2 }
  0x2a   :  { %249 = shalt.err (!%p246_p4)
}
  0x2b   :  { %s250_s21 = scalar_lea.vmem %s39_s12, 256  ;;  %p255_p6 = scmp.lt.s32.totalorder %s39_s12, %s39_s12 }
  0x2c   :  { %p251_p5 = scmp.ne.s32.totalorder %s39_s12, %s250_s21  ;;  %p256_p7 = scmp.lt.s32.totalorder %s250_s21, %s250_s21 }
  0x2e   :  { %p257_p8 = por %p256_p7, %p255_p6 }
  0x30   :  { %p258_p9 = pnand %p257_p8, %p251_p5 }
  0x32   :  { %261 = shalt.err (!%p258_p9)
}
  0x33   :  { %s295_s0 = smov 64   ;;  %s296_s15 = smov 4  }
  0x34   :  { %44 = dma.hbm_to_vmem [thread:$0]  %s388_s2, 256, %s39_s12, [#allocation6], %s295_s0, %s295_s0, %s296_s15  }
  0x35   :  { %284 = dma.done.wait [#allocation3], 256  }
  0x36   :  { %285 = vsyncadd [#allocation3], 4294967040 }
  0x37   :  { %286 = dma.done.wait [#allocation6], 272  }
  0x38   :  { %287 = vsyncadd [#allocation6], 4294967024  ;;  %v55_v0 = vld [vmem:[#allocation2] sm:$0xff]  ;;  %vm59_vm0 = vcmask 261120   ;;  %v56_v1 = vld [vmem:[#allocation2 + $0x8] sm:$0xff]  ;;  %v297_v7 = vmov 0.0  }
  0x39   :  { %v57_v2 = vmul.f32 %v55_v0, %v55_v0  ;;  %v58_v3 = vmul.f32 %v56_v1, %v56_v1  ;;  %v190_v6 = vld [vmem:[#allocation7] sm:$0xff]   ;;  %172 = vmatprep.subr.bf16.mxu0 %v297_v7  ;;  %vm298_vm1 = vmmov 0   ;;  %v191_v8 = vld [vmem:[#allocation7 + $0x8] sm:$0xff]   ;;  %v165_v18 = vld [vmem:[#allocation5] ss:$0 sm:$0xff]  ;;  %s299_s2 = smov [#allocation8]  }
  0x3a   :  { %176 = vmatprep.mubr.msk.bf16.mxu0 %vm298_vm1, %v297_v7  ;;  %173 = vmatpush3.bf16.msra.mxu0 %v190_v6  ;;  %s152_s24 = sshll.u32 %s299_s2, 4  ;;  %s153_s24 = int_to_ptr.vmem [resolvable:$true] %s152_s24 }
  0x3b   :  { %v60_v4 = vsel %vm59_vm0, %v57_v2, 0.0  ;;  %v63_v5 = vsel %vm59_vm0, %v58_v3, 0.0  ;;  %174 = vmatprep.subr.bf16.mxu0 %v297_v7  ;;  %s262_s25 = scalar_lea.vmem %s153_s24, 256  ;;  %p267_p11 = scmp.lt.s32.totalorder %s153_s24, %s153_s24 }
  0x3c   :  { %61 = vadd.xlane.f32.xlu0 %v60_v4  ;;  %p263_p10 = scmp.ne.s32.totalorder %s153_s24, %s262_s25  ;;  %p268_p12 = scmp.lt.s32.totalorder %s262_s25, %s262_s25 }
  0x3e   :  { %175 = vmatpush3.bf16.msra.mxu0 %v191_v8  ;;  %p269_p13 = por %p268_p12, %p267_p11 }
  0x40   :  { %64 = vadd.xlane.f32.xlu0 %v63_v5  ;;  %p270_p0 = pnand %p269_p13, %p263_p10 }
  0xc9   :  { %v62_v9 = vpop.xlane.xlu0 %61 }
  0xca   :  { %v67_v10 = vmul.f32 0.03125, %v62_v9 }
  0xcc   :  { %v69_v11 = vadd.f32 1e-06, %v67_v10 }
  0xcd   :  { %v65_v12 = vpop.xlane.xlu0 %64 }
  0xce   :  { %192 = vrsqrt.f32 %v69_v11  ;;  %v68_v13 = vmul.f32 0.03125, %v65_v12 }
  0xd0   :  { %v70_v14 = vadd.f32 1e-06, %v68_v13 }
  0xd2   :  { %194 = vrsqrt.f32 %v70_v14 }
  0xd8   :  { %v193_v15 = vpop.eup %192 }
  0xd9   :  { %v73_v16 = vmul.f32 %v193_v15, %v55_v0 }
  0xdb   :  { %v82_v20 = vmul.f32 %v165_v18, %v73_v16 }
  0xdc   :  { %v195_v17 = vpop.eup %194 }
  0xdd   :  { %v74_v19 = vmul.f32 %v195_v17, %v56_v1 }
  0xdf   :  { %v83_v21 = vmul.f32 %v165_v18, %v74_v19 }
  0xe1   :  { %v84_v22 = vpack.c.bf16 %v83_v21, %v82_v20 }
  0xe3   :  { %177 = vmatmul.mubr.msk.bf16.vlgmr.msra.gmra.mrb[0].mxu0 %vm59_vm0, %v84_v22 }
 0x1b6   :  { %v138_v23 = vpop.f32.mrb[0].mxu0 }
 0x1b7   :  { %145 = vst.msk [vmem:[#allocation8] sm:$0xff] %vm59_vm0, %v138_v23  ;;  %v178_v24 = vpop.f32.mrb[1].mxu0 }
 0x1b8   :  { %v141_v25 = vpop.f32.mrb[2].mxu0 }
 0x1b9   :  { %146 = vst.msk [vmem:[#allocation8 + $0x8] sm:$0xff] %vm59_vm0, %v141_v25  ;;  %v179_v26 = vpop.f32.mrb[3].mxu0 }
 0x1ba   :  { %273 = shalt.err (!%p270_p0)
}
 0x1bb   :  { %s274_s28 = scalar_lea.hbm %s389_s3, 256 }
 0x1bc   :  { %p275_p1 = scmp.ne.s32.totalorder %s389_s3, %s274_s28  ;;  %p278_p2 = scmp.lt.u32.totalorder %s274_s28, %s389_s3 }
 0x1be   :  { %p280_p3 = pnand %p278_p2, %p275_p1 }
 0x1c0   :  { %283 = shalt.err (!%p280_p3)
}
 0x1c1   :  { %158 = dma.vmem_to_hbm [thread:$0]  %s153_s24, 256, %s389_s3, [#allocation4], %s292_s1, %s292_s1, %s293_s8  }
 0x1c2   :  { %288 = dma.done.wait [#allocation4], 256  }
 0x1c3   :  { %289 = vsyncadd [#allocation4], 4294967040 }
 0x1c4   :  { %162 = vsyncpa [#allocation3], 1 }
 0x1c5   :  { %163 = vsyncpa [#allocation6], 1 }
 0x1c6   :  { %164 = vsyncpa [#allocation4], 1 }

// kernel: _lambda_.51
= control target key start
LH: loop header
LB: loop body
LE: loop exit
PB: predicated region body
PF: predicated region fallthrough
CT: control target
= control target key end

     0   :  { %7 = vsyncpa [#allocation3], 0  ;;  %s184_s0 = inlined_call_operand.hbm [shape: f32[16,32], index: 0, kind: input, shape index: {}]   ;;  %s185_s1 = inlined_call_operand.hbm [shape: f32[1,32], index: 1, kind: input, shape index: {}]   ;;  %s186_s2 = inlined_call_operand.vmem [shape: f32[16,32], index: 2, kind: output, shape index: {}]  }
   0x1   :  { %8 = vsyncpa [#allocation5], 0  ;;  %s131_s9 = smov [#allocation2]   ;;  %s83_s13 = scalar_lea.hbm %s184_s0, 256 }
   0x2   :  { %s14_s10 = sshll.u32 %s131_s9, 4  ;;  %p84_p0 = scmp.ne.s32.totalorder %s184_s0, %s83_s13  ;;  %s15_s10 = int_to_ptr.vmem [resolvable:$true] %s14_s10 }
   0x3   :  { %p87_p1 = scmp.lt.u32.totalorder %s83_s13, %s184_s0 }
   0x5   :  { %p89_p2 = pnand %p87_p1, %p84_p0 }
   0x7   :  { %92 = shalt.err (!%p89_p2)
}
   0x8   :  { %s93_s18 = scalar_lea.vmem %s15_s10, 256  ;;  %p98_p4 = scmp.lt.s32.totalorder %s15_s10, %s15_s10 }
   0x9   :  { %p94_p3 = scmp.ne.s32.totalorder %s15_s10, %s93_s18  ;;  %p99_p5 = scmp.lt.s32.totalorder %s93_s18, %s93_s18 }
   0xb   :  { %p100_p6 = por %p99_p5, %p98_p4 }
   0xd   :  { %p101_p7 = pnand %p100_p6, %p94_p3 }
   0xf   :  { %104 = shalt.err (!%p101_p7)
}
  0x10   :  { %s132_s19 = smov 128   ;;  %s133_s20 = smov 8  }
  0x11   :  { %20 = dma.hbm_to_vmem [thread:$0]  %s184_s0, 256, %s15_s10, [#allocation3], %s132_s19, %s132_s19, %s133_s20  }
  0x12   :  { %s134_s23 = smov [#allocation4]   ;;  %s105_s27 = scalar_lea.hbm %s185_s1, 16 }
  0x13   :  { %s27_s24 = sshll.u32 %s134_s23, 4  ;;  %p106_p8 = scmp.ne.s32.totalorder %s185_s1, %s105_s27  ;;  %s28_s24 = int_to_ptr.vmem [resolvable:$true] %s27_s24 }
  0x14   :  { %p109_p9 = scmp.lt.u32.totalorder %s105_s27, %s185_s1 }
  0x16   :  { %p111_p10 = pnand %p109_p9, %p106_p8 }
  0x18   :  { %114 = shalt.err (!%p111_p10)
}
  0x19   :  { %s115_s4 = scalar_lea.vmem %s28_s24, 16  ;;  %s119_s0 = scalar_lea.vmem %s28_s24, 32 }
  0x1a   :  { %p116_p11 = scmp.ne.s32.totalorder %s28_s24, %s115_s4  ;;  %p120_p12 = scmp.lt.s32.totalorder %s28_s24, %s28_s24 }
  0x1b   :  { %p121_p13 = scmp.lt.s32.totalorder %s119_s0, %s115_s4 }
  0x1d   :  { %p122_p0 = por %p121_p13, %p120_p12 }
  0x1f   :  { %p123_p1 = pnand %p122_p0, %p116_p11 }
  0x21   :  { %126 = shalt.err (!%p123_p1)
}
  0x22   :  { %30 = dma.hbm_to_vmem [thread:$0]  %s185_s1, 16, %s28_s24, [#allocation5]  }
  0x23   :  { %127 = dma.done.wait [#allocation3], 256  }
  0x24   :  { %128 = vsyncadd [#allocation3], 4294967040 }
  0x25   :  { %129 = dma.done.wait [#allocation5], 16  }
  0x26   :  { %130 = vsyncadd [#allocation5], 4294967280  ;;  %v37_v0 = vld [vmem:[#allocation2] sm:$0xff]  ;;  %vm41_vm0 = vcmask 261120   ;;  %v38_v1 = vld [vmem:[#allocation2 + $0x8] sm:$0xff] }
  0x27   :  { %v39_v2 = vmul.f32 %v37_v0, %v37_v0  ;;  %v40_v3 = vmul.f32 %v38_v1, %v38_v1  ;;  %v74_v13 = vld [vmem:[#allocation4] ss:$0 sm:$0xff] }
  0x29   :  { %v42_v4 = vsel %vm41_vm0, %v39_v2, 0.0  ;;  %v45_v5 = vsel %vm41_vm0, %v40_v3, 0.0 }
  0x2a   :  { %43 = vadd.xlane.f32.xlu0 %v42_v4 }
  0x2e   :  { %46 = vadd.xlane.f32.xlu0 %v45_v5 }
  0xb7   :  { %v44_v6 = vpop.xlane.xlu0 %43 }
  0xb8   :  { %v49_v7 = vmul.f32 0.03125, %v44_v6 }
  0xba   :  { %v51_v8 = vadd.f32 1e-06, %v49_v7 }
  0xbb   :  { %v47_v9 = vpop.xlane.xlu0 %46 }
  0xbc   :  { %79 = vrsqrt.f32 %v51_v8  ;;  %v50_v10 = vmul.f32 0.03125, %v47_v9 }
  0xbe   :  { %v52_v11 = vadd.f32 1e-06, %v50_v10 }
  0xc0   :  { %81 = vrsqrt.f32 %v52_v11 }
  0xc6   :  { %v80_v12 = vpop.eup %79 }
  0xc7   :  { %v55_v14 = vmul.f32 %v80_v12, %v37_v0 }
  0xc9   :  { %v64_v15 = vmul.f32 %v74_v13, %v55_v14 }
  0xca   :  { %v82_v16 = vpop.eup %81 }
  0xcb   :  { %66 = vst.msk [vmem:[%s186_s2] sm:$0xff] %vm41_vm0, %v64_v15  ;;  %v56_v17 = vmul.f32 %v82_v16, %v38_v1 }
  0xcd   :  { %v65_v18 = vmul.f32 %v74_v13, %v56_v17 }
  0xcf   :  { %67 = vst.msk [vmem:[%s186_s2 + $0x8] sm:$0xff] %vm41_vm0, %v65_v18 }
  0xd0   :  { %72 = vsyncpa [#allocation3], 1 }
  0xd1   :  { %73 = vsyncpa [#allocation5], 1 }

// kernel: _lambda_.40
= control target key start
LH: loop header
LB: loop body
LE: loop exit
PB: predicated region body
PF: predicated region fallthrough
CT: control target
= control target key end

     0   :  { %s1600_s0 = inlined_call_operand.hbm [shape: bf16[2,4,8,8], index: 0, kind: input, shape index: {}]   ;;  %s1601_s1 = inlined_call_operand.hbm [shape: bf16[2,4,8,8], index: 1, kind: input, shape index: {}]   ;;  %s1602_s2 = inlined_call_operand.hbm [shape: bf16[2,4,8,8], index: 2, kind: input, shape index: {}]   ;;  %s1603_s3 = inlined_call_operand.hbm [shape: f32[2,4,8,8], index: 3, kind: output, shape index: {}]  }
   0x1   :  { %1613 = sst [smem:[#allocation15_spill]] %s1601_s1 }
   0x2   :  { %8 = vsyncpa [#allocation3], 0 }
   0x3   :  { %10 = vsyncpa [#allocation3 + $0x1], 0 }
   0x4   :  { %11 = vsyncpa [#allocation6], 0 }
   0x5   :  { %13 = vsyncpa [#allocation6 + $0x1], 0 }
   0x6   :  { %14 = vsyncpa [#allocation4], 0 }
   0x7   :  { %16 = vsyncpa [#allocation4 + $0x1], 0  ;;  %s1262_s12 = smov 0   ;;  %s1264_s13 = smov 0  }
   0x8   :  { %s1266_s14 = smov 0   ;;  %s1268_s15 = smov 0  }
   0x9   :  { %s1270_s16 = smov 0   ;;  %s1272_s17 = smov 0  }
   0xa LB: > { %1614 = sst [smem:[#allocation12_spill]] %s1226_s16  ;;  %s1293_s18 = sadd.s32 4294967295, %s1230_s17   ;;  %s1230_s17 = sphi %s1272_s17, %s22_s17   ;;  %s1226_s16 = sphi %s1270_s16, %s1637_s16   ;;  %s1222_s15 = sphi %s1268_s15, %s1636_s15   ;;  %s1218_s14 = sphi %s1266_s14, %s1640_s14   ;;  %s1214_s13 = sphi %s1264_s13, %s1639_s13   ;;  %s1210_s12 = sphi %s1262_s12, %s1638_s12  }
   0xb   : > { %s862_s19 = sadd.s32 4294967294, %s1230_s17   ;;  %s34_s20 = sadd.s32 1, %s1226_s16 }
   0xc   : > { %s43_s21 = sadd.s32 1, %s1218_s14  ;;  %p36_p0 = scmp.ge.s32.totalorder %s34_s20, 2 }
   0xd   : > { %p50_p1 = scmp.ne.s32.totalorder %s1218_s14, %s1214_s13  ;;  %p51_p2 = scmp.eq.s32.totalorder %s1230_s17, 0 }
   0xe   : > { %p56_p3 = scmp.ne.s32.totalorder %s1214_s13, %s1210_s12  ;;  %s1642_s20 = smov (%p36_p0, %s34_s20), 0 }
   0xf   : > { %1615 = sst [smem:[#allocation13_spill]] %s1642_s20  ;;  %p1305_p4 = por %p51_p2, %p50_p1 }
  0x10   : > { %p57_p5 = scmp.eq.s32.totalorder %s1293_s18, 0  ;;  %s38_s23 = ssub.s32 %s1226_s16, %s1642_s20 }
  0x11   : > { %p134_p6 = scmp.eq.s32.totalorder %s1293_s18, 1  ;;  %p41_p7 = scmp.eq.s32.totalorder %s38_s23, 0 }
  0x12   : > { %p1313_p8 = por %p57_p5, %p56_p3  ;;  %p140_p10 = scmp.eq.s32.totalorder %s862_s19, 1 }
  0x13   : > { %p1317_p9 = por %p134_p6, %p50_p1  ;;  %p982_p13 = scmp.lt.s32.totalorder %s1230_s17, 2 }
  0x14   : > { %s1617_s24 = scalar_select %p1313_p8, 1, 0 }
  0x15   : > { %s1618_s25 = scalar_select %p1317_p9, 1, 0 }
  0x16   : > { %s1322_s26 = scalar_select %p41_p7, %s1218_s14, %s43_s21  }
  0x17   : > { %p1324_p11 = por %p140_p10, %p56_p3  ;;  %s1606_s28 = sand.u32 1, %s1218_s14  }
  0x18   : > { %1619 = sst [smem:[#allocation14_spill]] %s1322_s26  ;;  %s1333_s29 = sshll.u32 %s1606_s28, 4 }
  0x19   : > { %s1620_s27 = scalar_select %p1324_p11, 1, 0 }
  0x1a   : > { %s1336_s30 = sshll.u32 %s1226_s16, 8  ;;  %p1340_p0 = pnand %p982_p13, %p1305_p4 }
  0x1b   : > { %s182_s5 = sand.u32 1, %s1230_s17   ;;  %s1622_s1 = sld [smem:[#allocation15_spill]] }
  0x1c   : > { %s186_s9 = scalar_lea.vmem [#allocation5], %s1333_s29  ;;  %s1356_s11 = scalar_lea.sflag [#allocation6], %s182_s5 }
  0x1d   : > { %s193_s10 = sshll.u32 %s186_s9, 4  ;;  %p1362_p4 = pneg %p1340_p0  ;;  %s1353_s10 = int_to_ptr.vmem [resolvable:$true] %s193_s10 }
  0x21   : > { %s1349_s8 = scalar_lea.hbm %s1622_s1, %s1336_s30  ;;  %s1059_s6 = scalar_lea.hbm %s1622_s1, 512 }
  0x22   : > { %s1054_s19 = scalar_lea.hbm %s1349_s8, 256  ;;  %p1060_p7 = scmp.lt.u32.totalorder %s1349_s8, %s1622_s1 }
  0x23   : > { %p1055_p3 = scmp.ne.s32.totalorder %s1349_s8, %s1054_s19  ;;  %p1061_p10 = scmp.lt.u32.totalorder %s1059_s6, %s1054_s19 }
  0x24   : > { %p1063_p12 = scmp.lt.u32.totalorder %s1054_s19, %s1349_s8 }
  0x25   : > { %p1057_p5 = pnand %p1362_p4, %p1055_p3  ;;  %p1062_p13 = por %p1061_p10, %p1060_p7 }
  0x27   : > { %p1058_p6 = pneg %p1057_p5  ;;  %p1064_p1 = por %p1063_p12, %p1062_p13 }
  0x29   : > { %p1065_p2 = pnand %p1064_p1, %p1058_p6 }
  0x2b   : > { %1068 = shalt.err (!%p1065_p2)
}
  0x2c   : > { %s1069_s5 = scalar_lea.vmem %s1353_s10, 256  ;;  %s1232_s22 = smov [#allocation5]  }
  0x2d   : > { %p1070_p3 = scmp.ne.s32.totalorder %s1353_s10, %s1069_s5  ;;  %s1074_s23 = sshll.u32 %s1232_s22, 4  ;;  %s1075_s23 = int_to_ptr.vmem [resolvable:$false] %s1074_s23 }
  0x2e   : > { %s1076_s7 = scalar_lea.vmem %s1075_s23, 512  ;;  %p1077_p9 = scmp.lt.s32.totalorder %s1353_s10, %s1075_s23 }
  0x2f   : > { %p1072_p5 = pnand %p1070_p3, %p1362_p4  ;;  %p1078_p8 = scmp.lt.s32.totalorder %s1076_s7, %s1069_s5 }
  0x31   : > { %p1073_p11 = pneg %p1072_p5  ;;  %p1079_p7 = por %p1078_p8, %p1077_p9 }
  0x33   : > { %p1080_p10 = pnand %p1079_p7, %p1073_p11 }
  0x35   : > { %1083 = shalt.err (!%p1080_p10)
}
  0x36   : > { %s1607_s19 = smov 64   ;;  %s1609_s6 = smov 4  }
  0x37   : > { %974 = dma.hbm_to_vmem [thread:$0]  (!%p1340_p0), %s1349_s8, 256, %s1353_s10, %s1356_s11, %s1607_s19, %s1607_s19, %s1609_s6  }
  0x38   : > { %p1624_p8 = scmp.lt.s32.totalorder %s1230_s17, 3  ;;  %p1625_p9 = scmp.ge.s32.totalorder %s1230_s17, 1 }
  0x39   : > { %s1401_s23 = scalar_lea.hbm %s1600_s0, %s1336_s30  ;;  %s164_s7 = scalar_lea.vmem [#allocation2], %s1333_s29 }
  0x3a   : > { %p1393_p11 = pnand %p1625_p9, %p1624_p8  ;;  %s172_s28 = sshll.u32 %s164_s7, 4  ;;  %s1404_s28 = int_to_ptr.vmem [resolvable:$true] %s172_s28 }
  0x3b   : > { %s1410_s19 = scalar_lea.hbm %s1602_s2, %s1336_s30  ;;  %s1627_s6 = sand.u32 1, %s1218_s14  }
  0x3c   : > { %s1626_s9 = scalar_select %p1393_p11, 1, 0 }
  0x3d   : > { %s1414_s1 = scalar_lea.sflag [#allocation3], %s1627_s6  ;;  %s1084_s20 = scalar_lea.hbm %s1401_s23, 256 }
  0x3e   : > { %p1085_p12 = scmp.ne.s32.totalorder %s1401_s23, %s1084_s20  ;;  %s1089_s16 = scalar_lea.hbm %s1600_s0, 512 }
  0x3f   : > { %p1090_p6 = scmp.lt.u32.totalorder %s1401_s23, %s1600_s0  ;;  %p1091_p13 = scmp.lt.u32.totalorder %s1089_s16, %s1084_s20 }
  0x40   : > { %p1087_p1 = pnand %p1085_p12, %p1362_p4  ;;  %p1093_p5 = scmp.lt.u32.totalorder %s1084_s20, %s1401_s23 }
  0x41   : > { %p1092_p3 = por %p1091_p13, %p1090_p6 }
  0x42   : > { %p1088_p2 = pneg %p1087_p1 }
  0x43   : > { %p1094_p7 = por %p1093_p5, %p1092_p3 }
  0x45   : > { %p1095_p10 = pnand %p1094_p7, %p1088_p2 }
  0x47   : > { %1098 = shalt.err (!%p1095_p10)
}
  0x48   : > { %s1099_s30 = scalar_lea.vmem %s1404_s28, 256  ;;  %s1235_s6 = smov [#allocation2]  }
  0x49   : > { %p1100_p8 = scmp.ne.s32.totalorder %s1404_s28, %s1099_s30  ;;  %s1104_s8 = sshll.u32 %s1235_s6, 4  ;;  %s1105_s8 = int_to_ptr.vmem [resolvable:$false] %s1104_s8 }
  0x4a   : > { %s1106_s26 = scalar_lea.vmem %s1105_s8, 512  ;;  %p1107_p1 = scmp.lt.s32.totalorder %s1404_s28, %s1105_s8 }
  0x4b   : > { %p1102_p9 = pnand %p1100_p8, %p1362_p4  ;;  %p1108_p11 = scmp.lt.s32.totalorder %s1106_s26, %s1099_s30 }
  0x4d   : > { %p1103_p12 = pneg %p1102_p9  ;;  %p1109_p6 = por %p1108_p11, %p1107_p1 }
  0x4f   : > { %p1110_p13 = pnand %p1109_p6, %p1103_p12 }
  0x51   : > { %1113 = shalt.err (!%p1110_p13)
}
  0x52   : > { %s1628_s16 = smov 4   ;;  %s1629_s20 = smov 64  }
  0x53   : > { %971 = dma.hbm_to_vmem [thread:$0]  (!%p1340_p0), %s1401_s23, 256, %s1404_s28, %s1414_s1, %s1629_s20, %s1629_s20, %s1628_s16  }
  0x54   : > { %s207_s10 = scalar_lea.vmem [#allocation7], %s1333_s29  ;;  %s1114_s22 = scalar_lea.hbm %s1410_s19, 256 }
  0x55   : > { %s214_s5 = sshll.u32 %s207_s10, 4  ;;  %p1115_p11 = scmp.ne.s32.totalorder %s1410_s19, %s1114_s22  ;;  %s1442_s5 = int_to_ptr.vmem [resolvable:$true] %s214_s5 }
  0x56   : > { %s1119_s6 = scalar_lea.hbm %s1602_s2, 512  ;;  %p1120_p5 = scmp.lt.u32.totalorder %s1410_s19, %s1602_s2 }
  0x57   : > { %p1117_p2 = pnand %p1115_p11, %p1362_p4  ;;  %p1121_p7 = scmp.lt.u32.totalorder %s1119_s6, %s1114_s22 }
  0x58   : > { %p1123_p8 = scmp.lt.u32.totalorder %s1114_s22, %s1410_s19 }
  0x59   : > { %p1118_p3 = pneg %p1117_p2  ;;  %p1122_p10 = por %p1121_p7, %p1120_p5 }
  0x5b   : > { %p1124_p9 = por %p1123_p8, %p1122_p10 }
  0x5d   : > { %p1125_p12 = pnand %p1124_p9, %p1118_p3 }
  0x5f   : > { %1128 = shalt.err (!%p1125_p12)
}
  0x60   : > { %s1129_s1 = scalar_lea.vmem %s1442_s5, 256  ;;  %s1236_s28 = smov [#allocation7]  }
  0x61   : > { %p1130_p1 = scmp.ne.s32.totalorder %s1442_s5, %s1129_s1  ;;  %s1134_s29 = sshll.u32 %s1236_s28, 4  ;;  %s1135_s29 = int_to_ptr.vmem [resolvable:$false] %s1134_s29 }
  0x62   : > { %s1136_s23 = scalar_lea.vmem %s1135_s29, 512  ;;  %p1137_p11 = scmp.lt.s32.totalorder %s1442_s5, %s1135_s29 }
  0x63   : > { %p1132_p6 = pnand %p1130_p1, %p1362_p4  ;;  %p1138_p2 = scmp.lt.s32.totalorder %s1136_s23, %s1129_s1 }
  0x65   : > { %p1133_p13 = pneg %p1132_p6  ;;  %p1139_p5 = por %p1138_p2, %p1137_p11 }
  0x67   : > { %p1140_p7 = pnand %p1139_p5, %p1133_p13 }
  0x69   : > { %1143 = shalt.err (!%p1140_p7)
}
  0x6a   : > { %977 = dma.hbm_to_vmem [thread:$0]  (!%p1340_p0), %s1410_s19, 256, %s1442_s5, %s1356_s11, %s1629_s20, %s1629_s20, %s1628_s16  }
  0x6b   : > { %p1630_p4 = scmp.ne.s32.totalorder %s1626_s9, 0 }
  0x6c   : > { %s1472_s21 = sand.u32 (!%p1630_p4), 1, %s1214_s13   ;;  %p1631_p3 = scmp.ne.s32.totalorder (!%p1630_p4), %s1617_s24, 0 }
  0x6d   : > { %226 = sbr.rel (%p1630_p4) target bundleno = 898 (0x382), region = 32  ;;  %s1475_s10 = sshll.u32 (!%p1630_p4), %s1472_s21, 4 }
  0x6e   : > { %s229_s4 = scalar_lea.sflag (!%p1630_p4), [#allocation3], %s1472_s21  ;;  %s1479_s22 = scalar_lea.vmem (!%p1630_p4), [#allocation2], %s1475_s10 }
  0x74   : > { %1197 = dma.done.wait (%p1631_p3), %s229_s4, 256  }
  0x75   : > { %1199 = vsyncadd (%p1631_p3), %s229_s4, 4294967040  ;;  %s237_s11 = sand.u32 1, %s1293_s18   ;;  %s241_s9 = scalar_lea.vmem [#allocation5], %s1475_s10 }
  0x76   : > { %s238_s19 = scalar_lea.sflag [#allocation6], %s237_s11 }
  0x77   : > { %1201 = dma.done.wait (%p1631_p3), %s238_s19, 512  }
  0x78   : > { %1203 = vsyncadd (%p1631_p3), %s238_s19, 4294966784  ;;  %v1237_v0 = vmov 0.0   ;;  %vm1238_vm0 = vmmov 0   ;;  %vm296_vm1 = vcmask 64512   ;;  %v288_v1 = vld [vmem:[%s241_s9] sm:$0xf] }
  0x79   : > { %912 = vmatprep.subr.bf16.mxu0 %v1237_v0  ;;  %918 = vmatprep.subr.bf16.mxu1 %v1237_v0  ;;  %v289_v2 = vld [vmem:[%s241_s9 + $0x4] sm:$0xf]  ;;  %v301_v3 = vsel %vm296_vm1, %v288_v1, 0  ;;  %v290_v5 = vld [vmem:[%s241_s9 + $0x8] sm:$0xf]  ;;  %s250_s18 = scalar_lea.vmem [#allocation7], %s1475_s10 }
  0x7a   : > { %914 = vmatprep.mubr.msk.bf16.mxu0 %vm1238_vm0, %v1237_v0  ;;  %920 = vmatprep.mubr.msk.bf16.mxu1 %vm1238_vm0, %v1237_v0  ;;  %v347_v4 = vsel %vm296_vm1, %v289_v2, 0  ;;  %v291_v6 = vld [vmem:[%s241_s9 + $0xc] sm:$0xf]  ;;  %v284_v7 = vld [vmem:[%s1479_s22] sm:$0xf]  ;;  %v393_v9 = vsel %vm296_vm1, %v290_v5, 0 }
  0x7b   : > { %913 = vmatpush3.bf16.xpose.msra.mxu0 %v301_v3  ;;  %919 = vmatpush3.bf16.xpose.msra.mxu1 %v347_v4  ;;  %v285_v8 = vld [vmem:[%s1479_s22 + $0x4] sm:$0xf]  ;;  %v439_v10 = vsel %vm296_vm1, %v291_v6, 0  ;;  %v286_v11 = vld [vmem:[%s1479_s22 + $0x8] sm:$0xf]  ;;  %vm532_vm2 = vcmask 1043456  }
  0x7c   : > { %924 = vmatprep.subr.bf16.mxu0 %v1237_v0  ;;  %930 = vmatprep.subr.bf16.mxu1 %v1237_v0  ;;  %v287_v12 = vld [vmem:[%s1479_s22 + $0xc] sm:$0xf]  ;;  %v292_v53 = vld [vmem:[%s250_s18] sm:$0xf]  ;;  %v293_v55 = vld [vmem:[%s250_s18 + $0x4] sm:$0xf] }
  0x7d   : > { %v534_v54 = vsel %vm532_vm2, %v292_v53, 0  ;;  %v580_v56 = vsel %vm532_vm2, %v293_v55, 0  ;;  %v294_v57 = vld [vmem:[%s250_s18 + $0x8] sm:$0xf]  ;;  %v295_v59 = vld [vmem:[%s250_s18 + $0xc] sm:$0xf] }
  0x7e   : > { %v626_v58 = vsel %vm532_vm2, %v294_v57, 0  ;;  %v672_v60 = vsel %vm532_vm2, %v295_v59, 0  ;;  %s878_s24 = sshll.u32 %s1472_s21, 5  ;;  %s895_s5 = sshll.u32 %s1222_s15, 9 }
  0x7f   : > { %s282_s16 = scalar_lea.vmem [#allocation8], %s878_s24  ;;  %s1550_s6 = scalar_lea.hbm %s1603_s3, %s895_s5 }
  0x80   : > { %s733_s20 = sshll.u32 %s282_s16, 4  ;;  %s719_s15 = scalar_lea.sflag [#allocation4], %s1472_s21  ;;  %s1544_s20 = int_to_ptr.vmem [resolvable:$true] %s733_s20 }
  0x81   : > { %s1144_s8 = scalar_lea.vmem %s1544_s20, 512  ;;  %p1632_p10 = scmp.ne.s32.totalorder %s1618_s25, 0 }
  0x82   : > { %915 = vmatmul.mubr.msk.bf16.vlgmr.msra.gmra.mrb[0].mxu0 %vm296_vm1, %v284_v7  ;;  %921 = vmatmul.mubr.msk.bf16.vlgmr.msra.gmra.mrb[0].mxu1 %vm296_vm1, %v285_v8  ;;  %p1145_p0 = scmp.ne.s32.totalorder %s1544_s20, %s1144_s8  ;;  %s1239_s26 = smov [#allocation8]  }
  0x83   : > { %925 = vmatpush3.bf16.xpose.msra.mxu0 %v393_v9  ;;  %931 = vmatpush3.bf16.xpose.msra.mxu1 %v439_v10  ;;  %s1148_s1 = sshll.u32 %s1239_s26, 4  ;;  %s1149_s1 = int_to_ptr.vmem [resolvable:$false] %s1148_s1 }
  0x84   : > { %926 = vmatprep.mubr.msk.bf16.mxu0 %vm1238_vm0, %v1237_v0  ;;  %932 = vmatprep.mubr.msk.bf16.mxu1 %vm1238_vm0, %v1237_v0  ;;  %p1146_p8 = pnand %p1145_p0, %p1632_p10  ;;  %s1150_s28 = scalar_lea.vmem %s1149_s1, 1024 }
  0x85   : > { %936 = vmatprep.subr.bf16.mxu0 %v1237_v0  ;;  %942 = vmatprep.subr.bf16.mxu1 %v1237_v0  ;;  %p1151_p12 = scmp.lt.s32.totalorder %s1544_s20, %s1149_s1  ;;  %p1152_p1 = scmp.lt.s32.totalorder %s1150_s28, %s1144_s8 }
  0x86   : > { %p1147_p9 = pneg %p1146_p8 }
  0x87   : > { %p1153_p6 = por %p1152_p1, %p1151_p12 }
  0x89   : > { %p1154_p13 = pnand %p1153_p6, %p1147_p9 }
  0x8a   : > { %927 = vmatmul.mubr.msk.bf16.vlgmr.msra.gmra.mrb[4].mxu0 %vm296_vm1, %v286_v11  ;;  %933 = vmatmul.mubr.msk.bf16.vlgmr.msra.gmra.mrb[4].mxu1 %vm296_vm1, %v287_v12 }
  0x8b   : > { %938 = vmatprep.mubr.msk.bf16.mxu0 %vm1238_vm0, %v1237_v0  ;;  %944 = vmatprep.mubr.msk.bf16.mxu1 %vm1238_vm0, %v1237_v0 }
  0x8c   : > { %937 = vmatpush3.bf16.msra.mxu0 %v534_v54  ;;  %943 = vmatpush3.bf16.msra.mxu1 %v580_v56 }
  0x8d   : > { %948 = vmatprep.subr.bf16.mxu0 %v1237_v0  ;;  %954 = vmatprep.subr.bf16.mxu1 %v1237_v0 }
 0x155   : > { %v337_v13 = vpop.f32.mrb[0].mxu0  ;;  %v383_v14 = vpop.f32.mrb[0].mxu1 }
 0x156   : > { %v916_v15 = vpop.f32.mrb[1].mxu0  ;;  %v481_v16 = vsel %vm296_vm1, %v337_v13, -inf  ;;  %v922_v17 = vpop.f32.mrb[1].mxu1  ;;  %v484_v22 = vsel %vm296_vm1, %v383_v14, -inf }
 0x157   : > { %482 = vmax.xlane.f32.xlu0 %v481_v16  ;;  %v340_v18 = vpop.f32.mrb[2].mxu0  ;;  %v386_v19 = vpop.f32.mrb[2].mxu1 }
 0x158   : > { %v917_v20 = vpop.f32.mrb[3].mxu0  ;;  %v923_v21 = vpop.f32.mrb[3].mxu1 }
 0x15b   : > { %485 = vmax.xlane.f32.xlu0 %v484_v22 }
 0x15d   : > { %v429_v23 = vpop.f32.mrb[4].mxu0  ;;  %v475_v24 = vpop.f32.mrb[4].mxu1 }
 0x15e   : > { %v928_v25 = vpop.f32.mrb[5].mxu0  ;;  %v487_v26 = vsel %vm296_vm1, %v429_v23, -inf  ;;  %v934_v27 = vpop.f32.mrb[5].mxu1  ;;  %v490_v32 = vsel %vm296_vm1, %v475_v24, -inf }
 0x15f   : > { %488 = vmax.xlane.f32.xlu1 %v487_v26  ;;  %v432_v28 = vpop.f32.mrb[6].mxu0  ;;  %v478_v29 = vpop.f32.mrb[6].mxu1 }
 0x160   : > { %v929_v30 = vpop.f32.mrb[7].mxu0  ;;  %v935_v31 = vpop.f32.mrb[7].mxu1 }
 0x163   : > { %491 = vmax.xlane.f32.xlu1 %v490_v32 }
 0x1e4   : > { %v483_v33 = vpop.xlane.xlu0 %482 }
 0x1e5   : > { %v493_v34 = vsub.f32 %v337_v13, %v483_v33 }
 0x1e7   : > { %v497_v35 = vmul.f32 1.442695, %v493_v34 }
 0x1e8   : > { %v486_v36 = vpop.xlane.xlu0 %485 }
 0x1e9   : > { %1038 = vpow2.f32 %v497_v35  ;;  %v494_v37 = vsub.f32 %v383_v14, %v486_v36 }
 0x1eb   : > { %v499_v38 = vmul.f32 1.442695, %v494_v37 }
 0x1ec   : > { %v489_v39 = vpop.xlane.xlu1 %488 }
 0x1ed   : > { %1040 = vpow2.f32 %v499_v38  ;;  %v495_v40 = vsub.f32 %v429_v23, %v489_v39 }
 0x1ef   : > { %v501_v41 = vmul.f32 1.442695, %v495_v40 }
 0x1f0   : > { %v492_v42 = vpop.xlane.xlu1 %491 }
 0x1f1   : > { %1042 = vpow2.f32 %v501_v41  ;;  %v496_v43 = vsub.f32 %v475_v24, %v492_v42 }
 0x1f3   : > { %v1039_v44 = vpop.eup %1038  ;;  %v503_v45 = vmul.f32 1.442695, %v496_v43 }
 0x1f4   : > { %v505_v46 = vsel %vm296_vm1, %v1039_v44, 0.0 }
 0x1f5   : > { %1044 = vpow2.f32 %v503_v45  ;;  %506 = vadd.xlane.f32.xlu0 %v505_v46 }
 0x1f7   : > { %v1041_v47 = vpop.eup %1040 }
 0x1f8   : > { %v508_v48 = vsel %vm296_vm1, %v1041_v47, 0.0 }
 0x1f9   : > { %509 = vadd.xlane.f32.xlu1 %v508_v48 }
 0x1fb   : > { %v1043_v49 = vpop.eup %1042 }
 0x1fc   : > { %v511_v50 = vsel %vm296_vm1, %v1043_v49, 0.0 }
 0x1fd   : > { %512 = vadd.xlane.f32.xlu0 %v511_v50 }
 0x1ff   : > { %v1045_v51 = vpop.eup %1044 }
 0x200   : > { %v514_v52 = vsel %vm296_vm1, %v1045_v51, 0.0 }
 0x201   : > { %515 = vadd.xlane.f32.xlu1 %v514_v52 }
 0x282   : > { %v507_v61 = vpop.xlane.xlu0 %506 }
 0x283   : > { %1046 = vrcp.f32 %v507_v61 }
 0x286   : > { %v510_v62 = vpop.xlane.xlu1 %509 }
 0x287   : > { %1048 = vrcp.f32 %v510_v62 }
 0x28a   : > { %v513_v63 = vpop.xlane.xlu0 %512 }
 0x28b   : > { %1050 = vrcp.f32 %v513_v63 }
 0x28d   : > { %v1047_v1 = vpop.eup %1046 }
 0x28e   : > { %v521_v2 = vmul.f32 %v1047_v1, %v1039_v44  ;;  %v516_v3 = vpop.xlane.xlu1 %515 }
 0x28f   : > { %1052 = vrcp.f32 %v516_v3 }
 0x290   : > { %v525_v4 = vpack.c.bf16 %v521_v2, %v521_v2 }
 0x291   : > { %v1049_v5 = vpop.eup %1048 }
 0x292   : > { %v522_v6 = vmul.f32 %v1049_v5, %v1041_v47  ;;  %939 = vmatmul.mubr.msk.bf16.vlgmr.msra.gmra.mrb[8].mxu0 %vm296_vm1, %v525_v4 }
 0x293   : > { %949 = vmatpush3.bf16.msra.mxu0 %v626_v58  ;;  %950 = vmatprep.mubr.msk.bf16.mxu0 %vm1238_vm0, %v1237_v0 }
 0x294   : > { %v526_v7 = vpack.c.bf16 %v522_v6, %v522_v6 }
 0x295   : > { %v1051_v8 = vpop.eup %1050 }
 0x296   : > { %v523_v9 = vmul.f32 %v1051_v8, %v1043_v49  ;;  %945 = vmatmul.mubr.msk.bf16.vlgmr.msra.gmra.mrb[8].mxu1 %vm296_vm1, %v526_v7 }
 0x297   : > { %955 = vmatpush3.bf16.msra.mxu1 %v672_v60  ;;  %956 = vmatprep.mubr.msk.bf16.mxu1 %vm1238_vm0, %v1237_v0 }
 0x298   : > { %v527_v10 = vpack.c.bf16 %v523_v9, %v523_v9 }
 0x299   : > { %v1053_v11 = vpop.eup %1052 }
 0x29a   : > { %v524_v12 = vmul.f32 %v1053_v11, %v1045_v51  ;;  %951 = vmatmul.mubr.msk.bf16.vlgmr.msra.gmra.mrb[12].mxu0 %vm296_vm1, %v527_v10 }
 0x29c   : > { %v528_v13 = vpack.c.bf16 %v524_v12, %v524_v12 }
 0x29e   : > { %957 = vmatmul.mubr.msk.bf16.vlgmr.msra.gmra.mrb[12].mxu1 %vm296_vm1, %v528_v13 }
 0x365   : > { %v570_v14 = vpop.f32.mrb[8].mxu0 }
 0x366   : > { %714 = vst.msk [vmem:[%s282_s16] sm:$0xff] %vm296_vm1, %v570_v14  ;;  %v940_v15 = vpop.f32.mrb[9].mxu0 }
 0x367   : > { %v573_v16 = vpop.f32.mrb[10].mxu0 }
 0x368   : > { %v941_v17 = vpop.f32.mrb[11].mxu0 }
 0x369   : > { %v616_v18 = vpop.f32.mrb[8].mxu1 }
 0x36a   : > { %715 = vst.msk [vmem:[%s282_s16 + $0x8] sm:$0xff] %vm296_vm1, %v616_v18  ;;  %v946_v0 = vpop.f32.mrb[9].mxu1 }
 0x36b   : > { %v619_v19 = vpop.f32.mrb[10].mxu1 }
 0x36c   : > { %v947_v20 = vpop.f32.mrb[11].mxu1 }
 0x36d   : > { %v662_v21 = vpop.f32.mrb[12].mxu0 }
 0x36e   : > { %716 = vst.msk [vmem:[%s282_s16 + $0x10] sm:$0xff] %vm296_vm1, %v662_v21  ;;  %v952_v22 = vpop.f32.mrb[13].mxu0 }
 0x36f   : > { %v665_v23 = vpop.f32.mrb[14].mxu0 }
 0x370   : > { %v953_v24 = vpop.f32.mrb[15].mxu0 }
 0x371   : > { %v708_v25 = vpop.f32.mrb[12].mxu1 }
 0x372   : > { %717 = vst.msk [vmem:[%s282_s16 + $0x18] sm:$0xff] %vm296_vm1, %v708_v25  ;;  %v958_v26 = vpop.f32.mrb[13].mxu1 }
 0x373   : > { %v711_v27 = vpop.f32.mrb[14].mxu1 }
 0x374   : > { %1157 = shalt.err (!%p1154_p13)
}
 0x375   : > { %s1158_s29 = scalar_lea.hbm %s1550_s6, 512  ;;  %s1162_s4 = scalar_lea.hbm %s1603_s3, 1024 }
 0x376   : > { %p1159_p11 = scmp.ne.s32.totalorder %s1550_s6, %s1158_s29  ;;  %p1163_p7 = scmp.lt.u32.totalorder %s1550_s6, %s1603_s3 }
 0x377   : > { %p1164_p4 = scmp.lt.u32.totalorder %s1162_s4, %s1158_s29  ;;  %p1166_p0 = scmp.lt.u32.totalorder %s1158_s29, %s1550_s6 }
 0x378   : > { %p1160_p2 = pnand %p1159_p11, %p1632_p10 }
 0x379   : > { %p1165_p3 = por %p1164_p4, %p1163_p7 }
 0x37a   : > { %p1161_p5 = pneg %p1160_p2 }
 0x37b   : > { %p1167_p8 = por %p1166_p0, %p1165_p3 }
 0x37d   : > { %p1168_p9 = pnand %p1167_p8, %p1161_p5 }
 0x37f   : > { %1171 = shalt.err (!%p1168_p9)
}
 0x380   : > { %s1240_s19 = smov 128   ;;  %s1241_s9 = smov 8   ;;  %v959_v28 = vpop.f32.mrb[15].mxu1 }
 0x381   : > { %966 = dma.vmem_to_hbm [thread:$0]  (%p1632_p10), %s1544_s20, 512, %s1550_s6, %s719_s15, %s1240_s19, %s1240_s19, %s1241_s9  }
 0x382 PF: > { %s748_s18 = sand.u32 1, %s1210_s12   ;;  %p1633_p12 = scmp.ne.s32.totalorder %s1620_s27, 0 }
 0x383   : > { %p1634_p1 = scmp.ge.s32.totalorder %s1230_s17, 2  ;;  %s749_s24 = scalar_lea.sflag [#allocation4], %s748_s18 }
 0x385   : > { %p979_p6 = pnand %p1634_p1, %p1633_p12 }
 0x387   : > { %1205 = dma.done.wait (!%p979_p6), %s749_s24, 512  }
 0x388   : > { %1207 = vsyncadd (!%p979_p6), %s749_s24, 4294966784  ;;  %s22_s17 = sadd.s32 1, %s1230_s17   ;;  %s1635_s25 = sld [smem:[#allocation14_spill]] }
 0x389   : > { %p19_p13 = scmp.ge.s32.totalorder %s22_s17, 4   ;;  %s1636_s15 = sld [smem:[#allocation12_spill]] }
 0x38a   : > { %s1637_s16 = sld [smem:[#allocation13_spill]]  ;;  %s1638_s12 = smov %s1214_s13 }
 0x38b   : > { %s1639_s13 = smov %s1218_s14  ;;  %21 = sbr.rel (!%p19_p13) target bundleno = 10 (0xa), region = 101 }
 0x38e   : > { %s1640_s14 = smov %s1635_s25 }
 0x392   :  { %754 = vsyncpa [#allocation3], 1 }
 0x393   :  { %756 = vsyncpa [#allocation3 + $0x1], 1 }
 0x394   :  { %757 = vsyncpa [#allocation6], 1 }
 0x395   :  { %759 = vsyncpa [#allocation6 + $0x1], 1 }
 0x396   :  { %760 = vsyncpa [#allocation4], 1 }
 0x397   :  { %762 = vsyncpa [#allocation4 + $0x1], 1 }

</bundles_post_ra>
